<compile_context>
chip_gen: v7x
topology: tpu7x:2x2x1
jax: 0.10.0
libtpu: 0.0.40
codegen_flags: <defaults>
</compile_context>

<pallas_src>
import functools
import math

import jax
import jax.numpy as jnp
from jax import lax
from jax.experimental import pallas as pl
from jax.experimental.pallas import tpu as pltpu

# ----- hyperparameters (match SpiralnetClassifierGRU defaults) ---------------
EMBED = 32
N_SPIRAL_LAYERS = 4
N_RNN_LAYERS = 2
N_CLASSES = 10          # nr_of_classes for this synthetic instantiation
LN_EPS = 1e-5


# ----- math helpers (all lower to supported Mosaic elementwise ops) ----------
def _erf(x):
    # Abramowitz & Stegun 7.1.26 polynomial erf, |err| < 1.5e-7 (fp32-exact),
    # reproducing nn.GELU()'s exact erf formulation.
    a1, a2, a3, a4, a5 = 0.254829592, -0.284496736, 1.421413741, -1.453152027, 1.061405429
    p = 0.3275911
    s = jnp.where(x >= 0.0, 1.0, -1.0)
    ax = jnp.abs(x)
    t = 1.0 / (1.0 + p * ax)
    poly = ((((a5 * t + a4) * t + a3) * t + a2) * t + a1) * t
    return s * (1.0 - poly * jnp.exp(-ax * ax))


def _gelu(x):
    return 0.5 * x * (1.0 + _erf(x * (1.0 / math.sqrt(2.0))))


def _sigmoid(x, recip):
    # recip is pl.reciprocal(approx=True) inside the kernel (EUP slot),
    # exact division in the pure-JAX reference.
    return recip(1.0 + jnp.exp(-x))


def _elu(x):
    # Clamp the exp argument so the unselected branch never produces inf.
    return jnp.where(x > 0.0, x, jnp.exp(jnp.minimum(x, 0.0)) - 1.0)


def _dot(a, b):
    # bf16 operands, f32 accumulation on the MXU.
    return jnp.dot(a.astype(jnp.bfloat16), b.astype(jnp.bfloat16),
                   preferred_element_type=jnp.float32)


# ----- shared building blocks (used by both the kernel and the reference) ----
def _embed(x2d, spw, spb, din):
    """Spiralnet placeholder: pointwise Linear stack with ELU between layers."""
    h = x2d.astype(jnp.float32)
    row = 0
    for i in range(N_SPIRAL_LAYERS):
        k = din if i == 0 else EMBED
        h = _dot(h, spw[row:row + k, :]) + spb[i:i + 1, :]
        row += k
        if i < N_SPIRAL_LAYERS - 1:
            h = _elu(h)
    return h


def _layernorm(h, ln):
    mean = jnp.mean(h, axis=-1, keepdims=True)
    c = h - mean
    var = jnp.mean(c * c, axis=-1, keepdims=True)
    return c * lax.rsqrt(var + LN_EPS) * ln[0:1, :] + ln[1:2, :]


def _gru_cell(gx, h, w_hh, b_hn, recip):
    """One GRU step. gx = x_t @ W_ih + fused biases (r,z biases pre-combined,
    bin folded in); PyTorch gate order (r, z, n)."""
    E = EMBED
    gh = _dot(h, w_hh)                                   # (B, 3E)
    r = _sigmoid(gx[:, 0:E] + gh[:, 0:E], recip)
    z = _sigmoid(gx[:, E:2 * E] + gh[:, E:2 * E], recip)
    n = jnp.tanh(gx[:, 2 * E:3 * E] + r * (gh[:, 2 * E:3 * E] + b_hn))
    return (1.0 - z) * n + z * h


# ----- Pallas kernel ----------------------------------------------------------
def _kernel(S, TB, Din, x_ref, spw_ref, spb_ref, ln_ref, gruw_ref, grub_ref,
            fc_ref, out_ref, xproj_ref, hseq_ref):
    E = EMBED
    G = 3 * E
    recip = lambda v: pl.reciprocal(v, approx=True)

    x2d = x_ref[...].reshape(S * TB, Din)
    spw = spw_ref[...]
    spb = spb_ref[...]
    ln = ln_ref[...]
    gruw = gruw_ref[...]
    grub = grub_ref[...]
    fc = fc_ref[...]

    # spiralnet embedding + LayerNorm over the embedding dim
    h = _layernorm(_embed(x2d, spw, spb, Din), ln)        # (S*TB, E), f32

    hid = jnp.zeros((TB, E), jnp.float32)
    for l in range(N_RNN_LAYERS):
        w_ih = gruw[2 * E * l: 2 * E * l + E, :]          # (E, 3E)
        w_hh = gruw[2 * E * l + E: 2 * E * (l + 1), :]    # (E, 3E)
        b_x = grub[l:l + 1, :G]                           # [bir+bhr|biz+bhz|bin]
        b_hn = grub[l:l + 1, G:G + E]                     # bhn

        # Bulk input projection for ALL timesteps of this layer (one matmul).
        xproj_ref[...] = (_dot(h, w_ih) + b_x).reshape(S, TB, G)

        last_layer = (l == N_RNN_LAYERS - 1)

        def step(t, hid, w_hh=w_hh, b_hn=b_hn, last_layer=last_layer):
            h_new = _gru_cell(xproj_ref[t], hid, w_hh, b_hn, recip)
            if not last_layer:
                hseq_ref[t] = h_new                       # feed next layer
            return h_new

        hid = lax.fori_loop(0, S, step, jnp.zeros((TB, E), jnp.float32),
                            unroll=True)
        if not last_layer:
            h = hseq_ref[...].reshape(S * TB, E)

    # last timestep -> GELU -> fc (bias is the last row of the fc slab)
    logits = _dot(_gelu(hid), fc[:E, :]) + fc[E:E + 1, :]
    out_ref[...] = logits


# ----- wrapper ----------------------------------------------------------------
def spiralnet_classifier_gru(x, packed):
    S, B, Din = x.shape
    spw, spb, ln, gruw, grub, fc = packed
    E, G, C = EMBED, 3 * EMBED, N_CLASSES

    # batch tile: full batch when it is not 8-aligned (TPU sublane constraint),
    # otherwise 8-row tiles so the grid can scale / megacore-shard on v7x.
    TB = 8 if B % 8 == 0 else B
    grid = (B // TB,)

    def full(a):
        return pl.BlockSpec(a.shape, lambda i, _nd=a.ndim: (0,) * _nd)

    flops = int(2 * S * B * (Din * E + (N_SPIRAL_LAYERS - 1) * E * E)
                + N_RNN_LAYERS * 4 * S * B * E * G
                + 2 * B * E * C)
    transc = int(S * B * E * ((N_SPIRAL_LAYERS - 1) + 4 * N_RNN_LAYERS) + B * E)
    nbytes = int(4 * (x.size + sum(int(p.size) for p in packed) + B * C))

    kernel = functools.partial(_kernel, S, TB, Din)
    return pl.pallas_call(
        kernel,
        out_shape=jax.ShapeDtypeStruct((B, C), jnp.float32),
        grid=grid,
        in_specs=[
            pl.BlockSpec((S, TB, Din), lambda i: (0, i, 0)),
            full(spw), full(spb), full(ln), full(gruw), full(grub), full(fc),
        ],
        out_specs=pl.BlockSpec((TB, C), lambda i: (i, 0)),
        scratch_shapes=[
            pltpu.VMEM((S, TB, G), jnp.float32),   # bulk gate input projections
            pltpu.VMEM((S, TB, E), jnp.float32),   # layer-l output sequence
        ],
        compiler_params=pltpu.CompilerParams(
            dimension_semantics=("parallel",),
            vmem_limit_bytes=32 * 1024 * 1024),
        cost_estimate=pl.CostEstimate(
            flops=flops, transcendentals=transc, bytes_accessed=nbytes),
    )(x, spw, spb, ln, gruw, grub, fc)


# ----- pure-JAX reference (same packed slabs, same math) ----------------------
def _reference(x, spw, spb, ln, gruw, grub, fc):
    S, B, Din = x.shape
    E, G = EMBED, 3 * EMBED
    recip = lambda v: 1.0 / v
    h = _layernorm(_embed(x.reshape(S * B, Din), spw, spb, Din), ln)
    hid = jnp.zeros((B, E), jnp.float32)
    for l in range(N_RNN_LAYERS):
        w_ih = gruw[2 * E * l: 2 * E * l + E, :]
        w_hh = gruw[2 * E * l + E: 2 * E * (l + 1), :]
        b_x = grub[l:l + 1, :G]
        b_hn = grub[l:l + 1, G:G + E]
        xp = (_dot(h, w_ih) + b_x).reshape(S, B, G)
        hid = jnp.zeros((B, E), jnp.float32)
        outs = []
        for t in range(S):
            hid = _gru_cell(xp[t], hid, w_hh, b_hn, recip)
            outs.append(hid)
        h = jnp.stack(outs, axis=0).reshape(S * B, E)
    return _dot(_gelu(hid), fc[:E, :]) + fc[E:E + 1, :]


# ----- deterministic parameter init & wrapper-side packing --------------------
def init_params(key, in_dim):
    keys = iter(jax.random.split(key, 64))

    def xavier(shape):
        fi, fo = shape
        bound = math.sqrt(6.0 / (fi + fo))
        return jax.random.uniform(next(keys), shape, jnp.float32, -bound, bound)

    dims = [in_dim] + [EMBED] * N_SPIRAL_LAYERS
    p = {
        "sp_w": [xavier((dims[i], dims[i + 1])) for i in range(N_SPIRAL_LAYERS)],
        "sp_b": [jnp.zeros((dims[i + 1],), jnp.float32) for i in range(N_SPIRAL_LAYERS)],
        "ln_g": jnp.ones((EMBED,), jnp.float32),
        "ln_b": jnp.zeros((EMBED,), jnp.float32),
        "gru": [],
        "w_fc": xavier((EMBED, N_CLASSES)),
    }
    bnd = 1.0 / math.sqrt(EMBED)
    for _ in range(N_RNN_LAYERS):
        layer = {}
        for name in ("wir", "wiz", "win", "whr", "whz", "whn"):
            layer[name] = xavier((EMBED, EMBED))          # xavier, as in __init__
        for name in ("bir", "biz", "bin", "bhr", "bhz", "bhn"):
            layer[name] = jax.random.uniform(next(keys), (EMBED,), jnp.float32, -bnd, bnd)
        p["gru"].append(layer)
    p["b_fc"] = jax.random.uniform(next(keys), (N_CLASSES,), jnp.float32, -bnd, bnd)
    return p


def pack_params(p):
    """Fuse GRU gates / pre-combine biases and pack everything into 6 slabs."""
    spw = jnp.concatenate(p["sp_w"], axis=0)                       # (Din+3E, E)
    spb = jnp.stack(p["sp_b"], axis=0)                             # (4, E)
    ln = jnp.stack([p["ln_g"], p["ln_b"]], axis=0)                 # (2, E)
    w_rows, b_rows = [], []
    for g in p["gru"]:
        w_rows.append(jnp.concatenate([g["wir"], g["wiz"], g["win"]], axis=1))  # W_ih
        w_rows.append(jnp.concatenate([g["whr"], g["whz"], g["whn"]], axis=1))  # W_hh
        b_x = jnp.concatenate([g["bir"] + g["bhr"],
                               g["biz"] + g["bhz"],
                               g["bin"]], axis=0)                  # (3E,)
        b_rows.append(jnp.concatenate([b_x, g["bhn"]], axis=0))    # (4E,)
    gruw = jnp.concatenate(w_rows, axis=0)                         # (L*2E, 3E)
    grub = jnp.stack(b_rows, axis=0)                               # (L, 4E)
    fc = jnp.concatenate([p["w_fc"], p["b_fc"][None, :]], axis=0)  # (E+1, C)
    return spw, spb, ln, gruw, grub, fc


if __name__ == "__main__":
    key = jax.random.PRNGKey(0)
    k_x, k_p = jax.random.split(key)

    S, B, Din = 8, 2, 16                      # seq_len, batch, input features
    x = jax.random.normal(k_x, (S, B, Din), jnp.float32)
    packed = pack_params(init_params(k_p, Din))

    logits = jax.block_until_ready(spiralnet_classifier_gru(x, packed))
    ref = jax.block_until_ready(_reference(x, *packed))

    assert logits.shape == (B, N_CLASSES), logits.shape
    assert bool(jnp.all(jnp.isfinite(logits)))
    assert bool(jnp.allclose(logits, ref, rtol=3e-2, atol=3e-2)), (logits, ref)

    print("KERNEL_OK")
</pallas_src>

<mosaic_0001>
module attributes {stable_mosaic.version = 11 : i64} {
  func.func @_kernel(%arg0: i32, %arg1: memref<8x2x16xf32, #tpu.memory_space<vmem>>, %arg2: memref<112x32xf32, #tpu.memory_space<vmem>>, %arg3: memref<4x32xf32, #tpu.memory_space<vmem>>, %arg4: memref<2x32xf32, #tpu.memory_space<vmem>>, %arg5: memref<128x96xf32, #tpu.memory_space<vmem>>, %arg6: memref<2x128xf32, #tpu.memory_space<vmem>>, %arg7: memref<33x10xf32, #tpu.memory_space<vmem>>, %arg8: memref<2x10xf32, #tpu.memory_space<vmem>>, %arg9: memref<8x2x96xf32, #tpu.memory_space<vmem>>, %arg10: memref<8x2x32xf32, #tpu.memory_space<vmem>>) attributes {dimension_semantics = [#tpu.dimension_semantics<parallel>], iteration_bounds = array<i64: 1>, scalar_prefetch = 0 : i64, scratch_operands = 2 : i64, tpu.core_type = #tpu.core_type<tc>, window_params = [{transform_indices = @transform_0, window_bounds = array<i64: 8, 2, 16>}, {pipeline_mode = #tpu.pipeline_mode<synchronous>, transform_indices = @transform_1, window_bounds = array<i64: 112, 32>}, {pipeline_mode = #tpu.pipeline_mode<synchronous>, transform_indices = @transform_2, window_bounds = array<i64: 4, 32>}, {pipeline_mode = #tpu.pipeline_mode<synchronous>, transform_indices = @transform_3, window_bounds = array<i64: 2, 32>}, {pipeline_mode = #tpu.pipeline_mode<synchronous>, transform_indices = @transform_4, window_bounds = array<i64: 128, 96>}, {pipeline_mode = #tpu.pipeline_mode<synchronous>, transform_indices = @transform_5, window_bounds = array<i64: 2, 128>}, {pipeline_mode = #tpu.pipeline_mode<synchronous>, transform_indices = @transform_6, window_bounds = array<i64: 33, 10>}, {transform_indices = @transform_7, window_bounds = array<i64: 2, 10>}]} {
    %c0 = arith.constant 0 : index
    %c0_0 = arith.constant 0 : index
    %c0_1 = arith.constant 0 : index
    %0 = vector.load %arg1[%c0, %c0_0, %c0_1] : memref<8x2x16xf32, #tpu.memory_space<vmem>>, vector<8x2x16xf32>
    %1 = vector.shape_cast %0 : vector<8x2x16xf32> to vector<16x16xf32>
    %c0_2 = arith.constant 0 : index
    %c0_3 = arith.constant 0 : index
    %2 = vector.load %arg2[%c0_2, %c0_3] : memref<112x32xf32, #tpu.memory_space<vmem>>, vector<112x32xf32>
    %c0_4 = arith.constant 0 : index
    %c0_5 = arith.constant 0 : index
    %3 = vector.load %arg3[%c0_4, %c0_5] : memref<4x32xf32, #tpu.memory_space<vmem>>, vector<4x32xf32>
    %c0_6 = arith.constant 0 : index
    %c0_7 = arith.constant 0 : index
    %4 = vector.load %arg4[%c0_6, %c0_7] : memref<2x32xf32, #tpu.memory_space<vmem>>, vector<2x32xf32>
    %c0_8 = arith.constant 0 : index
    %c0_9 = arith.constant 0 : index
    %5 = vector.load %arg5[%c0_8, %c0_9] : memref<128x96xf32, #tpu.memory_space<vmem>>, vector<128x96xf32>
    %c0_10 = arith.constant 0 : index
    %c0_11 = arith.constant 0 : index
    %6 = vector.load %arg6[%c0_10, %c0_11] : memref<2x128xf32, #tpu.memory_space<vmem>>, vector<2x128xf32>
    %c0_12 = arith.constant 0 : index
    %c0_13 = arith.constant 0 : index
    %7 = vector.load %arg7[%c0_12, %c0_13] : memref<33x10xf32, #tpu.memory_space<vmem>>, vector<33x10xf32>
    %8 = vector.extract_strided_slice %2 {offsets = [0, 0], sizes = [16, 32], strides = [1, 1]} : vector<112x32xf32> to vector<16x32xf32>
    %9 = arith.truncf %1 : vector<16x16xf32> to vector<16x16xbf16>
    %10 = arith.truncf %8 : vector<16x32xf32> to vector<16x32xbf16>
    %cst = arith.constant dense<0.000000e+00> : vector<16x32xf32>
    %11 = tpu.matmul %9, %10, %cst {dimension_numbers = #tpu.dot_dimension_numbers<[1], [0], [0], [1], [0, 0, 1, 1], [], []>} : vector<16x16xbf16>, vector<16x32xbf16>, vector<16x32xf32> -> vector<16x32xf32>
    %12 = vector.extract_strided_slice %3 {offsets = [0, 0], sizes = [1, 32], strides = [1, 1]} : vector<4x32xf32> to vector<1x32xf32>
    %13 = vector.broadcast %12 : vector<1x32xf32> to vector<16x32xf32>
    %14 = arith.addf %11, %13 : vector<16x32xf32>
    %cst_14 = arith.constant 0.000000e+00 : f32
    %15 = vector.broadcast %cst_14 : f32 to vector<16x32xf32>
    %16 = arith.cmpf ogt, %14, %15 : vector<16x32xf32>
    %cst_15 = arith.constant 0.000000e+00 : f32
    %17 = vector.broadcast %cst_15 : f32 to vector<16x32xf32>
    %18 = arith.minimumf %14, %17 : vector<16x32xf32>
    %19 = math.exp %18 : vector<16x32xf32>
    %cst_16 = arith.constant 1.000000e+00 : f32
    %20 = vector.broadcast %cst_16 : f32 to vector<16x32xf32>
    %21 = arith.subf %19, %20 : vector<16x32xf32>
    %22 = arith.select %16, %14, %21 : vector<16x32xi1>, vector<16x32xf32>
    %23 = vector.extract_strided_slice %2 {offsets = [16, 0], sizes = [32, 32], strides = [1, 1]} : vector<112x32xf32> to vector<32x32xf32>
    %24 = arith.truncf %22 : vector<16x32xf32> to vector<16x32xbf16>
    %25 = arith.truncf %23 : vector<32x32xf32> to vector<32x32xbf16>
    %cst_17 = arith.constant dense<0.000000e+00> : vector<16x32xf32>
    %26 = tpu.matmul %24, %25, %cst_17 {dimension_numbers = #tpu.dot_dimension_numbers<[1], [0], [0], [1], [0, 0, 1, 1], [], []>} : vector<16x32xbf16>, vector<32x32xbf16>, vector<16x32xf32> -> vector<16x32xf32>
    %27 = vector.extract_strided_slice %3 {offsets = [1, 0], sizes = [1, 32], strides = [1, 1]} : vector<4x32xf32> to vector<1x32xf32>
    %28 = vector.broadcast %27 : vector<1x32xf32> to vector<16x32xf32>
    %29 = arith.addf %26, %28 : vector<16x32xf32>
    %cst_18 = arith.constant 0.000000e+00 : f32
    %30 = vector.broadcast %cst_18 : f32 to vector<16x32xf32>
    %31 = arith.cmpf ogt, %29, %30 : vector<16x32xf32>
    %cst_19 = arith.constant 0.000000e+00 : f32
    %32 = vector.broadcast %cst_19 : f32 to vector<16x32xf32>
    %33 = arith.minimumf %29, %32 : vector<16x32xf32>
    %34 = math.exp %33 : vector<16x32xf32>
    %cst_20 = arith.constant 1.000000e+00 : f32
    %35 = vector.broadcast %cst_20 : f32 to vector<16x32xf32>
    %36 = arith.subf %34, %35 : vector<16x32xf32>
    %37 = arith.select %31, %29, %36 : vector<16x32xi1>, vector<16x32xf32>
    %38 = vector.extract_strided_slice %2 {offsets = [48, 0], sizes = [32, 32], strides = [1, 1]} : vector<112x32xf32> to vector<32x32xf32>
    %39 = arith.truncf %37 : vector<16x32xf32> to vector<16x32xbf16>
    %40 = arith.truncf %38 : vector<32x32xf32> to vector<32x32xbf16>
    %cst_21 = arith.constant dense<0.000000e+00> : vector<16x32xf32>
    %41 = tpu.matmul %39, %40, %cst_21 {dimension_numbers = #tpu.dot_dimension_numbers<[1], [0], [0], [1], [0, 0, 1, 1], [], []>} : vector<16x32xbf16>, vector<32x32xbf16>, vector<16x32xf32> -> vector<16x32xf32>
    %42 = vector.extract_strided_slice %3 {offsets = [2, 0], sizes = [1, 32], strides = [1, 1]} : vector<4x32xf32> to vector<1x32xf32>
    %43 = vector.broadcast %42 : vector<1x32xf32> to vector<16x32xf32>
    %44 = arith.addf %41, %43 : vector<16x32xf32>
    %cst_22 = arith.constant 0.000000e+00 : f32
    %45 = vector.broadcast %cst_22 : f32 to vector<16x32xf32>
    %46 = arith.cmpf ogt, %44, %45 : vector<16x32xf32>
    %cst_23 = arith.constant 0.000000e+00 : f32
    %47 = vector.broadcast %cst_23 : f32 to vector<16x32xf32>
    %48 = arith.minimumf %44, %47 : vector<16x32xf32>
    %49 = math.exp %48 : vector<16x32xf32>
    %cst_24 = arith.constant 1.000000e+00 : f32
    %50 = vector.broadcast %cst_24 : f32 to vector<16x32xf32>
    %51 = arith.subf %49, %50 : vector<16x32xf32>
    %52 = arith.select %46, %44, %51 : vector<16x32xi1>, vector<16x32xf32>
    %53 = vector.extract_strided_slice %2 {offsets = [80, 0], sizes = [32, 32], strides = [1, 1]} : vector<112x32xf32> to vector<32x32xf32>
    %54 = arith.truncf %52 : vector<16x32xf32> to vector<16x32xbf16>
    %55 = arith.truncf %53 : vector<32x32xf32> to vector<32x32xbf16>
    %cst_25 = arith.constant dense<0.000000e+00> : vector<16x32xf32>
    %56 = tpu.matmul %54, %55, %cst_25 {dimension_numbers = #tpu.dot_dimension_numbers<[1], [0], [0], [1], [0, 0, 1, 1], [], []>} : vector<16x32xbf16>, vector<32x32xbf16>, vector<16x32xf32> -> vector<16x32xf32>
    %57 = vector.extract_strided_slice %3 {offsets = [3, 0], sizes = [1, 32], strides = [1, 1]} : vector<4x32xf32> to vector<1x32xf32>
    %58 = vector.broadcast %57 : vector<1x32xf32> to vector<16x32xf32>
    %59 = arith.addf %56, %58 : vector<16x32xf32>
    %cst_26 = arith.constant dense<0.000000e+00> : vector<16xf32>
    %60 = vector.multi_reduction <add>, %59, %cst_26 [1] : vector<16x32xf32> to vector<16xf32>
    %61 = vector.shape_cast %60 : vector<16xf32> to vector<16x1xf32>
    %cst_27 = arith.constant 3.200000e+01 : f32
    %62 = vector.broadcast %cst_27 : f32 to vector<16x1xf32>
    %63 = arith.divf %61, %62 : vector<16x1xf32>
    %64 = vector.broadcast %63 : vector<16x1xf32> to vector<16x32xf32>
    %65 = arith.subf %59, %64 : vector<16x32xf32>
    %66 = arith.mulf %65, %65 : vector<16x32xf32>
    %cst_28 = arith.constant dense<0.000000e+00> : vector<16xf32>
    %67 = vector.multi_reduction <add>, %66, %cst_28 [1] : vector<16x32xf32> to vector<16xf32>
    %68 = vector.shape_cast %67 : vector<16xf32> to vector<16x1xf32>
    %cst_29 = arith.constant 3.200000e+01 : f32
    %69 = vector.broadcast %cst_29 : f32 to vector<16x1xf32>
    %70 = arith.divf %68, %69 : vector<16x1xf32>
    %cst_30 = arith.constant 9.99999974E-6 : f32
    %71 = vector.broadcast %cst_30 : f32 to vector<16x1xf32>
    %72 = arith.addf %70, %71 : vector<16x1xf32>
    %73 = math.rsqrt %72 : vector<16x1xf32>
    %74 = vector.broadcast %73 : vector<16x1xf32> to vector<16x32xf32>
    %75 = arith.mulf %65, %74 : vector<16x32xf32>
    %76 = vector.extract_strided_slice %4 {offsets = [0, 0], sizes = [1, 32], strides = [1, 1]} : vector<2x32xf32> to vector<1x32xf32>
    %77 = vector.broadcast %76 : vector<1x32xf32> to vector<16x32xf32>
    %78 = arith.mulf %75, %77 : vector<16x32xf32>
    %79 = vector.extract_strided_slice %4 {offsets = [1, 0], sizes = [1, 32], strides = [1, 1]} : vector<2x32xf32> to vector<1x32xf32>
    %80 = vector.broadcast %79 : vector<1x32xf32> to vector<16x32xf32>
    %81 = arith.addf %78, %80 : vector<16x32xf32>
    %82 = vector.extract_strided_slice %5 {offsets = [0, 0], sizes = [32, 96], strides = [1, 1]} : vector<128x96xf32> to vector<32x96xf32>
    %83 = vector.extract_strided_slice %5 {offsets = [32, 0], sizes = [32, 96], strides = [1, 1]} : vector<128x96xf32> to vector<32x96xf32>
    %84 = vector.extract_strided_slice %6 {offsets = [0, 0], sizes = [1, 96], strides = [1, 1]} : vector<2x128xf32> to vector<1x96xf32>
    %85 = vector.extract_strided_slice %6 {offsets = [0, 96], sizes = [1, 32], strides = [1, 1]} : vector<2x128xf32> to vector<1x32xf32>
    %86 = arith.truncf %81 : vector<16x32xf32> to vector<16x32xbf16>
    %87 = arith.truncf %82 : vector<32x96xf32> to vector<32x96xbf16>
    %cst_31 = arith.constant dense<0.000000e+00> : vector<16x96xf32>
    %88 = tpu.matmul %86, %87, %cst_31 {dimension_numbers = #tpu.dot_dimension_numbers<[1], [0], [0], [1], [0, 0, 1, 1], [], []>} : vector<16x32xbf16>, vector<32x96xbf16>, vector<16x96xf32> -> vector<16x96xf32>
    %89 = vector.broadcast %84 : vector<1x96xf32> to vector<16x96xf32>
    %90 = arith.addf %88, %89 : vector<16x96xf32>
    %91 = vector.shape_cast %90 : vector<16x96xf32> to vector<8x2x96xf32>
    %c0_32 = arith.constant 0 : index
    %c0_33 = arith.constant 0 : index
    %c0_34 = arith.constant 0 : index
    %92 = vector.load %arg9[%c0_32, %c0_33, %c0_34] : memref<8x2x96xf32, #tpu.memory_space<vmem>>, vector<8x2x96xf32>
    tpu.vector_store %arg9[%c0_32, %c0_33, %c0_34], %91 {strides = array<i32>} : memref<8x2x96xf32, #tpu.memory_space<vmem>>, vector<8x2x96xf32>,
    %cst_35 = arith.constant 0.000000e+00 : f32
    %93 = vector.broadcast %cst_35 : f32 to vector<2x32xf32>
    %c0_i32 = arith.constant 0 : i32
    %94 = arith.index_cast %c0_i32 : i32 to index
    %c0_36 = arith.constant 0 : index
    %c0_37 = arith.constant 0 : index
    %95 = vector.load %arg9[%94, %c0_36, %c0_37] : memref<8x2x96xf32, #tpu.memory_space<vmem>>, vector<1x2x96xf32>
    %96 = vector.shape_cast %95 : vector<1x2x96xf32> to vector<2x96xf32>
    %97 = arith.truncf %93 : vector<2x32xf32> to vector<2x32xbf16>
    %98 = arith.truncf %83 : vector<32x96xf32> to vector<32x96xbf16>
    %cst_38 = arith.constant dense<0.000000e+00> : vector<2x96xf32>
    %99 = tpu.matmul %97, %98, %cst_38 {dimension_numbers = #tpu.dot_dimension_numbers<[1], [0], [0], [1], [0, 0, 1, 1], [], []>} : vector<2x32xbf16>, vector<32x96xbf16>, vector<2x96xf32> -> vector<2x96xf32>
    %100 = vector.extract_strided_slice %96 {offsets = [0, 0], sizes = [2, 32], strides = [1, 1]} : vector<2x96xf32> to vector<2x32xf32>
    %101 = vector.extract_strided_slice %99 {offsets = [0, 0], sizes = [2, 32], strides = [1, 1]} : vector<2x96xf32> to vector<2x32xf32>
    %102 = arith.addf %100, %101 : vector<2x32xf32>
    %cst_39 = arith.constant 0.000000e+00 : f32
    %103 = vector.broadcast %cst_39 : f32 to vector<2x32xf32>
    %104 = arith.subf %103, %102 : vector<2x32xf32>
    %105 = math.exp %104 : vector<2x32xf32>
    %cst_40 = arith.constant 1.000000e+00 : f32
    %106 = vector.broadcast %cst_40 : f32 to vector<2x32xf32>
    %107 = arith.addf %106, %105 : vector<2x32xf32>
    %108 = tpu.reciprocal %107 {approx = true} : vector<2x32xf32> -> vector<2x32xf32>
    %109 = vector.extract_strided_slice %96 {offsets = [0, 32], sizes = [2, 32], strides = [1, 1]} : vector<2x96xf32> to vector<2x32xf32>
    %110 = vector.extract_strided_slice %99 {offsets = [0, 32], sizes = [2, 32], strides = [1, 1]} : vector<2x96xf32> to vector<2x32xf32>
    %111 = arith.addf %109, %110 : vector<2x32xf32>
    %cst_41 = arith.constant 0.000000e+00 : f32
    %112 = vector.broadcast %cst_41 : f32 to vector<2x32xf32>
    %113 = arith.subf %112, %111 : vector<2x32xf32>
    %114 = math.exp %113 : vector<2x32xf32>
    %cst_42 = arith.constant 1.000000e+00 : f32
    %115 = vector.broadcast %cst_42 : f32 to vector<2x32xf32>
    %116 = arith.addf %115, %114 : vector<2x32xf32>
    %117 = tpu.reciprocal %116 {approx = true} : vector<2x32xf32> -> vector<2x32xf32>
    %118 = vector.extract_strided_slice %96 {offsets = [0, 64], sizes = [2, 32], strides = [1, 1]} : vector<2x96xf32> to vector<2x32xf32>
    %119 = vector.extract_strided_slice %99 {offsets = [0, 64], sizes = [2, 32], strides = [1, 1]} : vector<2x96xf32> to vector<2x32xf32>
    %120 = vector.broadcast %85 : vector<1x32xf32> to vector<2x32xf32>
    %121 = arith.addf %119, %120 : vector<2x32xf32>
    %122 = arith.mulf %108, %121 : vector<2x32xf32>
    %123 = arith.addf %118, %122 : vector<2x32xf32>
    %124 = math.tanh %123 : vector<2x32xf32>
    %cst_43 = arith.constant 1.000000e+00 : f32
    %125 = vector.broadcast %cst_43 : f32 to vector<2x32xf32>
    %126 = arith.subf %125, %117 : vector<2x32xf32>
    %127 = arith.mulf %126, %124 : vector<2x32xf32>
    %128 = arith.mulf %117, %93 : vector<2x32xf32>
    %129 = arith.addf %127, %128 : vector<2x32xf32>
    %130 = arith.index_cast %c0_i32 : i32 to index
    %c0_44 = arith.constant 0 : index
    %c0_45 = arith.constant 0 : index
    %131 = vector.load %arg10[%130, %c0_44, %c0_45] : memref<8x2x32xf32, #tpu.memory_space<vmem>>, vector<1x2x32xf32>
    %132 = vector.shape_cast %131 : vector<1x2x32xf32> to vector<2x32xf32>
    %133 = vector.shape_cast %129 : vector<2x32xf32> to vector<1x2x32xf32>
    tpu.vector_store %arg10[%130, %c0_44, %c0_45], %133 {strides = array<i32>} : memref<8x2x32xf32, #tpu.memory_space<vmem>>, vector<1x2x32xf32>,
    %c1_i32 = arith.constant 1 : i32
    %134 = arith.index_cast %c1_i32 : i32 to index
    %c0_46 = arith.constant 0 : index
    %c0_47 = arith.constant 0 : index
    %135 = vector.load %arg9[%134, %c0_46, %c0_47] : memref<8x2x96xf32, #tpu.memory_space<vmem>>, vector<1x2x96xf32>
    %136 = vector.shape_cast %135 : vector<1x2x96xf32> to vector<2x96xf32>
    %137 = arith.truncf %129 : vector<2x32xf32> to vector<2x32xbf16>
    %138 = arith.truncf %83 : vector<32x96xf32> to vector<32x96xbf16>
    %cst_48 = arith.constant dense<0.000000e+00> : vector<2x96xf32>
    %139 = tpu.matmul %137, %138, %cst_48 {dimension_numbers = #tpu.dot_dimension_numbers<[1], [0], [0], [1], [0, 0, 1, 1], [], []>} : vector<2x32xbf16>, vector<32x96xbf16>, vector<2x96xf32> -> vector<2x96xf32>
    %140 = vector.extract_strided_slice %136 {offsets = [0, 0], sizes = [2, 32], strides = [1, 1]} : vector<2x96xf32> to vector<2x32xf32>
    %141 = vector.extract_strided_slice %139 {offsets = [0, 0], sizes = [2, 32], strides = [1, 1]} : vector<2x96xf32> to vector<2x32xf32>
    %142 = arith.addf %140, %141 : vector<2x32xf32>
    %cst_49 = arith.constant 0.000000e+00 : f32
    %143 = vector.broadcast %cst_49 : f32 to vector<2x32xf32>
    %144 = arith.subf %143, %142 : vector<2x32xf32>
    %145 = math.exp %144 : vector<2x32xf32>
    %cst_50 = arith.constant 1.000000e+00 : f32
    %146 = vector.broadcast %cst_50 : f32 to vector<2x32xf32>
    %147 = arith.addf %146, %145 : vector<2x32xf32>
    %148 = tpu.reciprocal %147 {approx = true} : vector<2x32xf32> -> vector<2x32xf32>
    %149 = vector.extract_strided_slice %136 {offsets = [0, 32], sizes = [2, 32], strides = [1, 1]} : vector<2x96xf32> to vector<2x32xf32>
    %150 = vector.extract_strided_slice %139 {offsets = [0, 32], sizes = [2, 32], strides = [1, 1]} : vector<2x96xf32> to vector<2x32xf32>
    %151 = arith.addf %149, %150 : vector<2x32xf32>
    %cst_51 = arith.constant 0.000000e+00 : f32
    %152 = vector.broadcast %cst_51 : f32 to vector<2x32xf32>
    %153 = arith.subf %152, %151 : vector<2x32xf32>
    %154 = math.exp %153 : vector<2x32xf32>
    %cst_52 = arith.constant 1.000000e+00 : f32
    %155 = vector.broadcast %cst_52 : f32 to vector<2x32xf32>
    %156 = arith.addf %155, %154 : vector<2x32xf32>
    %157 = tpu.reciprocal %156 {approx = true} : vector<2x32xf32> -> vector<2x32xf32>
    %158 = vector.extract_strided_slice %136 {offsets = [0, 64], sizes = [2, 32], strides = [1, 1]} : vector<2x96xf32> to vector<2x32xf32>
    %159 = vector.extract_strided_slice %139 {offsets = [0, 64], sizes = [2, 32], strides = [1, 1]} : vector<2x96xf32> to vector<2x32xf32>
    %160 = vector.broadcast %85 : vector<1x32xf32> to vector<2x32xf32>
    %161 = arith.addf %159, %160 : vector<2x32xf32>
    %162 = arith.mulf %148, %161 : vector<2x32xf32>
    %163 = arith.addf %158, %162 : vector<2x32xf32>
    %164 = math.tanh %163 : vector<2x32xf32>
    %cst_53 = arith.constant 1.000000e+00 : f32
    %165 = vector.broadcast %cst_53 : f32 to vector<2x32xf32>
    %166 = arith.subf %165, %157 : vector<2x32xf32>
    %167 = arith.mulf %166, %164 : vector<2x32xf32>
    %168 = arith.mulf %157, %129 : vector<2x32xf32>
    %169 = arith.addf %167, %168 : vector<2x32xf32>
    %170 = arith.index_cast %c1_i32 : i32 to index
    %c0_54 = arith.constant 0 : index
    %c0_55 = arith.constant 0 : index
    %171 = vector.load %arg10[%170, %c0_54, %c0_55] : memref<8x2x32xf32, #tpu.memory_space<vmem>>, vector<1x2x32xf32>
    %172 = vector.shape_cast %171 : vector<1x2x32xf32> to vector<2x32xf32>
    %173 = vector.shape_cast %169 : vector<2x32xf32> to vector<1x2x32xf32>
    tpu.vector_store %arg10[%170, %c0_54, %c0_55], %173 {strides = array<i32>} : memref<8x2x32xf32, #tpu.memory_space<vmem>>, vector<1x2x32xf32>,
    %c2_i32 = arith.constant 2 : i32
    %174 = arith.index_cast %c2_i32 : i32 to index
    %c0_56 = arith.constant 0 : index
    %c0_57 = arith.constant 0 : index
    %175 = vector.load %arg9[%174, %c0_56, %c0_57] : memref<8x2x96xf32, #tpu.memory_space<vmem>>, vector<1x2x96xf32>
    %176 = vector.shape_cast %175 : vector<1x2x96xf32> to vector<2x96xf32>
    %177 = arith.truncf %169 : vector<2x32xf32> to vector<2x32xbf16>
    %178 = arith.truncf %83 : vector<32x96xf32> to vector<32x96xbf16>
    %cst_58 = arith.constant dense<0.000000e+00> : vector<2x96xf32>
    %179 = tpu.matmul %177, %178, %cst_58 {dimension_numbers = #tpu.dot_dimension_numbers<[1], [0], [0], [1], [0, 0, 1, 1], [], []>} : vector<2x32xbf16>, vector<32x96xbf16>, vector<2x96xf32> -> vector<2x96xf32>
    %180 = vector.extract_strided_slice %176 {offsets = [0, 0], sizes = [2, 32], strides = [1, 1]} : vector<2x96xf32> to vector<2x32xf32>
    %181 = vector.extract_strided_slice %179 {offsets = [0, 0], sizes = [2, 32], strides = [1, 1]} : vector<2x96xf32> to vector<2x32xf32>
    %182 = arith.addf %180, %181 : vector<2x32xf32>
    %cst_59 = arith.constant 0.000000e+00 : f32
    %183 = vector.broadcast %cst_59 : f32 to vector<2x32xf32>
    %184 = arith.subf %183, %182 : vector<2x32xf32>
    %185 = math.exp %184 : vector<2x32xf32>
    %cst_60 = arith.constant 1.000000e+00 : f32
    %186 = vector.broadcast %cst_60 : f32 to vector<2x32xf32>
    %187 = arith.addf %186, %185 : vector<2x32xf32>
    %188 = tpu.reciprocal %187 {approx = true} : vector<2x32xf32> -> vector<2x32xf32>
    %189 = vector.extract_strided_slice %176 {offsets = [0, 32], sizes = [2, 32], strides = [1, 1]} : vector<2x96xf32> to vector<2x32xf32>
    %190 = vector.extract_strided_slice %179 {offsets = [0, 32], sizes = [2, 32], strides = [1, 1]} : vector<2x96xf32> to vector<2x32xf32>
    %191 = arith.addf %189, %190 : vector<2x32xf32>
    %cst_61 = arith.constant 0.000000e+00 : f32
    %192 = vector.broadcast %cst_61 : f32 to vector<2x32xf32>
    %193 = arith.subf %192, %191 : vector<2x32xf32>
    %194 = math.exp %193 : vector<2x32xf32>
    %cst_62 = arith.constant 1.000000e+00 : f32
    %195 = vector.broadcast %cst_62 : f32 to vector<2x32xf32>
    %196 = arith.addf %195, %194 : vector<2x32xf32>
    %197 = tpu.reciprocal %196 {approx = true} : vector<2x32xf32> -> vector<2x32xf32>
    %198 = vector.extract_strided_slice %176 {offsets = [0, 64], sizes = [2, 32], strides = [1, 1]} : vector<2x96xf32> to vector<2x32xf32>
    %199 = vector.extract_strided_slice %179 {offsets = [0, 64], sizes = [2, 32], strides = [1, 1]} : vector<2x96xf32> to vector<2x32xf32>
    %200 = vector.broadcast %85 : vector<1x32xf32> to vector<2x32xf32>
    %201 = arith.addf %199, %200 : vector<2x32xf32>
    %202 = arith.mulf %188, %201 : vector<2x32xf32>
    %203 = arith.addf %198, %202 : vector<2x32xf32>
    %204 = math.tanh %203 : vector<2x32xf32>
    %cst_63 = arith.constant 1.000000e+00 : f32
    %205 = vector.broadcast %cst_63 : f32 to vector<2x32xf32>
    %206 = arith.subf %205, %197 : vector<2x32xf32>
    %207 = arith.mulf %206, %204 : vector<2x32xf32>
    %208 = arith.mulf %197, %169 : vector<2x32xf32>
    %209 = arith.addf %207, %208 : vector<2x32xf32>
    %210 = arith.index_cast %c2_i32 : i32 to index
    %c0_64 = arith.constant 0 : index
    %c0_65 = arith.constant 0 : index
    %211 = vector.load %arg10[%210, %c0_64, %c0_65] : memref<8x2x32xf32, #tpu.memory_space<vmem>>, vector<1x2x32xf32>
    %212 = vector.shape_cast %211 : vector<1x2x32xf32> to vector<2x32xf32>
    %213 = vector.shape_cast %209 : vector<2x32xf32> to vector<1x2x32xf32>
    tpu.vector_store %arg10[%210, %c0_64, %c0_65], %213 {strides = array<i32>} : memref<8x2x32xf32, #tpu.memory_space<vmem>>, vector<1x2x32xf32>,
    %c3_i32 = arith.constant 3 : i32
    %214 = arith.index_cast %c3_i32 : i32 to index
    %c0_66 = arith.constant 0 : index
    %c0_67 = arith.constant 0 : index
    %215 = vector.load %arg9[%214, %c0_66, %c0_67] : memref<8x2x96xf32, #tpu.memory_space<vmem>>, vector<1x2x96xf32>
    %216 = vector.shape_cast %215 : vector<1x2x96xf32> to vector<2x96xf32>
    %217 = arith.truncf %209 : vector<2x32xf32> to vector<2x32xbf16>
    %218 = arith.truncf %83 : vector<32x96xf32> to vector<32x96xbf16>
    %cst_68 = arith.constant dense<0.000000e+00> : vector<2x96xf32>
    %219 = tpu.matmul %217, %218, %cst_68 {dimension_numbers = #tpu.dot_dimension_numbers<[1], [0], [0], [1], [0, 0, 1, 1], [], []>} : vector<2x32xbf16>, vector<32x96xbf16>, vector<2x96xf32> -> vector<2x96xf32>
    %220 = vector.extract_strided_slice %216 {offsets = [0, 0], sizes = [2, 32], strides = [1, 1]} : vector<2x96xf32> to vector<2x32xf32>
    %221 = vector.extract_strided_slice %219 {offsets = [0, 0], sizes = [2, 32], strides = [1, 1]} : vector<2x96xf32> to vector<2x32xf32>
    %222 = arith.addf %220, %221 : vector<2x32xf32>
    %cst_69 = arith.constant 0.000000e+00 : f32
    %223 = vector.broadcast %cst_69 : f32 to vector<2x32xf32>
    %224 = arith.subf %223, %222 : vector<2x32xf32>
    %225 = math.exp %224 : vector<2x32xf32>
    %cst_70 = arith.constant 1.000000e+00 : f32
    %226 = vector.broadcast %cst_70 : f32 to vector<2x32xf32>
    %227 = arith.addf %226, %225 : vector<2x32xf32>
    %228 = tpu.reciprocal %227 {approx = true} : vector<2x32xf32> -> vector<2x32xf32>
    %229 = vector.extract_strided_slice %216 {offsets = [0, 32], sizes = [2, 32], strides = [1, 1]} : vector<2x96xf32> to vector<2x32xf32>
    %230 = vector.extract_strided_slice %219 {offsets = [0, 32], sizes = [2, 32], strides = [1, 1]} : vector<2x96xf32> to vector<2x32xf32>
    %231 = arith.addf %229, %230 : vector<2x32xf32>
    %cst_71 = arith.constant 0.000000e+00 : f32
    %232 = vector.broadcast %cst_71 : f32 to vector<2x32xf32>
    %233 = arith.subf %232, %231 : vector<2x32xf32>
    %234 = math.exp %233 : vector<2x32xf32>
    %cst_72 = arith.constant 1.000000e+00 : f32
    %235 = vector.broadcast %cst_72 : f32 to vector<2x32xf32>
    %236 = arith.addf %235, %234 : vector<2x32xf32>
    %237 = tpu.reciprocal %236 {approx = true} : vector<2x32xf32> -> vector<2x32xf32>
    %238 = vector.extract_strided_slice %216 {offsets = [0, 64], sizes = [2, 32], strides = [1, 1]} : vector<2x96xf32> to vector<2x32xf32>
    %239 = vector.extract_strided_slice %219 {offsets = [0, 64], sizes = [2, 32], strides = [1, 1]} : vector<2x96xf32> to vector<2x32xf32>
    %240 = vector.broadcast %85 : vector<1x32xf32> to vector<2x32xf32>
    %241 = arith.addf %239, %240 : vector<2x32xf32>
    %242 = arith.mulf %228, %241 : vector<2x32xf32>
    %243 = arith.addf %238, %242 : vector<2x32xf32>
    %244 = math.tanh %243 : vector<2x32xf32>
    %cst_73 = arith.constant 1.000000e+00 : f32
    %245 = vector.broadcast %cst_73 : f32 to vector<2x32xf32>
    %246 = arith.subf %245, %237 : vector<2x32xf32>
    %247 = arith.mulf %246, %244 : vector<2x32xf32>
    %248 = arith.mulf %237, %209 : vector<2x32xf32>
    %249 = arith.addf %247, %248 : vector<2x32xf32>
    %250 = arith.index_cast %c3_i32 : i32 to index
    %c0_74 = arith.constant 0 : index
    %c0_75 = arith.constant 0 : index
    %251 = vector.load %arg10[%250, %c0_74, %c0_75] : memref<8x2x32xf32, #tpu.memory_space<vmem>>, vector<1x2x32xf32>
    %252 = vector.shape_cast %251 : vector<1x2x32xf32> to vector<2x32xf32>
    %253 = vector.shape_cast %249 : vector<2x32xf32> to vector<1x2x32xf32>
    tpu.vector_store %arg10[%250, %c0_74, %c0_75], %253 {strides = array<i32>} : memref<8x2x32xf32, #tpu.memory_space<vmem>>, vector<1x2x32xf32>,
    %c4_i32 = arith.constant 4 : i32
    %254 = arith.index_cast %c4_i32 : i32 to index
    %c0_76 = arith.constant 0 : index
    %c0_77 = arith.constant 0 : index
    %255 = vector.load %arg9[%254, %c0_76, %c0_77] : memref<8x2x96xf32, #tpu.memory_space<vmem>>, vector<1x2x96xf32>
    %256 = vector.shape_cast %255 : vector<1x2x96xf32> to vector<2x96xf32>
    %257 = arith.truncf %249 : vector<2x32xf32> to vector<2x32xbf16>
    %258 = arith.truncf %83 : vector<32x96xf32> to vector<32x96xbf16>
    %cst_78 = arith.constant dense<0.000000e+00> : vector<2x96xf32>
    %259 = tpu.matmul %257, %258, %cst_78 {dimension_numbers = #tpu.dot_dimension_numbers<[1], [0], [0], [1], [0, 0, 1, 1], [], []>} : vector<2x32xbf16>, vector<32x96xbf16>, vector<2x96xf32> -> vector<2x96xf32>
    %260 = vector.extract_strided_slice %256 {offsets = [0, 0], sizes = [2, 32], strides = [1, 1]} : vector<2x96xf32> to vector<2x32xf32>
    %261 = vector.extract_strided_slice %259 {offsets = [0, 0], sizes = [2, 32], strides = [1, 1]} : vector<2x96xf32> to vector<2x32xf32>
    %262 = arith.addf %260, %261 : vector<2x32xf32>
    %cst_79 = arith.constant 0.000000e+00 : f32
    %263 = vector.broadcast %cst_79 : f32 to vector<2x32xf32>
    %264 = arith.subf %263, %262 : vector<2x32xf32>
    %265 = math.exp %264 : vector<2x32xf32>
    %cst_80 = arith.constant 1.000000e+00 : f32
    %266 = vector.broadcast %cst_80 : f32 to vector<2x32xf32>
    %267 = arith.addf %266, %265 : vector<2x32xf32>
    %268 = tpu.reciprocal %267 {approx = true} : vector<2x32xf32> -> vector<2x32xf32>
    %269 = vector.extract_strided_slice %256 {offsets = [0, 32], sizes = [2, 32], strides = [1, 1]} : vector<2x96xf32> to vector<2x32xf32>
    %270 = vector.extract_strided_slice %259 {offsets = [0, 32], sizes = [2, 32], strides = [1, 1]} : vector<2x96xf32> to vector<2x32xf32>
    %271 = arith.addf %269, %270 : vector<2x32xf32>
    %cst_81 = arith.constant 0.000000e+00 : f32
    %272 = vector.broadcast %cst_81 : f32 to vector<2x32xf32>
    %273 = arith.subf %272, %271 : vector<2x32xf32>
    %274 = math.exp %273 : vector<2x32xf32>
    %cst_82 = arith.constant 1.000000e+00 : f32
    %275 = vector.broadcast %cst_82 : f32 to vector<2x32xf32>
    %276 = arith.addf %275, %274 : vector<2x32xf32>
    %277 = tpu.reciprocal %276 {approx = true} : vector<2x32xf32> -> vector<2x32xf32>
    %278 = vector.extract_strided_slice %256 {offsets = [0, 64], sizes = [2, 32], strides = [1, 1]} : vector<2x96xf32> to vector<2x32xf32>
    %279 = vector.extract_strided_slice %259 {offsets = [0, 64], sizes = [2, 32], strides = [1, 1]} : vector<2x96xf32> to vector<2x32xf32>
    %280 = vector.broadcast %85 : vector<1x32xf32> to vector<2x32xf32>
    %281 = arith.addf %279, %280 : vector<2x32xf32>
    %282 = arith.mulf %268, %281 : vector<2x32xf32>
    %283 = arith.addf %278, %282 : vector<2x32xf32>
    %284 = math.tanh %283 : vector<2x32xf32>
    %cst_83 = arith.constant 1.000000e+00 : f32
    %285 = vector.broadcast %cst_83 : f32 to vector<2x32xf32>
    %286 = arith.subf %285, %277 : vector<2x32xf32>
    %287 = arith.mulf %286, %284 : vector<2x32xf32>
    %288 = arith.mulf %277, %249 : vector<2x32xf32>
    %289 = arith.addf %287, %288 : vector<2x32xf32>
    %290 = arith.index_cast %c4_i32 : i32 to index
    %c0_84 = arith.constant 0 : index
    %c0_85 = arith.constant 0 : index
    %291 = vector.load %arg10[%290, %c0_84, %c0_85] : memref<8x2x32xf32, #tpu.memory_space<vmem>>, vector<1x2x32xf32>
    %292 = vector.shape_cast %291 : vector<1x2x32xf32> to vector<2x32xf32>
    %293 = vector.shape_cast %289 : vector<2x32xf32> to vector<1x2x32xf32>
    tpu.vector_store %arg10[%290, %c0_84, %c0_85], %293 {strides = array<i32>} : memref<8x2x32xf32, #tpu.memory_space<vmem>>, vector<1x2x32xf32>,
    %c5_i32 = arith.constant 5 : i32
    %294 = arith.index_cast %c5_i32 : i32 to index
    %c0_86 = arith.constant 0 : index
    %c0_87 = arith.constant 0 : index
    %295 = vector.load %arg9[%294, %c0_86, %c0_87] : memref<8x2x96xf32, #tpu.memory_space<vmem>>, vector<1x2x96xf32>
    %296 = vector.shape_cast %295 : vector<1x2x96xf32> to vector<2x96xf32>
    %297 = arith.truncf %289 : vector<2x32xf32> to vector<2x32xbf16>
    %298 = arith.truncf %83 : vector<32x96xf32> to vector<32x96xbf16>
    %cst_88 = arith.constant dense<0.000000e+00> : vector<2x96xf32>
    %299 = tpu.matmul %297, %298, %cst_88 {dimension_numbers = #tpu.dot_dimension_numbers<[1], [0], [0], [1], [0, 0, 1, 1], [], []>} : vector<2x32xbf16>, vector<32x96xbf16>, vector<2x96xf32> -> vector<2x96xf32>
    %300 = vector.extract_strided_slice %296 {offsets = [0, 0], sizes = [2, 32], strides = [1, 1]} : vector<2x96xf32> to vector<2x32xf32>
    %301 = vector.extract_strided_slice %299 {offsets = [0, 0], sizes = [2, 32], strides = [1, 1]} : vector<2x96xf32> to vector<2x32xf32>
    %302 = arith.addf %300, %301 : vector<2x32xf32>
    %cst_89 = arith.constant 0.000000e+00 : f32
    %303 = vector.broadcast %cst_89 : f32 to vector<2x32xf32>
    %304 = arith.subf %303, %302 : vector<2x32xf32>
    %305 = math.exp %304 : vector<2x32xf32>
    %cst_90 = arith.constant 1.000000e+00 : f32
    %306 = vector.broadcast %cst_90 : f32 to vector<2x32xf32>
    %307 = arith.addf %306, %305 : vector<2x32xf32>
    %308 = tpu.reciprocal %307 {approx = true} : vector<2x32xf32> -> vector<2x32xf32>
    %309 = vector.extract_strided_slice %296 {offsets = [0, 32], sizes = [2, 32], strides = [1, 1]} : vector<2x96xf32> to vector<2x32xf32>
    %310 = vector.extract_strided_slice %299 {offsets = [0, 32], sizes = [2, 32], strides = [1, 1]} : vector<2x96xf32> to vector<2x32xf32>
    %311 = arith.addf %309, %310 : vector<2x32xf32>
    %cst_91 = arith.constant 0.000000e+00 : f32
    %312 = vector.broadcast %cst_91 : f32 to vector<2x32xf32>
    %313 = arith.subf %312, %311 : vector<2x32xf32>
    %314 = math.exp %313 : vector<2x32xf32>
    %cst_92 = arith.constant 1.000000e+00 : f32
    %315 = vector.broadcast %cst_92 : f32 to vector<2x32xf32>
    %316 = arith.addf %315, %314 : vector<2x32xf32>
    %317 = tpu.reciprocal %316 {approx = true} : vector<2x32xf32> -> vector<2x32xf32>
    %318 = vector.extract_strided_slice %296 {offsets = [0, 64], sizes = [2, 32], strides = [1, 1]} : vector<2x96xf32> to vector<2x32xf32>
    %319 = vector.extract_strided_slice %299 {offsets = [0, 64], sizes = [2, 32], strides = [1, 1]} : vector<2x96xf32> to vector<2x32xf32>
    %320 = vector.broadcast %85 : vector<1x32xf32> to vector<2x32xf32>
    %321 = arith.addf %319, %320 : vector<2x32xf32>
    %322 = arith.mulf %308, %321 : vector<2x32xf32>
    %323 = arith.addf %318, %322 : vector<2x32xf32>
    %324 = math.tanh %323 : vector<2x32xf32>
    %cst_93 = arith.constant 1.000000e+00 : f32
    %325 = vector.broadcast %cst_93 : f32 to vector<2x32xf32>
    %326 = arith.subf %325, %317 : vector<2x32xf32>
    %327 = arith.mulf %326, %324 : vector<2x32xf32>
    %328 = arith.mulf %317, %289 : vector<2x32xf32>
    %329 = arith.addf %327, %328 : vector<2x32xf32>
    %330 = arith.index_cast %c5_i32 : i32 to index
    %c0_94 = arith.constant 0 : index
    %c0_95 = arith.constant 0 : index
    %331 = vector.load %arg10[%330, %c0_94, %c0_95] : memref<8x2x32xf32, #tpu.memory_space<vmem>>, vector<1x2x32xf32>
    %332 = vector.shape_cast %331 : vector<1x2x32xf32> to vector<2x32xf32>
    %333 = vector.shape_cast %329 : vector<2x32xf32> to vector<1x2x32xf32>
    tpu.vector_store %arg10[%330, %c0_94, %c0_95], %333 {strides = array<i32>} : memref<8x2x32xf32, #tpu.memory_space<vmem>>, vector<1x2x32xf32>,
    %c6_i32 = arith.constant 6 : i32
    %334 = arith.index_cast %c6_i32 : i32 to index
    %c0_96 = arith.constant 0 : index
    %c0_97 = arith.constant 0 : index
    %335 = vector.load %arg9[%334, %c0_96, %c0_97] : memref<8x2x96xf32, #tpu.memory_space<vmem>>, vector<1x2x96xf32>
    %336 = vector.shape_cast %335 : vector<1x2x96xf32> to vector<2x96xf32>
    %337 = arith.truncf %329 : vector<2x32xf32> to vector<2x32xbf16>
    %338 = arith.truncf %83 : vector<32x96xf32> to vector<32x96xbf16>
    %cst_98 = arith.constant dense<0.000000e+00> : vector<2x96xf32>
    %339 = tpu.matmul %337, %338, %cst_98 {dimension_numbers = #tpu.dot_dimension_numbers<[1], [0], [0], [1], [0, 0, 1, 1], [], []>} : vector<2x32xbf16>, vector<32x96xbf16>, vector<2x96xf32> -> vector<2x96xf32>
    %340 = vector.extract_strided_slice %336 {offsets = [0, 0], sizes = [2, 32], strides = [1, 1]} : vector<2x96xf32> to vector<2x32xf32>
    %341 = vector.extract_strided_slice %339 {offsets = [0, 0], sizes = [2, 32], strides = [1, 1]} : vector<2x96xf32> to vector<2x32xf32>
    %342 = arith.addf %340, %341 : vector<2x32xf32>
    %cst_99 = arith.constant 0.000000e+00 : f32
    %343 = vector.broadcast %cst_99 : f32 to vector<2x32xf32>
    %344 = arith.subf %343, %342 : vector<2x32xf32>
    %345 = math.exp %344 : vector<2x32xf32>
    %cst_100 = arith.constant 1.000000e+00 : f32
    %346 = vector.broadcast %cst_100 : f32 to vector<2x32xf32>
    %347 = arith.addf %346, %345 : vector<2x32xf32>
    %348 = tpu.reciprocal %347 {approx = true} : vector<2x32xf32> -> vector<2x32xf32>
    %349 = vector.extract_strided_slice %336 {offsets = [0, 32], sizes = [2, 32], strides = [1, 1]} : vector<2x96xf32> to vector<2x32xf32>
    %350 = vector.extract_strided_slice %339 {offsets = [0, 32], sizes = [2, 32], strides = [1, 1]} : vector<2x96xf32> to vector<2x32xf32>
    %351 = arith.addf %349, %350 : vector<2x32xf32>
    %cst_101 = arith.constant 0.000000e+00 : f32
    %352 = vector.broadcast %cst_101 : f32 to vector<2x32xf32>
    %353 = arith.subf %352, %351 : vector<2x32xf32>
    %354 = math.exp %353 : vector<2x32xf32>
    %cst_102 = arith.constant 1.000000e+00 : f32
    %355 = vector.broadcast %cst_102 : f32 to vector<2x32xf32>
    %356 = arith.addf %355, %354 : vector<2x32xf32>
    %357 = tpu.reciprocal %356 {approx = true} : vector<2x32xf32> -> vector<2x32xf32>
    %358 = vector.extract_strided_slice %336 {offsets = [0, 64], sizes = [2, 32], strides = [1, 1]} : vector<2x96xf32> to vector<2x32xf32>
    %359 = vector.extract_strided_slice %339 {offsets = [0, 64], sizes = [2, 32], strides = [1, 1]} : vector<2x96xf32> to vector<2x32xf32>
    %360 = vector.broadcast %85 : vector<1x32xf32> to vector<2x32xf32>
    %361 = arith.addf %359, %360 : vector<2x32xf32>
    %362 = arith.mulf %348, %361 : vector<2x32xf32>
    %363 = arith.addf %358, %362 : vector<2x32xf32>
    %364 = math.tanh %363 : vector<2x32xf32>
    %cst_103 = arith.constant 1.000000e+00 : f32
    %365 = vector.broadcast %cst_103 : f32 to vector<2x32xf32>
    %366 = arith.subf %365, %357 : vector<2x32xf32>
    %367 = arith.mulf %366, %364 : vector<2x32xf32>
    %368 = arith.mulf %357, %329 : vector<2x32xf32>
    %369 = arith.addf %367, %368 : vector<2x32xf32>
    %370 = arith.index_cast %c6_i32 : i32 to index
    %c0_104 = arith.constant 0 : index
    %c0_105 = arith.constant 0 : index
    %371 = vector.load %arg10[%370, %c0_104, %c0_105] : memref<8x2x32xf32, #tpu.memory_space<vmem>>, vector<1x2x32xf32>
    %372 = vector.shape_cast %371 : vector<1x2x32xf32> to vector<2x32xf32>
    %373 = vector.shape_cast %369 : vector<2x32xf32> to vector<1x2x32xf32>
    tpu.vector_store %arg10[%370, %c0_104, %c0_105], %373 {strides = array<i32>} : memref<8x2x32xf32, #tpu.memory_space<vmem>>, vector<1x2x32xf32>,
    %c7_i32 = arith.constant 7 : i32
    %374 = arith.index_cast %c7_i32 : i32 to index
    %c0_106 = arith.constant 0 : index
    %c0_107 = arith.constant 0 : index
    %375 = vector.load %arg9[%374, %c0_106, %c0_107] : memref<8x2x96xf32, #tpu.memory_space<vmem>>, vector<1x2x96xf32>
    %376 = vector.shape_cast %375 : vector<1x2x96xf32> to vector<2x96xf32>
    %377 = arith.truncf %369 : vector<2x32xf32> to vector<2x32xbf16>
    %378 = arith.truncf %83 : vector<32x96xf32> to vector<32x96xbf16>
    %cst_108 = arith.constant dense<0.000000e+00> : vector<2x96xf32>
    %379 = tpu.matmul %377, %378, %cst_108 {dimension_numbers = #tpu.dot_dimension_numbers<[1], [0], [0], [1], [0, 0, 1, 1], [], []>} : vector<2x32xbf16>, vector<32x96xbf16>, vector<2x96xf32> -> vector<2x96xf32>
    %380 = vector.extract_strided_slice %376 {offsets = [0, 0], sizes = [2, 32], strides = [1, 1]} : vector<2x96xf32> to vector<2x32xf32>
    %381 = vector.extract_strided_slice %379 {offsets = [0, 0], sizes = [2, 32], strides = [1, 1]} : vector<2x96xf32> to vector<2x32xf32>
    %382 = arith.addf %380, %381 : vector<2x32xf32>
    %cst_109 = arith.constant 0.000000e+00 : f32
    %383 = vector.broadcast %cst_109 : f32 to vector<2x32xf32>
    %384 = arith.subf %383, %382 : vector<2x32xf32>
    %385 = math.exp %384 : vector<2x32xf32>
    %cst_110 = arith.constant 1.000000e+00 : f32
    %386 = vector.broadcast %cst_110 : f32 to vector<2x32xf32>
    %387 = arith.addf %386, %385 : vector<2x32xf32>
    %388 = tpu.reciprocal %387 {approx = true} : vector<2x32xf32> -> vector<2x32xf32>
    %389 = vector.extract_strided_slice %376 {offsets = [0, 32], sizes = [2, 32], strides = [1, 1]} : vector<2x96xf32> to vector<2x32xf32>
    %390 = vector.extract_strided_slice %379 {offsets = [0, 32], sizes = [2, 32], strides = [1, 1]} : vector<2x96xf32> to vector<2x32xf32>
    %391 = arith.addf %389, %390 : vector<2x32xf32>
    %cst_111 = arith.constant 0.000000e+00 : f32
    %392 = vector.broadcast %cst_111 : f32 to vector<2x32xf32>
    %393 = arith.subf %392, %391 : vector<2x32xf32>
    %394 = math.exp %393 : vector<2x32xf32>
    %cst_112 = arith.constant 1.000000e+00 : f32
    %395 = vector.broadcast %cst_112 : f32 to vector<2x32xf32>
    %396 = arith.addf %395, %394 : vector<2x32xf32>
    %397 = tpu.reciprocal %396 {approx = true} : vector<2x32xf32> -> vector<2x32xf32>
    %398 = vector.extract_strided_slice %376 {offsets = [0, 64], sizes = [2, 32], strides = [1, 1]} : vector<2x96xf32> to vector<2x32xf32>
    %399 = vector.extract_strided_slice %379 {offsets = [0, 64], sizes = [2, 32], strides = [1, 1]} : vector<2x96xf32> to vector<2x32xf32>
    %400 = vector.broadcast %85 : vector<1x32xf32> to vector<2x32xf32>
    %401 = arith.addf %399, %400 : vector<2x32xf32>
    %402 = arith.mulf %388, %401 : vector<2x32xf32>
    %403 = arith.addf %398, %402 : vector<2x32xf32>
    %404 = math.tanh %403 : vector<2x32xf32>
    %cst_113 = arith.constant 1.000000e+00 : f32
    %405 = vector.broadcast %cst_113 : f32 to vector<2x32xf32>
    %406 = arith.subf %405, %397 : vector<2x32xf32>
    %407 = arith.mulf %406, %404 : vector<2x32xf32>
    %408 = arith.mulf %397, %369 : vector<2x32xf32>
    %409 = arith.addf %407, %408 : vector<2x32xf32>
    %410 = arith.index_cast %c7_i32 : i32 to index
    %c0_114 = arith.constant 0 : index
    %c0_115 = arith.constant 0 : index
    %411 = vector.load %arg10[%410, %c0_114, %c0_115] : memref<8x2x32xf32, #tpu.memory_space<vmem>>, vector<1x2x32xf32>
    %412 = vector.shape_cast %411 : vector<1x2x32xf32> to vector<2x32xf32>
    %413 = vector.shape_cast %409 : vector<2x32xf32> to vector<1x2x32xf32>
    tpu.vector_store %arg10[%410, %c0_114, %c0_115], %413 {strides = array<i32>} : memref<8x2x32xf32, #tpu.memory_space<vmem>>, vector<1x2x32xf32>,
    %c8_i32 = arith.constant 8 : i32
    %c0_116 = arith.constant 0 : index
    %c0_117 = arith.constant 0 : index
    %c0_118 = arith.constant 0 : index
    %414 = vector.load %arg10[%c0_116, %c0_117, %c0_118] : memref<8x2x32xf32, #tpu.memory_space<vmem>>, vector<8x2x32xf32>
    %415 = vector.shape_cast %414 : vector<8x2x32xf32> to vector<16x32xf32>
    %416 = vector.extract_strided_slice %5 {offsets = [64, 0], sizes = [32, 96], strides = [1, 1]} : vector<128x96xf32> to vector<32x96xf32>
    %417 = vector.extract_strided_slice %5 {offsets = [96, 0], sizes = [32, 96], strides = [1, 1]} : vector<128x96xf32> to vector<32x96xf32>
    %418 = vector.extract_strided_slice %6 {offsets = [1, 0], sizes = [1, 96], strides = [1, 1]} : vector<2x128xf32> to vector<1x96xf32>
    %419 = vector.extract_strided_slice %6 {offsets = [1, 96], sizes = [1, 32], strides = [1, 1]} : vector<2x128xf32> to vector<1x32xf32>
    %420 = arith.truncf %415 : vector<16x32xf32> to vector<16x32xbf16>
    %421 = arith.truncf %416 : vector<32x96xf32> to vector<32x96xbf16>
    %cst_119 = arith.constant dense<0.000000e+00> : vector<16x96xf32>
    %422 = tpu.matmul %420, %421, %cst_119 {dimension_numbers = #tpu.dot_dimension_numbers<[1], [0], [0], [1], [0, 0, 1, 1], [], []>} : vector<16x32xbf16>, vector<32x96xbf16>, vector<16x96xf32> -> vector<16x96xf32>
    %423 = vector.broadcast %418 : vector<1x96xf32> to vector<16x96xf32>
    %424 = arith.addf %422, %423 : vector<16x96xf32>
    %425 = vector.shape_cast %424 : vector<16x96xf32> to vector<8x2x96xf32>
    %c0_120 = arith.constant 0 : index
    %c0_121 = arith.constant 0 : index
    %c0_122 = arith.constant 0 : index
    %426 = vector.load %arg9[%c0_120, %c0_121, %c0_122] : memref<8x2x96xf32, #tpu.memory_space<vmem>>, vector<8x2x96xf32>
    tpu.vector_store %arg9[%c0_120, %c0_121, %c0_122], %425 {strides = array<i32>} : memref<8x2x96xf32, #tpu.memory_space<vmem>>, vector<8x2x96xf32>,
    %cst_123 = arith.constant 0.000000e+00 : f32
    %427 = vector.broadcast %cst_123 : f32 to vector<2x32xf32>
    %c0_i32_124 = arith.constant 0 : i32
    %428 = arith.index_cast %c0_i32_124 : i32 to index
    %c0_125 = arith.constant 0 : index
    %c0_126 = arith.constant 0 : index
    %429 = vector.load %arg9[%428, %c0_125, %c0_126] : memref<8x2x96xf32, #tpu.memory_space<vmem>>, vector<1x2x96xf32>
    %430 = vector.shape_cast %429 : vector<1x2x96xf32> to vector<2x96xf32>
    %431 = arith.truncf %427 : vector<2x32xf32> to vector<2x32xbf16>
    %432 = arith.truncf %417 : vector<32x96xf32> to vector<32x96xbf16>
    %cst_127 = arith.constant dense<0.000000e+00> : vector<2x96xf32>
    %433 = tpu.matmul %431, %432, %cst_127 {dimension_numbers = #tpu.dot_dimension_numbers<[1], [0], [0], [1], [0, 0, 1, 1], [], []>} : vector<2x32xbf16>, vector<32x96xbf16>, vector<2x96xf32> -> vector<2x96xf32>
    %434 = vector.extract_strided_slice %430 {offsets = [0, 0], sizes = [2, 32], strides = [1, 1]} : vector<2x96xf32> to vector<2x32xf32>
    %435 = vector.extract_strided_slice %433 {offsets = [0, 0], sizes = [2, 32], strides = [1, 1]} : vector<2x96xf32> to vector<2x32xf32>
    %436 = arith.addf %434, %435 : vector<2x32xf32>
    %cst_128 = arith.constant 0.000000e+00 : f32
    %437 = vector.broadcast %cst_128 : f32 to vector<2x32xf32>
    %438 = arith.subf %437, %436 : vector<2x32xf32>
    %439 = math.exp %438 : vector<2x32xf32>
    %cst_129 = arith.constant 1.000000e+00 : f32
    %440 = vector.broadcast %cst_129 : f32 to vector<2x32xf32>
    %441 = arith.addf %440, %439 : vector<2x32xf32>
    %442 = tpu.reciprocal %441 {approx = true} : vector<2x32xf32> -> vector<2x32xf32>
    %443 = vector.extract_strided_slice %430 {offsets = [0, 32], sizes = [2, 32], strides = [1, 1]} : vector<2x96xf32> to vector<2x32xf32>
    %444 = vector.extract_strided_slice %433 {offsets = [0, 32], sizes = [2, 32], strides = [1, 1]} : vector<2x96xf32> to vector<2x32xf32>
    %445 = arith.addf %443, %444 : vector<2x32xf32>
    %cst_130 = arith.constant 0.000000e+00 : f32
    %446 = vector.broadcast %cst_130 : f32 to vector<2x32xf32>
    %447 = arith.subf %446, %445 : vector<2x32xf32>
    %448 = math.exp %447 : vector<2x32xf32>
    %cst_131 = arith.constant 1.000000e+00 : f32
    %449 = vector.broadcast %cst_131 : f32 to vector<2x32xf32>
    %450 = arith.addf %449, %448 : vector<2x32xf32>
    %451 = tpu.reciprocal %450 {approx = true} : vector<2x32xf32> -> vector<2x32xf32>
    %452 = vector.extract_strided_slice %430 {offsets = [0, 64], sizes = [2, 32], strides = [1, 1]} : vector<2x96xf32> to vector<2x32xf32>
    %453 = vector.extract_strided_slice %433 {offsets = [0, 64], sizes = [2, 32], strides = [1, 1]} : vector<2x96xf32> to vector<2x32xf32>
    %454 = vector.broadcast %419 : vector<1x32xf32> to vector<2x32xf32>
    %455 = arith.addf %453, %454 : vector<2x32xf32>
    %456 = arith.mulf %442, %455 : vector<2x32xf32>
    %457 = arith.addf %452, %456 : vector<2x32xf32>
    %458 = math.tanh %457 : vector<2x32xf32>
    %cst_132 = arith.constant 1.000000e+00 : f32
    %459 = vector.broadcast %cst_132 : f32 to vector<2x32xf32>
    %460 = arith.subf %459, %451 : vector<2x32xf32>
    %461 = arith.mulf %460, %458 : vector<2x32xf32>
    %462 = arith.mulf %451, %427 : vector<2x32xf32>
    %463 = arith.addf %461, %462 : vector<2x32xf32>
    %c1_i32_133 = arith.constant 1 : i32
    %464 = arith.index_cast %c1_i32_133 : i32 to index
    %c0_134 = arith.constant 0 : index
    %c0_135 = arith.constant 0 : index
    %465 = vector.load %arg9[%464, %c0_134, %c0_135] : memref<8x2x96xf32, #tpu.memory_space<vmem>>, vector<1x2x96xf32>
    %466 = vector.shape_cast %465 : vector<1x2x96xf32> to vector<2x96xf32>
    %467 = arith.truncf %463 : vector<2x32xf32> to vector<2x32xbf16>
    %468 = arith.truncf %417 : vector<32x96xf32> to vector<32x96xbf16>
    %cst_136 = arith.constant dense<0.000000e+00> : vector<2x96xf32>
    %469 = tpu.matmul %467, %468, %cst_136 {dimension_numbers = #tpu.dot_dimension_numbers<[1], [0], [0], [1], [0, 0, 1, 1], [], []>} : vector<2x32xbf16>, vector<32x96xbf16>, vector<2x96xf32> -> vector<2x96xf32>
    %470 = vector.extract_strided_slice %466 {offsets = [0, 0], sizes = [2, 32], strides = [1, 1]} : vector<2x96xf32> to vector<2x32xf32>
    %471 = vector.extract_strided_slice %469 {offsets = [0, 0], sizes = [2, 32], strides = [1, 1]} : vector<2x96xf32> to vector<2x32xf32>
    %472 = arith.addf %470, %471 : vector<2x32xf32>
    %cst_137 = arith.constant 0.000000e+00 : f32
    %473 = vector.broadcast %cst_137 : f32 to vector<2x32xf32>
    %474 = arith.subf %473, %472 : vector<2x32xf32>
    %475 = math.exp %474 : vector<2x32xf32>
    %cst_138 = arith.constant 1.000000e+00 : f32
    %476 = vector.broadcast %cst_138 : f32 to vector<2x32xf32>
    %477 = arith.addf %476, %475 : vector<2x32xf32>
    %478 = tpu.reciprocal %477 {approx = true} : vector<2x32xf32> -> vector<2x32xf32>
    %479 = vector.extract_strided_slice %466 {offsets = [0, 32], sizes = [2, 32], strides = [1, 1]} : vector<2x96xf32> to vector<2x32xf32>
    %480 = vector.extract_strided_slice %469 {offsets = [0, 32], sizes = [2, 32], strides = [1, 1]} : vector<2x96xf32> to vector<2x32xf32>
    %481 = arith.addf %479, %480 : vector<2x32xf32>
    %cst_139 = arith.constant 0.000000e+00 : f32
    %482 = vector.broadcast %cst_139 : f32 to vector<2x32xf32>
    %483 = arith.subf %482, %481 : vector<2x32xf32>
    %484 = math.exp %483 : vector<2x32xf32>
    %cst_140 = arith.constant 1.000000e+00 : f32
    %485 = vector.broadcast %cst_140 : f32 to vector<2x32xf32>
    %486 = arith.addf %485, %484 : vector<2x32xf32>
    %487 = tpu.reciprocal %486 {approx = true} : vector<2x32xf32> -> vector<2x32xf32>
    %488 = vector.extract_strided_slice %466 {offsets = [0, 64], sizes = [2, 32], strides = [1, 1]} : vector<2x96xf32> to vector<2x32xf32>
    %489 = vector.extract_strided_slice %469 {offsets = [0, 64], sizes = [2, 32], strides = [1, 1]} : vector<2x96xf32> to vector<2x32xf32>
    %490 = vector.broadcast %419 : vector<1x32xf32> to vector<2x32xf32>
    %491 = arith.addf %489, %490 : vector<2x32xf32>
    %492 = arith.mulf %478, %491 : vector<2x32xf32>
    %493 = arith.addf %488, %492 : vector<2x32xf32>
    %494 = math.tanh %493 : vector<2x32xf32>
    %cst_141 = arith.constant 1.000000e+00 : f32
    %495 = vector.broadcast %cst_141 : f32 to vector<2x32xf32>
    %496 = arith.subf %495, %487 : vector<2x32xf32>
    %497 = arith.mulf %496, %494 : vector<2x32xf32>
    %498 = arith.mulf %487, %463 : vector<2x32xf32>
    %499 = arith.addf %497, %498 : vector<2x32xf32>
    %c2_i32_142 = arith.constant 2 : i32
    %500 = arith.index_cast %c2_i32_142 : i32 to index
    %c0_143 = arith.constant 0 : index
    %c0_144 = arith.constant 0 : index
    %501 = vector.load %arg9[%500, %c0_143, %c0_144] : memref<8x2x96xf32, #tpu.memory_space<vmem>>, vector<1x2x96xf32>
    %502 = vector.shape_cast %501 : vector<1x2x96xf32> to vector<2x96xf32>
    %503 = arith.truncf %499 : vector<2x32xf32> to vector<2x32xbf16>
    %504 = arith.truncf %417 : vector<32x96xf32> to vector<32x96xbf16>
    %cst_145 = arith.constant dense<0.000000e+00> : vector<2x96xf32>
    %505 = tpu.matmul %503, %504, %cst_145 {dimension_numbers = #tpu.dot_dimension_numbers<[1], [0], [0], [1], [0, 0, 1, 1], [], []>} : vector<2x32xbf16>, vector<32x96xbf16>, vector<2x96xf32> -> vector<2x96xf32>
    %506 = vector.extract_strided_slice %502 {offsets = [0, 0], sizes = [2, 32], strides = [1, 1]} : vector<2x96xf32> to vector<2x32xf32>
    %507 = vector.extract_strided_slice %505 {offsets = [0, 0], sizes = [2, 32], strides = [1, 1]} : vector<2x96xf32> to vector<2x32xf32>
    %508 = arith.addf %506, %507 : vector<2x32xf32>
    %cst_146 = arith.constant 0.000000e+00 : f32
    %509 = vector.broadcast %cst_146 : f32 to vector<2x32xf32>
    %510 = arith.subf %509, %508 : vector<2x32xf32>
    %511 = math.exp %510 : vector<2x32xf32>
    %cst_147 = arith.constant 1.000000e+00 : f32
    %512 = vector.broadcast %cst_147 : f32 to vector<2x32xf32>
    %513 = arith.addf %512, %511 : vector<2x32xf32>
    %514 = tpu.reciprocal %513 {approx = true} : vector<2x32xf32> -> vector<2x32xf32>
    %515 = vector.extract_strided_slice %502 {offsets = [0, 32], sizes = [2, 32], strides = [1, 1]} : vector<2x96xf32> to vector<2x32xf32>
    %516 = vector.extract_strided_slice %505 {offsets = [0, 32], sizes = [2, 32], strides = [1, 1]} : vector<2x96xf32> to vector<2x32xf32>
    %517 = arith.addf %515, %516 : vector<2x32xf32>
    %cst_148 = arith.constant 0.000000e+00 : f32
    %518 = vector.broadcast %cst_148 : f32 to vector<2x32xf32>
    %519 = arith.subf %518, %517 : vector<2x32xf32>
    %520 = math.exp %519 : vector<2x32xf32>
    %cst_149 = arith.constant 1.000000e+00 : f32
    %521 = vector.broadcast %cst_149 : f32 to vector<2x32xf32>
    %522 = arith.addf %521, %520 : vector<2x32xf32>
    %523 = tpu.reciprocal %522 {approx = true} : vector<2x32xf32> -> vector<2x32xf32>
    %524 = vector.extract_strided_slice %502 {offsets = [0, 64], sizes = [2, 32], strides = [1, 1]} : vector<2x96xf32> to vector<2x32xf32>
    %525 = vector.extract_strided_slice %505 {offsets = [0, 64], sizes = [2, 32], strides = [1, 1]} : vector<2x96xf32> to vector<2x32xf32>
    %526 = vector.broadcast %419 : vector<1x32xf32> to vector<2x32xf32>
    %527 = arith.addf %525, %526 : vector<2x32xf32>
    %528 = arith.mulf %514, %527 : vector<2x32xf32>
    %529 = arith.addf %524, %528 : vector<2x32xf32>
    %530 = math.tanh %529 : vector<2x32xf32>
    %cst_150 = arith.constant 1.000000e+00 : f32
    %531 = vector.broadcast %cst_150 : f32 to vector<2x32xf32>
    %532 = arith.subf %531, %523 : vector<2x32xf32>
    %533 = arith.mulf %532, %530 : vector<2x32xf32>
    %534 = arith.mulf %523, %499 : vector<2x32xf32>
    %535 = arith.addf %533, %534 : vector<2x32xf32>
    %c3_i32_151 = arith.constant 3 : i32
    %536 = arith.index_cast %c3_i32_151 : i32 to index
    %c0_152 = arith.constant 0 : index
    %c0_153 = arith.constant 0 : index
    %537 = vector.load %arg9[%536, %c0_152, %c0_153] : memref<8x2x96xf32, #tpu.memory_space<vmem>>, vector<1x2x96xf32>
    %538 = vector.shape_cast %537 : vector<1x2x96xf32> to vector<2x96xf32>
    %539 = arith.truncf %535 : vector<2x32xf32> to vector<2x32xbf16>
    %540 = arith.truncf %417 : vector<32x96xf32> to vector<32x96xbf16>
    %cst_154 = arith.constant dense<0.000000e+00> : vector<2x96xf32>
    %541 = tpu.matmul %539, %540, %cst_154 {dimension_numbers = #tpu.dot_dimension_numbers<[1], [0], [0], [1], [0, 0, 1, 1], [], []>} : vector<2x32xbf16>, vector<32x96xbf16>, vector<2x96xf32> -> vector<2x96xf32>
    %542 = vector.extract_strided_slice %538 {offsets = [0, 0], sizes = [2, 32], strides = [1, 1]} : vector<2x96xf32> to vector<2x32xf32>
    %543 = vector.extract_strided_slice %541 {offsets = [0, 0], sizes = [2, 32], strides = [1, 1]} : vector<2x96xf32> to vector<2x32xf32>
    %544 = arith.addf %542, %543 : vector<2x32xf32>
    %cst_155 = arith.constant 0.000000e+00 : f32
    %545 = vector.broadcast %cst_155 : f32 to vector<2x32xf32>
    %546 = arith.subf %545, %544 : vector<2x32xf32>
    %547 = math.exp %546 : vector<2x32xf32>
    %cst_156 = arith.constant 1.000000e+00 : f32
    %548 = vector.broadcast %cst_156 : f32 to vector<2x32xf32>
    %549 = arith.addf %548, %547 : vector<2x32xf32>
    %550 = tpu.reciprocal %549 {approx = true} : vector<2x32xf32> -> vector<2x32xf32>
    %551 = vector.extract_strided_slice %538 {offsets = [0, 32], sizes = [2, 32], strides = [1, 1]} : vector<2x96xf32> to vector<2x32xf32>
    %552 = vector.extract_strided_slice %541 {offsets = [0, 32], sizes = [2, 32], strides = [1, 1]} : vector<2x96xf32> to vector<2x32xf32>
    %553 = arith.addf %551, %552 : vector<2x32xf32>
    %cst_157 = arith.constant 0.000000e+00 : f32
    %554 = vector.broadcast %cst_157 : f32 to vector<2x32xf32>
    %555 = arith.subf %554, %553 : vector<2x32xf32>
    %556 = math.exp %555 : vector<2x32xf32>
    %cst_158 = arith.constant 1.000000e+00 : f32
    %557 = vector.broadcast %cst_158 : f32 to vector<2x32xf32>
    %558 = arith.addf %557, %556 : vector<2x32xf32>
    %559 = tpu.reciprocal %558 {approx = true} : vector<2x32xf32> -> vector<2x32xf32>
    %560 = vector.extract_strided_slice %538 {offsets = [0, 64], sizes = [2, 32], strides = [1, 1]} : vector<2x96xf32> to vector<2x32xf32>
    %561 = vector.extract_strided_slice %541 {offsets = [0, 64], sizes = [2, 32], strides = [1, 1]} : vector<2x96xf32> to vector<2x32xf32>
    %562 = vector.broadcast %419 : vector<1x32xf32> to vector<2x32xf32>
    %563 = arith.addf %561, %562 : vector<2x32xf32>
    %564 = arith.mulf %550, %563 : vector<2x32xf32>
    %565 = arith.addf %560, %564 : vector<2x32xf32>
    %566 = math.tanh %565 : vector<2x32xf32>
    %cst_159 = arith.constant 1.000000e+00 : f32
    %567 = vector.broadcast %cst_159 : f32 to vector<2x32xf32>
    %568 = arith.subf %567, %559 : vector<2x32xf32>
    %569 = arith.mulf %568, %566 : vector<2x32xf32>
    %570 = arith.mulf %559, %535 : vector<2x32xf32>
    %571 = arith.addf %569, %570 : vector<2x32xf32>
    %c4_i32_160 = arith.constant 4 : i32
    %572 = arith.index_cast %c4_i32_160 : i32 to index
    %c0_161 = arith.constant 0 : index
    %c0_162 = arith.constant 0 : index
    %573 = vector.load %arg9[%572, %c0_161, %c0_162] : memref<8x2x96xf32, #tpu.memory_space<vmem>>, vector<1x2x96xf32>
    %574 = vector.shape_cast %573 : vector<1x2x96xf32> to vector<2x96xf32>
    %575 = arith.truncf %571 : vector<2x32xf32> to vector<2x32xbf16>
    %576 = arith.truncf %417 : vector<32x96xf32> to vector<32x96xbf16>
    %cst_163 = arith.constant dense<0.000000e+00> : vector<2x96xf32>
    %577 = tpu.matmul %575, %576, %cst_163 {dimension_numbers = #tpu.dot_dimension_numbers<[1], [0], [0], [1], [0, 0, 1, 1], [], []>} : vector<2x32xbf16>, vector<32x96xbf16>, vector<2x96xf32> -> vector<2x96xf32>
    %578 = vector.extract_strided_slice %574 {offsets = [0, 0], sizes = [2, 32], strides = [1, 1]} : vector<2x96xf32> to vector<2x32xf32>
    %579 = vector.extract_strided_slice %577 {offsets = [0, 0], sizes = [2, 32], strides = [1, 1]} : vector<2x96xf32> to vector<2x32xf32>
    %580 = arith.addf %578, %579 : vector<2x32xf32>
    %cst_164 = arith.constant 0.000000e+00 : f32
    %581 = vector.broadcast %cst_164 : f32 to vector<2x32xf32>
    %582 = arith.subf %581, %580 : vector<2x32xf32>
    %583 = math.exp %582 : vector<2x32xf32>
    %cst_165 = arith.constant 1.000000e+00 : f32
    %584 = vector.broadcast %cst_165 : f32 to vector<2x32xf32>
    %585 = arith.addf %584, %583 : vector<2x32xf32>
    %586 = tpu.reciprocal %585 {approx = true} : vector<2x32xf32> -> vector<2x32xf32>
    %587 = vector.extract_strided_slice %574 {offsets = [0, 32], sizes = [2, 32], strides = [1, 1]} : vector<2x96xf32> to vector<2x32xf32>
    %588 = vector.extract_strided_slice %577 {offsets = [0, 32], sizes = [2, 32], strides = [1, 1]} : vector<2x96xf32> to vector<2x32xf32>
    %589 = arith.addf %587, %588 : vector<2x32xf32>
    %cst_166 = arith.constant 0.000000e+00 : f32
    %590 = vector.broadcast %cst_166 : f32 to vector<2x32xf32>
    %591 = arith.subf %590, %589 : vector<2x32xf32>
    %592 = math.exp %591 : vector<2x32xf32>
    %cst_167 = arith.constant 1.000000e+00 : f32
    %593 = vector.broadcast %cst_167 : f32 to vector<2x32xf32>
    %594 = arith.addf %593, %592 : vector<2x32xf32>
    %595 = tpu.reciprocal %594 {approx = true} : vector<2x32xf32> -> vector<2x32xf32>
    %596 = vector.extract_strided_slice %574 {offsets = [0, 64], sizes = [2, 32], strides = [1, 1]} : vector<2x96xf32> to vector<2x32xf32>
    %597 = vector.extract_strided_slice %577 {offsets = [0, 64], sizes = [2, 32], strides = [1, 1]} : vector<2x96xf32> to vector<2x32xf32>
    %598 = vector.broadcast %419 : vector<1x32xf32> to vector<2x32xf32>
    %599 = arith.addf %597, %598 : vector<2x32xf32>
    %600 = arith.mulf %586, %599 : vector<2x32xf32>
    %601 = arith.addf %596, %600 : vector<2x32xf32>
    %602 = math.tanh %601 : vector<2x32xf32>
    %cst_168 = arith.constant 1.000000e+00 : f32
    %603 = vector.broadcast %cst_168 : f32 to vector<2x32xf32>
    %604 = arith.subf %603, %595 : vector<2x32xf32>
    %605 = arith.mulf %604, %602 : vector<2x32xf32>
    %606 = arith.mulf %595, %571 : vector<2x32xf32>
    %607 = arith.addf %605, %606 : vector<2x32xf32>
    %c5_i32_169 = arith.constant 5 : i32
    %608 = arith.index_cast %c5_i32_169 : i32 to index
    %c0_170 = arith.constant 0 : index
    %c0_171 = arith.constant 0 : index
    %609 = vector.load %arg9[%608, %c0_170, %c0_171] : memref<8x2x96xf32, #tpu.memory_space<vmem>>, vector<1x2x96xf32>
    %610 = vector.shape_cast %609 : vector<1x2x96xf32> to vector<2x96xf32>
    %611 = arith.truncf %607 : vector<2x32xf32> to vector<2x32xbf16>
    %612 = arith.truncf %417 : vector<32x96xf32> to vector<32x96xbf16>
    %cst_172 = arith.constant dense<0.000000e+00> : vector<2x96xf32>
    %613 = tpu.matmul %611, %612, %cst_172 {dimension_numbers = #tpu.dot_dimension_numbers<[1], [0], [0], [1], [0, 0, 1, 1], [], []>} : vector<2x32xbf16>, vector<32x96xbf16>, vector<2x96xf32> -> vector<2x96xf32>
    %614 = vector.extract_strided_slice %610 {offsets = [0, 0], sizes = [2, 32], strides = [1, 1]} : vector<2x96xf32> to vector<2x32xf32>
    %615 = vector.extract_strided_slice %613 {offsets = [0, 0], sizes = [2, 32], strides = [1, 1]} : vector<2x96xf32> to vector<2x32xf32>
    %616 = arith.addf %614, %615 : vector<2x32xf32>
    %cst_173 = arith.constant 0.000000e+00 : f32
    %617 = vector.broadcast %cst_173 : f32 to vector<2x32xf32>
    %618 = arith.subf %617, %616 : vector<2x32xf32>
    %619 = math.exp %618 : vector<2x32xf32>
    %cst_174 = arith.constant 1.000000e+00 : f32
    %620 = vector.broadcast %cst_174 : f32 to vector<2x32xf32>
    %621 = arith.addf %620, %619 : vector<2x32xf32>
    %622 = tpu.reciprocal %621 {approx = true} : vector<2x32xf32> -> vector<2x32xf32>
    %623 = vector.extract_strided_slice %610 {offsets = [0, 32], sizes = [2, 32], strides = [1, 1]} : vector<2x96xf32> to vector<2x32xf32>
    %624 = vector.extract_strided_slice %613 {offsets = [0, 32], sizes = [2, 32], strides = [1, 1]} : vector<2x96xf32> to vector<2x32xf32>
    %625 = arith.addf %623, %624 : vector<2x32xf32>
    %cst_175 = arith.constant 0.000000e+00 : f32
    %626 = vector.broadcast %cst_175 : f32 to vector<2x32xf32>
    %627 = arith.subf %626, %625 : vector<2x32xf32>
    %628 = math.exp %627 : vector<2x32xf32>
    %cst_176 = arith.constant 1.000000e+00 : f32
    %629 = vector.broadcast %cst_176 : f32 to vector<2x32xf32>
    %630 = arith.addf %629, %628 : vector<2x32xf32>
    %631 = tpu.reciprocal %630 {approx = true} : vector<2x32xf32> -> vector<2x32xf32>
    %632 = vector.extract_strided_slice %610 {offsets = [0, 64], sizes = [2, 32], strides = [1, 1]} : vector<2x96xf32> to vector<2x32xf32>
    %633 = vector.extract_strided_slice %613 {offsets = [0, 64], sizes = [2, 32], strides = [1, 1]} : vector<2x96xf32> to vector<2x32xf32>
    %634 = vector.broadcast %419 : vector<1x32xf32> to vector<2x32xf32>
    %635 = arith.addf %633, %634 : vector<2x32xf32>
    %636 = arith.mulf %622, %635 : vector<2x32xf32>
    %637 = arith.addf %632, %636 : vector<2x32xf32>
    %638 = math.tanh %637 : vector<2x32xf32>
    %cst_177 = arith.constant 1.000000e+00 : f32
    %639 = vector.broadcast %cst_177 : f32 to vector<2x32xf32>
    %640 = arith.subf %639, %631 : vector<2x32xf32>
    %641 = arith.mulf %640, %638 : vector<2x32xf32>
    %642 = arith.mulf %631, %607 : vector<2x32xf32>
    %643 = arith.addf %641, %642 : vector<2x32xf32>
    %c6_i32_178 = arith.constant 6 : i32
    %644 = arith.index_cast %c6_i32_178 : i32 to index
    %c0_179 = arith.constant 0 : index
    %c0_180 = arith.constant 0 : index
    %645 = vector.load %arg9[%644, %c0_179, %c0_180] : memref<8x2x96xf32, #tpu.memory_space<vmem>>, vector<1x2x96xf32>
    %646 = vector.shape_cast %645 : vector<1x2x96xf32> to vector<2x96xf32>
    %647 = arith.truncf %643 : vector<2x32xf32> to vector<2x32xbf16>
    %648 = arith.truncf %417 : vector<32x96xf32> to vector<32x96xbf16>
    %cst_181 = arith.constant dense<0.000000e+00> : vector<2x96xf32>
    %649 = tpu.matmul %647, %648, %cst_181 {dimension_numbers = #tpu.dot_dimension_numbers<[1], [0], [0], [1], [0, 0, 1, 1], [], []>} : vector<2x32xbf16>, vector<32x96xbf16>, vector<2x96xf32> -> vector<2x96xf32>
    %650 = vector.extract_strided_slice %646 {offsets = [0, 0], sizes = [2, 32], strides = [1, 1]} : vector<2x96xf32> to vector<2x32xf32>
    %651 = vector.extract_strided_slice %649 {offsets = [0, 0], sizes = [2, 32], strides = [1, 1]} : vector<2x96xf32> to vector<2x32xf32>
    %652 = arith.addf %650, %651 : vector<2x32xf32>
    %cst_182 = arith.constant 0.000000e+00 : f32
    %653 = vector.broadcast %cst_182 : f32 to vector<2x32xf32>
    %654 = arith.subf %653, %652 : vector<2x32xf32>
    %655 = math.exp %654 : vector<2x32xf32>
    %cst_183 = arith.constant 1.000000e+00 : f32
    %656 = vector.broadcast %cst_183 : f32 to vector<2x32xf32>
    %657 = arith.addf %656, %655 : vector<2x32xf32>
    %658 = tpu.reciprocal %657 {approx = true} : vector<2x32xf32> -> vector<2x32xf32>
    %659 = vector.extract_strided_slice %646 {offsets = [0, 32], sizes = [2, 32], strides = [1, 1]} : vector<2x96xf32> to vector<2x32xf32>
    %660 = vector.extract_strided_slice %649 {offsets = [0, 32], sizes = [2, 32], strides = [1, 1]} : vector<2x96xf32> to vector<2x32xf32>
    %661 = arith.addf %659, %660 : vector<2x32xf32>
    %cst_184 = arith.constant 0.000000e+00 : f32
    %662 = vector.broadcast %cst_184 : f32 to vector<2x32xf32>
    %663 = arith.subf %662, %661 : vector<2x32xf32>
    %664 = math.exp %663 : vector<2x32xf32>
    %cst_185 = arith.constant 1.000000e+00 : f32
    %665 = vector.broadcast %cst_185 : f32 to vector<2x32xf32>
    %666 = arith.addf %665, %664 : vector<2x32xf32>
    %667 = tpu.reciprocal %666 {approx = true} : vector<2x32xf32> -> vector<2x32xf32>
    %668 = vector.extract_strided_slice %646 {offsets = [0, 64], sizes = [2, 32], strides = [1, 1]} : vector<2x96xf32> to vector<2x32xf32>
    %669 = vector.extract_strided_slice %649 {offsets = [0, 64], sizes = [2, 32], strides = [1, 1]} : vector<2x96xf32> to vector<2x32xf32>
    %670 = vector.broadcast %419 : vector<1x32xf32> to vector<2x32xf32>
    %671 = arith.addf %669, %670 : vector<2x32xf32>
    %672 = arith.mulf %658, %671 : vector<2x32xf32>
    %673 = arith.addf %668, %672 : vector<2x32xf32>
    %674 = math.tanh %673 : vector<2x32xf32>
    %cst_186 = arith.constant 1.000000e+00 : f32
    %675 = vector.broadcast %cst_186 : f32 to vector<2x32xf32>
    %676 = arith.subf %675, %667 : vector<2x32xf32>
    %677 = arith.mulf %676, %674 : vector<2x32xf32>
    %678 = arith.mulf %667, %643 : vector<2x32xf32>
    %679 = arith.addf %677, %678 : vector<2x32xf32>
    %c7_i32_187 = arith.constant 7 : i32
    %680 = arith.index_cast %c7_i32_187 : i32 to index
    %c0_188 = arith.constant 0 : index
    %c0_189 = arith.constant 0 : index
    %681 = vector.load %arg9[%680, %c0_188, %c0_189] : memref<8x2x96xf32, #tpu.memory_space<vmem>>, vector<1x2x96xf32>
    %682 = vector.shape_cast %681 : vector<1x2x96xf32> to vector<2x96xf32>
    %683 = arith.truncf %679 : vector<2x32xf32> to vector<2x32xbf16>
    %684 = arith.truncf %417 : vector<32x96xf32> to vector<32x96xbf16>
    %cst_190 = arith.constant dense<0.000000e+00> : vector<2x96xf32>
    %685 = tpu.matmul %683, %684, %cst_190 {dimension_numbers = #tpu.dot_dimension_numbers<[1], [0], [0], [1], [0, 0, 1, 1], [], []>} : vector<2x32xbf16>, vector<32x96xbf16>, vector<2x96xf32> -> vector<2x96xf32>
    %686 = vector.extract_strided_slice %682 {offsets = [0, 0], sizes = [2, 32], strides = [1, 1]} : vector<2x96xf32> to vector<2x32xf32>
    %687 = vector.extract_strided_slice %685 {offsets = [0, 0], sizes = [2, 32], strides = [1, 1]} : vector<2x96xf32> to vector<2x32xf32>
    %688 = arith.addf %686, %687 : vector<2x32xf32>
    %cst_191 = arith.constant 0.000000e+00 : f32
    %689 = vector.broadcast %cst_191 : f32 to vector<2x32xf32>
    %690 = arith.subf %689, %688 : vector<2x32xf32>
    %691 = math.exp %690 : vector<2x32xf32>
    %cst_192 = arith.constant 1.000000e+00 : f32
    %692 = vector.broadcast %cst_192 : f32 to vector<2x32xf32>
    %693 = arith.addf %692, %691 : vector<2x32xf32>
    %694 = tpu.reciprocal %693 {approx = true} : vector<2x32xf32> -> vector<2x32xf32>
    %695 = vector.extract_strided_slice %682 {offsets = [0, 32], sizes = [2, 32], strides = [1, 1]} : vector<2x96xf32> to vector<2x32xf32>
    %696 = vector.extract_strided_slice %685 {offsets = [0, 32], sizes = [2, 32], strides = [1, 1]} : vector<2x96xf32> to vector<2x32xf32>
    %697 = arith.addf %695, %696 : vector<2x32xf32>
    %cst_193 = arith.constant 0.000000e+00 : f32
    %698 = vector.broadcast %cst_193 : f32 to vector<2x32xf32>
    %699 = arith.subf %698, %697 : vector<2x32xf32>
    %700 = math.exp %699 : vector<2x32xf32>
    %cst_194 = arith.constant 1.000000e+00 : f32
    %701 = vector.broadcast %cst_194 : f32 to vector<2x32xf32>
    %702 = arith.addf %701, %700 : vector<2x32xf32>
    %703 = tpu.reciprocal %702 {approx = true} : vector<2x32xf32> -> vector<2x32xf32>
    %704 = vector.extract_strided_slice %682 {offsets = [0, 64], sizes = [2, 32], strides = [1, 1]} : vector<2x96xf32> to vector<2x32xf32>
    %705 = vector.extract_strided_slice %685 {offsets = [0, 64], sizes = [2, 32], strides = [1, 1]} : vector<2x96xf32> to vector<2x32xf32>
    %706 = vector.broadcast %419 : vector<1x32xf32> to vector<2x32xf32>
    %707 = arith.addf %705, %706 : vector<2x32xf32>
    %708 = arith.mulf %694, %707 : vector<2x32xf32>
    %709 = arith.addf %704, %708 : vector<2x32xf32>
    %710 = math.tanh %709 : vector<2x32xf32>
    %cst_195 = arith.constant 1.000000e+00 : f32
    %711 = vector.broadcast %cst_195 : f32 to vector<2x32xf32>
    %712 = arith.subf %711, %703 : vector<2x32xf32>
    %713 = arith.mulf %712, %710 : vector<2x32xf32>
    %714 = arith.mulf %703, %679 : vector<2x32xf32>
    %715 = arith.addf %713, %714 : vector<2x32xf32>
    %c8_i32_196 = arith.constant 8 : i32
    %cst_197 = arith.constant 5.000000e-01 : f32
    %716 = vector.broadcast %cst_197 : f32 to vector<2x32xf32>
    %717 = arith.mulf %716, %715 : vector<2x32xf32>
    %cst_198 = arith.constant 0.707106769 : f32
    %718 = vector.broadcast %cst_198 : f32 to vector<2x32xf32>
    %719 = arith.mulf %715, %718 : vector<2x32xf32>
    %cst_199 = arith.constant 0.000000e+00 : f32
    %720 = vector.broadcast %cst_199 : f32 to vector<2x32xf32>
    %721 = arith.cmpf oge, %719, %720 : vector<2x32xf32>
    %cst_200 = arith.constant 1.000000e+00 : f32
    %cst_201 = arith.constant -1.000000e+00 : f32
    %722 = vector.broadcast %cst_200 : f32 to vector<2x32xf32>
    %723 = vector.broadcast %cst_201 : f32 to vector<2x32xf32>
    %724 = arith.select %721, %722, %723 : vector<2x32xi1>, vector<2x32xf32>
    %725 = math.absf %719 : vector<2x32xf32>
    %cst_202 = arith.constant 0.327591091 : f32
    %726 = vector.broadcast %cst_202 : f32 to vector<2x32xf32>
    %727 = arith.mulf %726, %725 : vector<2x32xf32>
    %cst_203 = arith.constant 1.000000e+00 : f32
    %728 = vector.broadcast %cst_203 : f32 to vector<2x32xf32>
    %729 = arith.addf %728, %727 : vector<2x32xf32>
    %cst_204 = arith.constant 1.000000e+00 : f32
    %730 = vector.broadcast %cst_204 : f32 to vector<2x32xf32>
    %731 = arith.divf %730, %729 : vector<2x32xf32>
    %cst_205 = arith.constant 1.06140542 : f32
    %732 = vector.broadcast %cst_205 : f32 to vector<2x32xf32>
    %733 = arith.mulf %732, %731 : vector<2x32xf32>
    %cst_206 = arith.constant -1.45315206 : f32
    %734 = vector.broadcast %cst_206 : f32 to vector<2x32xf32>
    %735 = arith.addf %733, %734 : vector<2x32xf32>
    %736 = arith.mulf %735, %731 : vector<2x32xf32>
    %cst_207 = arith.constant 1.42141378 : f32
    %737 = vector.broadcast %cst_207 : f32 to vector<2x32xf32>
    %738 = arith.addf %736, %737 : vector<2x32xf32>
    %739 = arith.mulf %738, %731 : vector<2x32xf32>
    %cst_208 = arith.constant -0.284496725 : f32
    %740 = vector.broadcast %cst_208 : f32 to vector<2x32xf32>
    %741 = arith.addf %739, %740 : vector<2x32xf32>
    %742 = arith.mulf %741, %731 : vector<2x32xf32>
    %cst_209 = arith.constant 0.254829586 : f32
    %743 = vector.broadcast %cst_209 : f32 to vector<2x32xf32>
    %744 = arith.addf %742, %743 : vector<2x32xf32>
    %745 = arith.mulf %744, %731 : vector<2x32xf32>
    %cst_210 = arith.constant 0.000000e+00 : f32
    %746 = vector.broadcast %cst_210 : f32 to vector<2x32xf32>
    %747 = arith.subf %746, %725 : vector<2x32xf32>
    %748 = arith.mulf %747, %725 : vector<2x32xf32>
    %749 = math.exp %748 : vector<2x32xf32>
    %750 = arith.mulf %745, %749 : vector<2x32xf32>
    %cst_211 = arith.constant 1.000000e+00 : f32
    %751 = vector.broadcast %cst_211 : f32 to vector<2x32xf32>
    %752 = arith.subf %751, %750 : vector<2x32xf32>
    %753 = arith.mulf %724, %752 : vector<2x32xf32>
    %cst_212 = arith.constant 1.000000e+00 : f32
    %754 = vector.broadcast %cst_212 : f32 to vector<2x32xf32>
    %755 = arith.addf %754, %753 : vector<2x32xf32>
    %756 = arith.mulf %717, %755 : vector<2x32xf32>
    %757 = vector.extract_strided_slice %7 {offsets = [0, 0], sizes = [32, 10], strides = [1, 1]} : vector<33x10xf32> to vector<32x10xf32>
    %758 = arith.truncf %756 : vector<2x32xf32> to vector<2x32xbf16>
    %759 = arith.truncf %757 : vector<32x10xf32> to vector<32x10xbf16>
    %cst_213 = arith.constant dense<0.000000e+00> : vector<2x10xf32>
    %760 = tpu.matmul %758, %759, %cst_213 {dimension_numbers = #tpu.dot_dimension_numbers<[1], [0], [0], [1], [0, 0, 1, 1], [], []>} : vector<2x32xbf16>, vector<32x10xbf16>, vector<2x10xf32> -> vector<2x10xf32>
    %761 = vector.extract_strided_slice %7 {offsets = [32, 0], sizes = [1, 10], strides = [1, 1]} : vector<33x10xf32> to vector<1x10xf32>
    %762 = vector.broadcast %761 : vector<1x10xf32> to vector<2x10xf32>
    %763 = arith.addf %760, %762 : vector<2x10xf32>
    %c0_214 = arith.constant 0 : index
    %c0_215 = arith.constant 0 : index
    %764 = vector.load %arg8[%c0_214, %c0_215] : memref<2x10xf32, #tpu.memory_space<vmem>>, vector<2x10xf32>
    tpu.vector_store %arg8[%c0_214, %c0_215], %763 {strides = array<i32>} : memref<2x10xf32, #tpu.memory_space<vmem>>, vector<2x10xf32>,
    return
  }
  func.func @transform_0(%arg0: i32) -> (i32, i32, i32) {
    %c0_i32 = arith.constant 0 : i32
    %c0_i32_0 = arith.constant 0 : i32
    %c0_i32_1 = arith.constant 0 : i32
    return %c0_i32, %arg0, %c0_i32_0 : i32, i32, i32
  }
  func.func @transform_1(%arg0: i32) -> (i32, i32) {
    %c0_i32 = arith.constant 0 : i32
    %c0_i32_0 = arith.constant 0 : i32
    %c0_i32_1 = arith.constant 0 : i32
    return %c0_i32, %c0_i32_0 : i32, i32
  }
  func.func @transform_2(%arg0: i32) -> (i32, i32) {
    %c0_i32 = arith.constant 0 : i32
    %c0_i32_0 = arith.constant 0 : i32
    %c0_i32_1 = arith.constant 0 : i32
    return %c0_i32, %c0_i32_0 : i32, i32
  }
  func.func @transform_3(%arg0: i32) -> (i32, i32) {
    %c0_i32 = arith.constant 0 : i32
    %c0_i32_0 = arith.constant 0 : i32
    %c0_i32_1 = arith.constant 0 : i32
    return %c0_i32, %c0_i32_0 : i32, i32
  }
  func.func @transform_4(%arg0: i32) -> (i32, i32) {
    %c0_i32 = arith.constant 0 : i32
    %c0_i32_0 = arith.constant 0 : i32
    %c0_i32_1 = arith.constant 0 : i32
    return %c0_i32, %c0_i32_0 : i32, i32
  }
  func.func @transform_5(%arg0: i32) -> (i32, i32) {
    %c0_i32 = arith.constant 0 : i32
    %c0_i32_0 = arith.constant 0 : i32
    %c0_i32_1 = arith.constant 0 : i32
    return %c0_i32, %c0_i32_0 : i32, i32
  }
  func.func @transform_6(%arg0: i32) -> (i32, i32) {
    %c0_i32 = arith.constant 0 : i32
    %c0_i32_0 = arith.constant 0 : i32
    %c0_i32_1 = arith.constant 0 : i32
    return %c0_i32, %c0_i32_0 : i32, i32
  }
  func.func @transform_7(%arg0: i32) -> (i32, i32) {
    %c0_i32 = arith.constant 0 : i32
    %c0_i32_0 = arith.constant 0 : i32
    return %arg0, %c0_i32 : i32, i32
  }
}

</mosaic_0001>

<bundles_post_ra>
// kernel: tpu_custom_call.1
= control target key start
LH: loop header
LB: loop body
LE: loop exit
PB: predicated region body
PF: predicated region fallthrough
CT: control target
= control target key end

     0   :  { %v87_v2 = vlaneseq  ;;  %v2419_v3 = vmov 0.0   ;;  %vm2420_vm0 = vmmov 0   ;;  %v2421_v13 = vmov 1983009808   ;;  %s2978_s0 = inlined_call_operand.vmem [shape: f32[8,2,16], index: 0, kind: input, shape index: {}]   ;;  %s2979_s1 = inlined_call_operand.vmem [shape: f32[112,32], index: 1, kind: input, shape index: {}]   ;;  %s2980_s2 = inlined_call_operand.vmem [shape: f32[4,32], index: 2, kind: input, shape index: {}]   ;;  %s2981_s3 = inlined_call_operand.vmem [shape: f32[2,32], index: 3, kind: input, shape index: {}]   ;;  %s2982_s4 = inlined_call_operand.vmem [shape: f32[128,96], index: 4, kind: input, shape index: {}]   ;;  %s2983_s5 = inlined_call_operand.vmem [shape: f32[2,128], index: 5, kind: input, shape index: {}]   ;;  %s2984_s6 = inlined_call_operand.vmem [shape: f32[33,10], index: 6, kind: input, shape index: {}]   ;;  %s2985_s7 = inlined_call_operand.hbm [shape: f32[2,10], index: 7, kind: output, shape index: {}]  }
   0x1   :  { %v36_v0 = vld [vmem:[%s2979_s1] sm:$0xff]  ;;  %v37_v1 = vld [vmem:[%s2979_s1 + $0x8] sm:$0xff]  ;;  %2089 = vmatprep.subr.bf16.mxu0 %v2419_v3  ;;  %2091 = vmatprep.mubr.msk.bf16.mxu0 %vm2420_vm0, %v2419_v3  ;;  %v85_v14 = vunpack.c.l.s4 %v2421_v13 }
   0x2   :  { %v119_v4 = vpack.c.bf16 %v37_v1, %v36_v0  ;;  %v28_v5 = vld [vmem:[%s2978_s0] sm:$0x3]  ;;  %v29_v6 = vld [vmem:[%s2978_s0 + $0x2] sm:$0x3]  ;;  %v30_v7 = vld [vmem:[%s2978_s0 + $0x4] sm:$0x3]  ;;  %2095 = vmatprep.subr.bf16.mxu1 %v2419_v3  ;;  %2099 = vmatprep.mubr.msk.bf16.mxu1 %vm2420_vm0, %v2419_v3 }
   0x3   :  { %v31_v8 = vld [vmem:[%s2978_s0 + $0x6] sm:$0x3]  ;;  %v32_v9 = vld [vmem:[%s2978_s0 + $0x8] sm:$0x3]  ;;  %v33_v10 = vld [vmem:[%s2978_s0 + $0xa] sm:$0x3] }
   0x4   :  { %2090 = vmatpush3.bf16.msra.mxu0 %v119_v4  ;;  %v34_v11 = vld [vmem:[%s2978_s0 + $0xc] sm:$0x3]  ;;  %v35_v12 = vld [vmem:[%s2978_s0 + $0xe] sm:$0x3]  ;;  %v2503_v15 = vshrl.u32 %v87_v2, 7 }
   0x5   :  { %2103 = vmatprep.subr.bf16.mxu0 %v2419_v3 }
   0x6   :  { %12 = vsyncpa [#allocation5], 0  ;;  %v82_v16 = vcombine.low %v28_v5, %v29_v6  ;;  %v83_v17 = vcombine.low %v30_v7, %v31_v8  ;;  %v86_v18 = vunpack.c.0.s8 %v85_v14  ;;  %v99_v19 = vcombine.low %v32_v9, %v33_v10  ;;  %v38_v29 = vld [vmem:[%s2979_s1 + $0x10] sm:$0xff]  ;;  %v39_v30 = vld [vmem:[%s2979_s1 + $0x18] sm:$0xff]  ;;  %s2423_s14 = smov 96   ;;  %s2424_s16 = smov 64  }
   0x7   :  { %v100_v20 = vcombine.low %v34_v11, %v35_v12  ;;  %vm124_vm1 = vcmask 130048   ;;  %v182_v31 = vpack.c.bf16 %v39_v30, %v38_v29  ;;  %v40_v32 = vld [vmem:[%s2979_s1 + $0x20] sm:$0xff]  ;;  %v41_v33 = vld [vmem:[%s2979_s1 + $0x28] sm:$0xff]  ;;  %v2530_v35 = vsub.s32 0, %v2503_v15  ;;  %v42_v55 = vld [vmem:[%s2979_s1 + $0x30] sm:$0xff]  ;;  %s2426_s15 = smov [#allocation4]  }
   0x8   :  { %v2507_v21 = vsub.s32 %v86_v18, %v2503_v15  ;;  %v183_v34 = vpack.c.bf16 %v41_v33, %v40_v32  ;;  %v2535_v36 = vld [vmem:[%s2980_s2] sm:$0xf]  ;;  %vm188_vm4 = vcmask 261120   ;;  %v43_v56 = vld [vmem:[%s2979_s1 + $0x38] sm:$0xff]  ;;  %v45_v59 = vld [vmem:[%s2979_s1 + $0x48] sm:$0xff]  ;;  %v2557_v61 = vsub.s32 1, %v2503_v15 }
   0x9   :  { %2096 = vmatpush3.bf16.msra.mxu1 %v182_v31  ;;  %v123_v37 = vrot.slane %v2535_v36, %v2530_v35  ;;  %v246_v57 = vpack.c.bf16 %v43_v56, %v42_v55  ;;  %v44_v58 = vld [vmem:[%s2979_s1 + $0x40] sm:$0xff]  ;;  %v46_v18 = vld [vmem:[%s2979_s1 + $0x50] sm:$0xff]  ;;  %vm493_vm9 = vcmask 779264   ;;  %vm582_vm10 = vcmask 254976  }
   0xa   :  { %v90_v22 = vrot.slane %v82_v16, %v2507_v21  ;;  %v97_v23 = vrot.slane %v83_v17, %v2507_v21  ;;  %v107_v24 = vrot.slane %v99_v19, %v2507_v21  ;;  %v114_v25 = vrot.slane %v100_v20, %v2507_v21  ;;  %2097 = vmatprep.subr.bf16.mxu1 %v2419_v3  ;;  %v47_v19 = vld [vmem:[%s2979_s1 + $0x58] sm:$0xff]  ;;  %v56_v56 = vld [vmem:[%s2982_s4 + $0x20] sm:$0xff] }
   0xb   :  { %v247_v60 = vpack.c.bf16 %v45_v59, %v44_v58  ;;  %v187_v62 = vrot.slane %v2535_v36, %v2557_v61  ;;  %v309_v20 = vpack.c.bf16 %v47_v19, %v46_v18  ;;  %v59_v58 = vld [vmem:[%s2982_s4 + $0x38] sm:$0xff]  ;;  %vm1977_vm12 = vcmask 74752  }
   0xc   :  { %v98_v26 = vcombine.low %v90_v22, %v97_v23  ;;  %v115_v27 = vcombine.low %v107_v24, %v114_v25  ;;  %v48_v22 = vld [vmem:[%s2979_s1 + $0x60] sm:$0xff]  ;;  %v49_v23 = vld [vmem:[%s2979_s1 + $0x68] sm:$0xff]  ;;  %v250_v25 = vsub.s32 2, %v2503_v15 }
   0xd   :  { %2098 = vmatpush3.bf16.msra.mxu1 %v183_v34  ;;  %v310_v24 = vpack.c.bf16 %v49_v23, %v48_v22 }
   0xe   :  { %v118_v28 = vpack.c.bf16 %v115_v27, %v98_v26  ;;  %2111 = vmatprep.subr.bf16.mxu1 %v2419_v3  ;;  %v251_v26 = vrot.slane %v2535_v36, %v250_v25 }
  0x10   :  { %2092 = vmatmul.mubr.msk.bf16.vlgmr.msra.gmra.mrb[0].mxu0 %vm124_vm1, %v118_v28 }
  0x11   :  { %2107 = vmatprep.mubr.msk.bf16.mxu0 %vm2420_vm0, %v2419_v3  ;;  %2104 = vmatpush3.bf16.msra.mxu0 %v246_v57 }
  0x12   :  { %2105 = vmatprep.subr.bf16.mxu0 %v2419_v3 }
  0x15   :  { %2106 = vmatpush3.bf16.msra.mxu0 %v247_v60  ;;  %v2422_v60 = vmov 0  }
  0x16   :  { %2119 = vmatprep.subr.bf16.mxu0 %v2419_v3 }
  0xe3   :  { %v162_v38 = vpop.f32.mrb[0].mxu0 }
  0xe4   :  { %v163_v39 = vadd.f32 %v162_v38, %v123_v37  ;;  %v2093_v40 = vpop.f32.mrb[1].mxu0 }
  0xe5   :  { %v165_v41 = vpop.f32.mrb[2].mxu0 }
  0xe6   :  { %v171_v42 = vmin.f32 %v163_v39, 0.0  ;;  %v166_v43 = vadd.f32 %v165_v41, %v123_v37  ;;  %v2094_v44 = vpop.f32.mrb[3].mxu0  ;;  %vm169_vm2 = vcmp.gt.f32.partialorder %v163_v39, 0.0 }
  0xe8   :  { %v173_v45 = vmul.f32 1.442695, %v171_v42  ;;  %v172_v46 = vmin.f32 %v166_v43, 0.0  ;;  %vm170_vm3 = vcmp.gt.f32.partialorder %v166_v43, 0.0 }
  0xea   :  { %2279 = vpow2.f32 %v173_v45  ;;  %v175_v47 = vmul.f32 1.442695, %v172_v46  ;;  %v313_v46 = vsub.s32 3, %v2503_v15  ;;  %v57_v15 = vld [vmem:[%s2982_s4 + $0x28] sm:$0xff] }
  0xeb   :  { %v2596_v57 = vpack.c.bf16 %v57_v15, %v56_v56 }
  0xec   :  { %2281 = vpow2.f32 %v175_v47  ;;  %v314_v47 = vrot.slane %v2535_v36, %v313_v46  ;;  %v58_v36 = vld [vmem:[%s2982_s4 + $0x30] sm:$0xff] }
  0xed   :  { %v2602_v59 = vpack.c.bf16 %v59_v58, %v58_v36 }
  0xf4   :  { %v2280_v48 = vpop.eup %2279 }
  0xf5   :  { %v1994_v49 = vadd.f32 -1.0, %v2280_v48 }
  0xf6   :  { %v2282_v50 = vpop.eup %2281 }
  0xf7   :  { %v1995_v51 = vadd.f32 -1.0, %v2282_v50  ;;  %v179_v52 = vsel %vm169_vm2, %v163_v39, %v1994_v49 }
  0xf9   :  { %v180_v53 = vsel %vm170_vm3, %v166_v43, %v1995_v51 }
  0xfa   :  { %v181_v54 = vpack.c.bf16 %v180_v53, %v179_v52 }
  0xfc   :  { %2100 = vmatmul.mubr.msk.bf16.vlgmr.msra.gmra.mrb[0].mxu1 %vm188_vm4, %v181_v54 }
  0xfd   :  { %2115 = vmatprep.mubr.msk.bf16.mxu1 %vm2420_vm0, %v2419_v3  ;;  %2112 = vmatpush3.bf16.msra.mxu1 %v309_v20 }
  0xfe   :  { %2113 = vmatprep.subr.bf16.mxu1 %v2419_v3 }
 0x101   :  { %2114 = vmatpush3.bf16.msra.mxu1 %v310_v24 }
 0x102   :  { %2127 = vmatprep.subr.bf16.mxu1 %v2419_v3 }
 0x1cf   :  { %v226_v63 = vpop.f32.mrb[0].mxu1 }
 0x1d0   :  { %v227_v0 = vadd.f32 %v226_v63, %v187_v62  ;;  %v2101_v1 = vpop.f32.mrb[1].mxu1 }
 0x1d1   :  { %v229_v2 = vpop.f32.mrb[2].mxu1 }
 0x1d2   :  { %v235_v4 = vmin.f32 %v227_v0, 0.0  ;;  %v230_v5 = vadd.f32 %v229_v2, %v187_v62  ;;  %v2102_v6 = vpop.f32.mrb[3].mxu1  ;;  %vm233_vm5 = vcmp.gt.f32.partialorder %v227_v0, 0.0 }
 0x1d4   :  { %v237_v7 = vmul.f32 1.442695, %v235_v4  ;;  %v236_v8 = vmin.f32 %v230_v5, 0.0  ;;  %vm234_vm6 = vcmp.gt.f32.partialorder %v230_v5, 0.0 }
 0x1d6   :  { %2283 = vpow2.f32 %v237_v7  ;;  %v239_v9 = vmul.f32 1.442695, %v236_v8 }
 0x1d8   :  { %2285 = vpow2.f32 %v239_v9  ;;  %v52_v9 = vld [vmem:[%s2982_s4] sm:$0xff] }
 0x1e0   :  { %v2284_v10 = vpop.eup %2283 }
 0x1e1   :  { %v1997_v11 = vadd.f32 -1.0, %v2284_v10  ;;  %v53_v10 = vld [vmem:[%s2982_s4 + $0x8] sm:$0xff] }
 0x1e2   :  { %v2286_v12 = vpop.eup %2285 }
 0x1e3   :  { %v1998_v13 = vadd.f32 -1.0, %v2286_v12  ;;  %v243_v14 = vsel %vm233_vm5, %v227_v0, %v1997_v11  ;;  %v399_v11 = vpack.c.bf16 %v53_v10, %v52_v9  ;;  %v54_v12 = vld [vmem:[%s2982_s4 + $0x10] sm:$0xff] }
 0x1e5   :  { %v244_v16 = vsel %vm234_vm6, %v230_v5, %v1998_v13  ;;  %v55_v13 = vld [vmem:[%s2982_s4 + $0x18] sm:$0xff] }
 0x1e6   :  { %v245_v17 = vpack.c.bf16 %v244_v16, %v243_v14  ;;  %v400_v14 = vpack.c.bf16 %v55_v13, %v54_v12  ;;  %v2633_v16 = vld [vmem:[%s2983_s5] sm:$0x3] }
 0x1e8   :  { %2108 = vmatmul.mubr.msk.bf16.vlgmr.msra.gmra.mrb[4].mxu0 %vm188_vm4, %v245_v17  ;;  %v404_v17 = vrot.slane %v2633_v16, %v2530_v35 }
 0x1e9   :  { %2123 = vmatprep.mubr.msk.bf16.mxu0 %vm2420_vm0, %v2419_v3  ;;  %2120 = vmatpush3.bf16.msra.mxu0 %v399_v11 }
 0x1ea   :  { %2121 = vmatprep.subr.bf16.mxu0 %v2419_v3 }
 0x1ed   :  { %2122 = vmatpush3.bf16.msra.mxu0 %v400_v14 }
 0x1ee   :  { %2135 = vmatprep.subr.bf16.mxu0 %v2419_v3 }
 0x2bb   :  { %v289_v27 = vpop.f32.mrb[4].mxu0 }
 0x2bc   :  { %v290_v28 = vadd.f32 %v289_v27, %v251_v26  ;;  %v2109_v29 = vpop.f32.mrb[5].mxu0 }
 0x2bd   :  { %v292_v30 = vpop.f32.mrb[6].mxu0  ;;  %v51_v29 = vld [vmem:[%s2981_s3] sm:$0x3] }
 0x2be   :  { %v298_v31 = vmin.f32 %v290_v28, 0.0  ;;  %v293_v32 = vadd.f32 %v292_v30, %v251_v26  ;;  %v2110_v33 = vpop.f32.mrb[7].mxu0  ;;  %vm296_vm7 = vcmp.gt.f32.partialorder %v290_v28, 0.0 }
 0x2c0   :  { %v300_v34 = vmul.f32 1.442695, %v298_v31  ;;  %v299_v37 = vmin.f32 %v293_v32, 0.0  ;;  %vm297_vm8 = vcmp.gt.f32.partialorder %v293_v32, 0.0  ;;  %v389_v31 = vrot.slane %v51_v29, %v2530_v35 }
 0x2c2   :  { %2287 = vpow2.f32 %v300_v34  ;;  %v302_v38 = vmul.f32 1.442695, %v299_v37 }
 0x2c4   :  { %2289 = vpow2.f32 %v302_v38  ;;  %v395_v38 = vrot.slane %v51_v29, %v2557_v61 }
 0x2cc   :  { %v2288_v39 = vpop.eup %2287 }
 0x2cd   :  { %v2000_v40 = vadd.f32 -1.0, %v2288_v39 }
 0x2ce   :  { %v2290_v41 = vpop.eup %2289 }
 0x2cf   :  { %v2001_v42 = vadd.f32 -1.0, %v2290_v41  ;;  %v306_v43 = vsel %vm296_vm7, %v290_v28, %v2000_v40 }
 0x2d1   :  { %v307_v44 = vsel %vm297_vm8, %v293_v32, %v2001_v42 }
 0x2d2   :  { %v308_v45 = vpack.c.bf16 %v307_v44, %v306_v43 }
 0x2d4   :  { %2116 = vmatmul.mubr.msk.bf16.vlgmr.msra.gmra.mrb[4].mxu1 %vm188_vm4, %v308_v45 }
 0x2d5   :  { %2131 = vmatprep.mubr.msk.bf16.mxu1 %vm2420_vm0, %v2419_v3  ;;  %2128 = vmatpush3.bf16.msra.mxu1 %v2596_v57 }
 0x2d6   :  { %2129 = vmatprep.subr.bf16.mxu1 %v2419_v3 }
 0x2d9   :  { %2130 = vmatpush3.bf16.msra.mxu1 %v2602_v59 }
 0x2da   :  { %2143 = vmatprep.subr.bf16.mxu1 %v2419_v3 }
 0x2dc   :  { %2132 = vmatmul.mubr.bf16.vlgmr.msra.gmra.mrb[8].mxu1 %v2422_v60 }
 0x2dd   :  { %2144 = vmatpush3.bf16.msra.mxu1 %v2596_v57  ;;  %2147 = vmatprep.mubr.msk.bf16.mxu1 %vm2420_vm0, %v2419_v3 }
 0x2de   :  { %2145 = vmatprep.subr.bf16.mxu1 %v2419_v3 }
 0x2e1   :  { %2146 = vmatpush3.bf16.msra.mxu1 %v2602_v59 }
 0x2e2   :  { %2159 = vmatprep.subr.bf16.mxu1 %v2419_v3 }
 0x3a7   :  { %v352_v48 = vpop.f32.mrb[4].mxu1 }
 0x3a8   :  { %v353_v49 = vadd.f32 %v352_v48, %v314_v47  ;;  %v2117_v50 = vpop.f32.mrb[5].mxu1 }
 0x3a9   :  { %v355_v51 = vpop.f32.mrb[6].mxu1 }
 0x3aa   :  { %v356_v52 = vadd.f32 %v355_v51, %v314_v47  ;;  %v2118_v53 = vpop.f32.mrb[7].mxu1  ;;  %v359_v54 = vsel %vm188_vm4, %v353_v49, 0.0 }
 0x3ab   :  { %360 = vadd.xlane.f32.xlu0 %v359_v54 }
 0x3ac   :  { %v362_v55 = vsel %vm188_vm4, %v356_v52, 0.0 }
 0x3af   :  { %363 = vadd.xlane.f32.xlu0 %v362_v55  ;;  %v542_v18 = vpop.f32.mrb[8].mxu1 }
 0x3b0   :  { %v2133_v19 = vpop.f32.mrb[9].mxu1 }
 0x3b1   :  { %v545_v20 = vpop.f32.mrb[10].mxu1 }
 0x3b2   :  { %v2134_v22 = vpop.f32.mrb[11].mxu1 }
 0x3c5   :  { %555 = vrot.lane.b32.xlu0 %v404_v17, %s2423_s14 }
 0x438   :  { %v361_v62 = vpop.xlane.xlu0 %360 }
 0x439   :  { %v366_v63 = vmul.f32 0.03125, %v361_v62 }
 0x43b   :  { %v368_v0 = vsub.f32 %v353_v49, %v366_v63 }
 0x43c   :  { %v364_v1 = vpop.xlane.xlu0 %363 }
 0x43d   :  { %v367_v2 = vmul.f32 0.03125, %v364_v1  ;;  %v370_v4 = vmul.f32 %v368_v0, %v368_v0 }
 0x43f   :  { %v369_v5 = vsub.f32 %v356_v52, %v367_v2  ;;  %v372_v6 = vsel %vm188_vm4, %v370_v4, 0.0 }
 0x440   :  { %373 = vadd.xlane.f32.xlu1 %v372_v6  ;;  %v2642_v33 = vpop.permute.xlu0 %555 }
 0x441   :  { %v371_v7 = vmul.f32 %v369_v5, %v369_v5  ;;  %v558_v34 = vadd.f32 %v2642_v33, %v542_v18 }
 0x443   :  { %v375_v8 = vsel %vm188_vm4, %v371_v7, 0.0 }
 0x444   :  { %376 = vadd.xlane.f32.xlu1 %v375_v8 }
 0x455   :  { %560 = vrot.lane.b32.xlu1 %v558_v34, %s2424_s16 }
 0x4cd   :  { %v374_v23 = vpop.xlane.xlu1 %373 }
 0x4ce   :  { %v378_v24 = vmul.f32 0.03125, %v374_v23 }
 0x4d0   :  { %v380_v25 = vadd.f32 1e-05, %v378_v24 }
 0x4d1   :  { %v377_v26 = vpop.xlane.xlu1 %376 }
 0x4d2   :  { %2291 = vrsqrt.f32 %v380_v25  ;;  %v379_v27 = vmul.f32 0.03125, %v377_v26 }
 0x4d4   :  { %v381_v28 = vadd.f32 1e-05, %v379_v27 }
 0x4d6   :  { %2293 = vrsqrt.f32 %v381_v28 }
 0x4dc   :  { %v2292_v30 = vpop.eup %2291 }
 0x4dd   :  { %v384_v32 = vmul.f32 %v2292_v30, %v368_v0 }
 0x4df   :  { %v390_v39 = vmul.f32 %v389_v31, %v384_v32 }
 0x4e0   :  { %v2294_v37 = vpop.eup %2293 }
 0x4e1   :  { %v385_v40 = vmul.f32 %v2294_v37, %v369_v5  ;;  %v396_v42 = vadd.f32 %v395_v38, %v390_v39  ;;  %v561_v5 = vpop.permute.xlu1 %560 }
 0x4e3   :  { %v391_v41 = vmul.f32 %v389_v31, %v385_v40 }
 0x4e5   :  { %v397_v43 = vadd.f32 %v395_v38, %v391_v41 }
 0x4e7   :  { %v398_v44 = vpack.c.bf16 %v397_v43, %v396_v42 }
 0x4e9   :  { %2124 = vmatmul.mubr.msk.bf16.vlgmr.msra.gmra.mrb[8].mxu0 %vm188_vm4, %v398_v44 }
 0x4ea   :  { %2136 = vmatpush3.bf16.msra.mxu0 %v2596_v57  ;;  %2139 = vmatprep.mubr.msk.bf16.mxu0 %vm2420_vm0, %v2419_v3 }
 0x4eb   :  { %2137 = vmatprep.subr.bf16.mxu0 %v2419_v3 }
 0x4ee   :  { %2138 = vmatpush3.bf16.msra.mxu0 %v2602_v59 }
 0x4ef   :  { %2151 = vmatprep.subr.bf16.mxu0 %v2419_v3 }
 0x5bc   :  { %v442_v35 = vpop.f32.mrb[8].mxu0 }
 0x5bd   :  { %v443_v45 = vadd.f32 %v442_v35, %v404_v17  ;;  %v2125_v46 = vpop.f32.mrb[9].mxu0 }
 0x5be   :  { %v445_v47 = vpop.f32.mrb[10].mxu0 }
 0x5bf   :  { %v451_v48 = vcombine.high %v443_v45, %v443_v45  ;;  %v458_v49 = vrot.slane %v443_v45, %v2507_v21  ;;  %v446_v50 = vadd.f32 %v445_v47, %v404_v17  ;;  %v2126_v51 = vpop.f32.mrb[11].mxu0 }
 0x5c1   :  { %v465_v52 = vrot.slane %v451_v48, %v2507_v21  ;;  %v466_v53 = vcombine.high %v458_v49, %v458_v49  ;;  %494 = vst.msk [vmem:[#allocation2] sm:$0x3] %vm493_vm9, %v458_v49  ;;  %v468_v54 = vcombine.high %v446_v50, %v446_v50  ;;  %v475_v55 = vrot.slane %v446_v50, %v2507_v21 }
 0x5c3   :  { %v467_v56 = vcombine.high %v465_v52, %v465_v52  ;;  %495 = vst.msk [vmem:[#allocation2 + $0x2] sm:$0x3] %vm493_vm9, %v466_v53  ;;  %496 = vst.msk [vmem:[#allocation2 + $0x4] sm:$0x3] %vm493_vm9, %v465_v52  ;;  %v482_v15 = vrot.slane %v468_v54, %v2507_v21  ;;  %v483_v36 = vcombine.high %v475_v55, %v475_v55 }
 0x5c4   :  { %498 = vst.msk [vmem:[#allocation2 + $0x8] sm:$0x3] %vm493_vm9, %v475_v55 }
 0x5c5   :  { %497 = vst.msk [vmem:[#allocation2 + $0x6] sm:$0x3] %vm493_vm9, %v467_v56  ;;  %v484_v58 = vcombine.high %v482_v15, %v482_v15  ;;  %499 = vst.msk [vmem:[#allocation2 + $0xa] sm:$0x3] %vm493_vm9, %v483_v36 }
 0x5c6   :  { %500 = vst.msk [vmem:[#allocation2 + $0xc] sm:$0x3] %vm493_vm9, %v482_v15 }
 0x5c7   :  { %501 = vst.msk [vmem:[#allocation2 + $0xe] sm:$0x3] %vm493_vm9, %v484_v58 }
 0x5c8   :  { %v502_v62 = vld [vmem:[#allocation2] sm:$0x3] }
 0x5c9   :  { %v548_v63 = vadd.f32 %v542_v18, %v502_v62 }
 0x5ca   :  { %v585_v26 = vld [vmem:[#allocation2 + $0x2] sm:$0x3]  ;;  %v666_v52 = vld [vmem:[#allocation2 + $0x4] sm:$0x3] }
 0x5cb   :  { %v549_v0 = vsub.f32 0.0, %v548_v63 }
 0x5cd   :  { %v550_v1 = vmul.f32 1.442695, %v549_v0 }
 0x5cf   :  { %2295 = vpow2.f32 %v550_v1 }
 0x5d9   :  { %v2296_v2 = vpop.eup %2295 }
 0x5da   :  { %v552_v4 = vadd.f32 1.0, %v2296_v2 }
 0x5dc   :  { %2297 = vrcp.f32 %v552_v4 }
 0x5e6   :  { %v2298_v6 = vpop.eup %2297 }
 0x5e7   :  { %v563_v7 = vmul.f32 %v2298_v6, %v561_v5  ;;  %v570_v11 = vsub.f32 1.0, %v2298_v6  ;;  %v576_v13 = vmul.f32 0.0, %v2298_v6 }
 0x5e9   :  { %565 = vrot.lane.b32.xlu1 %v563_v7, %s2424_s16 }
 0x65b   :  { %v566_v8 = vpop.permute.xlu1 %565 }
 0x65c   :  { %v568_v9 = vadd.f32 %v566_v8, %v502_v62 }
 0x65e   :  { %2299 = vtanh.f32 %v568_v9 }
 0x668   :  { %v2300_v10 = vpop.eup %2299 }
 0x669   :  { %572 = vrot.lane.b32.xlu1 %v2300_v10, %s2423_s14 }
 0x6db   :  { %v573_v12 = vpop.permute.xlu1 %572 }
 0x6dc   :  { %v575_v14 = vmul.f32 %v573_v12, %v570_v11 }
 0x6de   :  { %v2668_v17 = vadd.f32 %v576_v13, %v575_v14 }
 0x6e0   :  { %v586_v18 = vpack.c.bf16 %v2668_v17, %v2668_v17 }
 0x6e2   :  { %588 = vrot.lane.b32.xlu0 %v586_v18, %s2423_s14  ;;  %v747_v18 = vld [vmem:[#allocation2 + $0x6] sm:$0x3] }
 0x754   :  { %v589_v19 = vpop.permute.xlu0 %588 }
 0x755   :  { %2140 = vmatmul.mubr.msk.bf16.vlgmr.msra.gmra.mrb[12].mxu0 %vm188_vm4, %v589_v19 }
 0x756   :  { %2152 = vmatpush3.bf16.msra.mxu0 %v2596_v57  ;;  %2155 = vmatprep.mubr.msk.bf16.mxu0 %vm2420_vm0, %v2419_v3 }
 0x757   :  { %2153 = vmatprep.subr.bf16.mxu0 %v2419_v3 }
 0x75a   :  { %2154 = vmatpush3.bf16.msra.mxu0 %v2602_v59 }
 0x75b   :  { %2167 = vmatprep.subr.bf16.mxu0 %v2419_v3 }
 0x828   :  { %v627_v20 = vpop.f32.mrb[12].mxu0 }
 0x829   :  { %v639_v22 = vadd.f32 %v627_v20, %v2642_v33  ;;  %v2141_v23 = vpop.f32.mrb[13].mxu0  ;;  %v633_v27 = vadd.f32 %v627_v20, %v585_v26 }
 0x82a   :  { %v630_v24 = vpop.f32.mrb[14].mxu0 }
 0x82b   :  { %641 = vrot.lane.b32.xlu1 %v639_v22, %s2424_s16  ;;  %v2142_v25 = vpop.f32.mrb[15].mxu0  ;;  %v634_v28 = vsub.f32 0.0, %v633_v27 }
 0x82d   :  { %v635_v29 = vmul.f32 1.442695, %v634_v28 }
 0x82f   :  { %2301 = vpow2.f32 %v635_v29 }
 0x839   :  { %v2302_v30 = vpop.eup %2301 }
 0x83a   :  { %v637_v31 = vadd.f32 1.0, %v2302_v30 }
 0x83c   :  { %2303 = vrcp.f32 %v637_v31 }
 0x846   :  { %v2304_v32 = vpop.eup %2303 }
 0x847   :  { %v651_v41 = vsub.f32 1.0, %v2304_v32  ;;  %v657_v43 = vmul.f32 %v2304_v32, %v2668_v17 }
 0x89d   :  { %v642_v34 = vpop.permute.xlu1 %641 }
 0x89e   :  { %v644_v37 = vmul.f32 %v2304_v32, %v642_v34 }
 0x8a0   :  { %646 = vrot.lane.b32.xlu0 %v644_v37, %s2424_s16 }
 0x912   :  { %v647_v38 = vpop.permute.xlu0 %646 }
 0x913   :  { %v649_v39 = vadd.f32 %v647_v38, %v585_v26 }
 0x915   :  { %2305 = vtanh.f32 %v649_v39 }
 0x91f   :  { %v2306_v40 = vpop.eup %2305 }
 0x920   :  { %653 = vrot.lane.b32.xlu1 %v2306_v40, %s2423_s14 }
 0x992   :  { %v654_v42 = vpop.permute.xlu1 %653 }
 0x993   :  { %v656_v44 = vmul.f32 %v654_v42, %v651_v41 }
 0x995   :  { %v2685_v35 = vadd.f32 %v657_v43, %v656_v44 }
 0x997   :  { %v667_v45 = vpack.c.bf16 %v2685_v35, %v2685_v35 }
 0x999   :  { %669 = vrot.lane.b32.xlu0 %v667_v45, %s2423_s14 }
 0xa0b   :  { %v670_v46 = vpop.permute.xlu0 %669 }
 0xa0c   :  { %2148 = vmatmul.mubr.msk.bf16.vlgmr.msra.gmra.mrb[12].mxu1 %vm188_vm4, %v670_v46  ;;  %v828_v46 = vld [vmem:[#allocation2 + $0x8] sm:$0x3] }
 0xa0d   :  { %2160 = vmatpush3.bf16.msra.mxu1 %v2596_v57  ;;  %2163 = vmatprep.mubr.msk.bf16.mxu1 %vm2420_vm0, %v2419_v3 }
 0xa0e   :  { %2161 = vmatprep.subr.bf16.mxu1 %v2419_v3 }
 0xa11   :  { %2162 = vmatpush3.bf16.msra.mxu1 %v2602_v59 }
 0xa12   :  { %2175 = vmatprep.subr.bf16.mxu1 %v2419_v3 }
 0xadf   :  { %v708_v47 = vpop.f32.mrb[12].mxu1 }
 0xae0   :  { %v720_v48 = vadd.f32 %v708_v47, %v2642_v33  ;;  %v2149_v49 = vpop.f32.mrb[13].mxu1  ;;  %v714_v53 = vadd.f32 %v708_v47, %v666_v52 }
 0xae1   :  { %v711_v50 = vpop.f32.mrb[14].mxu1 }
 0xae2   :  { %722 = vrot.lane.b32.xlu1 %v720_v48, %s2424_s16  ;;  %v2150_v51 = vpop.f32.mrb[15].mxu1  ;;  %v715_v54 = vsub.f32 0.0, %v714_v53 }
 0xae4   :  { %v716_v55 = vmul.f32 1.442695, %v715_v54 }
 0xae6   :  { %2307 = vpow2.f32 %v716_v55 }
 0xaf0   :  { %v2308_v56 = vpop.eup %2307 }
 0xaf1   :  { %v718_v15 = vadd.f32 1.0, %v2308_v56 }
 0xaf3   :  { %2309 = vrcp.f32 %v718_v15 }
 0xafd   :  { %v2310_v36 = vpop.eup %2309 }
 0xafe   :  { %v732_v2 = vsub.f32 1.0, %v2310_v36  ;;  %v738_v5 = vmul.f32 %v2310_v36, %v2685_v35 }
 0xb54   :  { %v723_v58 = vpop.permute.xlu1 %722 }
 0xb55   :  { %v725_v62 = vmul.f32 %v2310_v36, %v723_v58 }
 0xb57   :  { %727 = vrot.lane.b32.xlu0 %v725_v62, %s2424_s16 }
 0xbc9   :  { %v728_v63 = vpop.permute.xlu0 %727 }
 0xbca   :  { %v730_v0 = vadd.f32 %v728_v63, %v666_v52 }
 0xbcc   :  { %2311 = vtanh.f32 %v730_v0 }
 0xbd6   :  { %v2312_v1 = vpop.eup %2311 }
 0xbd7   :  { %734 = vrot.lane.b32.xlu1 %v2312_v1, %s2423_s14 }
 0xc49   :  { %v735_v4 = vpop.permute.xlu1 %734 }
 0xc4a   :  { %v737_v6 = vmul.f32 %v735_v4, %v732_v2 }
 0xc4c   :  { %v2702_v7 = vadd.f32 %v738_v5, %v737_v6 }
 0xc4e   :  { %v748_v8 = vpack.c.bf16 %v2702_v7, %v2702_v7 }
 0xc50   :  { %750 = vrot.lane.b32.xlu0 %v748_v8, %s2423_s14 }
 0xcc2   :  { %v751_v9 = vpop.permute.xlu0 %750 }
 0xcc3   :  { %2156 = vmatmul.mubr.msk.bf16.vlgmr.msra.gmra.mrb[16].mxu0 %vm188_vm4, %v751_v9 }
 0xcc4   :  { %2168 = vmatpush3.bf16.msra.mxu0 %v2596_v57  ;;  %2171 = vmatprep.mubr.msk.bf16.mxu0 %vm2420_vm0, %v2419_v3 }
 0xcc5   :  { %2169 = vmatprep.subr.bf16.mxu0 %v2419_v3 }
 0xcc8   :  { %2170 = vmatpush3.bf16.msra.mxu0 %v2602_v59 }
 0xcc9   :  { %2183 = vmatprep.subr.bf16.mxu0 %v2419_v3 }
 0xd96   :  { %v789_v10 = vpop.f32.mrb[16].mxu0 }
 0xd97   :  { %v801_v11 = vadd.f32 %v789_v10, %v2642_v33  ;;  %v2157_v12 = vpop.f32.mrb[17].mxu0  ;;  %v795_v19 = vadd.f32 %v789_v10, %v747_v18  ;;  %v909_v10 = vld [vmem:[#allocation2 + $0xa] sm:$0x3] }
 0xd98   :  { %v792_v13 = vpop.f32.mrb[18].mxu0 }
 0xd99   :  { %803 = vrot.lane.b32.xlu1 %v801_v11, %s2424_s16  ;;  %v2158_v14 = vpop.f32.mrb[19].mxu0  ;;  %v796_v20 = vsub.f32 0.0, %v795_v19 }
 0xd9b   :  { %v797_v22 = vmul.f32 1.442695, %v796_v20 }
 0xd9d   :  { %2313 = vpow2.f32 %v797_v22 }
 0xda7   :  { %v2314_v23 = vpop.eup %2313 }
 0xda8   :  { %v799_v24 = vadd.f32 1.0, %v2314_v23 }
 0xdaa   :  { %2315 = vrcp.f32 %v799_v24 }
 0xdb4   :  { %v2316_v25 = vpop.eup %2315 }
 0xdb5   :  { %v813_v31 = vsub.f32 1.0, %v2316_v25  ;;  %v819_v34 = vmul.f32 %v2316_v25, %v2702_v7 }
 0xe0b   :  { %v804_v26 = vpop.permute.xlu1 %803 }
 0xe0c   :  { %v806_v27 = vmul.f32 %v2316_v25, %v804_v26 }
 0xe0e   :  { %808 = vrot.lane.b32.xlu0 %v806_v27, %s2424_s16 }
 0xe80   :  { %v809_v28 = vpop.permute.xlu0 %808 }
 0xe81   :  { %v811_v29 = vadd.f32 %v809_v28, %v747_v18 }
 0xe83   :  { %2317 = vtanh.f32 %v811_v29 }
 0xe8d   :  { %v2318_v30 = vpop.eup %2317 }
 0xe8e   :  { %815 = vrot.lane.b32.xlu1 %v2318_v30, %s2423_s14 }
 0xf00   :  { %v816_v32 = vpop.permute.xlu1 %815 }
 0xf01   :  { %v818_v37 = vmul.f32 %v816_v32, %v813_v31 }
 0xf03   :  { %v2719_v38 = vadd.f32 %v819_v34, %v818_v37 }
 0xf05   :  { %v829_v39 = vpack.c.bf16 %v2719_v38, %v2719_v38 }
 0xf07   :  { %831 = vrot.lane.b32.xlu0 %v829_v39, %s2423_s14 }
 0xf79   :  { %v832_v40 = vpop.permute.xlu0 %831 }
 0xf7a   :  { %2164 = vmatmul.mubr.msk.bf16.vlgmr.msra.gmra.mrb[16].mxu1 %vm188_vm4, %v832_v40  ;;  %v990_v40 = vld [vmem:[#allocation2 + $0xc] sm:$0x3] }
 0xf7b   :  { %2176 = vmatpush3.bf16.msra.mxu1 %v2596_v57  ;;  %2179 = vmatprep.mubr.msk.bf16.mxu1 %vm2420_vm0, %v2419_v3 }
 0xf7c   :  { %2177 = vmatprep.subr.bf16.mxu1 %v2419_v3 }
 0xf7f   :  { %2178 = vmatpush3.bf16.msra.mxu1 %v2602_v59 }
 0xf80   :  { %2191 = vmatprep.subr.bf16.mxu1 %v2419_v3 }
0x104d   :  { %v870_v41 = vpop.f32.mrb[16].mxu1 }
0x104e   :  { %v882_v42 = vadd.f32 %v870_v41, %v2642_v33  ;;  %v2165_v43 = vpop.f32.mrb[17].mxu1  ;;  %v876_v47 = vadd.f32 %v870_v41, %v828_v46 }
0x104f   :  { %v873_v44 = vpop.f32.mrb[18].mxu1 }
0x1050   :  { %884 = vrot.lane.b32.xlu1 %v882_v42, %s2424_s16  ;;  %v2166_v45 = vpop.f32.mrb[19].mxu1  ;;  %v877_v48 = vsub.f32 0.0, %v876_v47 }
0x1052   :  { %v878_v49 = vmul.f32 1.442695, %v877_v48 }
0x1054   :  { %2319 = vpow2.f32 %v878_v49 }
0x105e   :  { %v2320_v50 = vpop.eup %2319 }
0x105f   :  { %v880_v51 = vadd.f32 1.0, %v2320_v50 }
0x1061   :  { %2321 = vrcp.f32 %v880_v51 }
0x106b   :  { %v2322_v52 = vpop.eup %2321 }
0x106c   :  { %v894_v36 = vsub.f32 1.0, %v2322_v52  ;;  %v900_v62 = vmul.f32 %v2322_v52, %v2719_v38 }
0x10c2   :  { %v885_v53 = vpop.permute.xlu1 %884 }
0x10c3   :  { %v887_v54 = vmul.f32 %v2322_v52, %v885_v53 }
0x10c5   :  { %889 = vrot.lane.b32.xlu0 %v887_v54, %s2424_s16 }
0x1137   :  { %v890_v55 = vpop.permute.xlu0 %889 }
0x1138   :  { %v892_v56 = vadd.f32 %v890_v55, %v828_v46 }
0x113a   :  { %2323 = vtanh.f32 %v892_v56 }
0x1144   :  { %v2324_v15 = vpop.eup %2323 }
0x1145   :  { %896 = vrot.lane.b32.xlu1 %v2324_v15, %s2423_s14 }
0x11b7   :  { %v897_v58 = vpop.permute.xlu1 %896 }
0x11b8   :  { %v899_v63 = vmul.f32 %v897_v58, %v894_v36 }
0x11ba   :  { %v2736_v0 = vadd.f32 %v900_v62, %v899_v63 }
0x11bc   :  { %v910_v1 = vpack.c.bf16 %v2736_v0, %v2736_v0 }
0x11be   :  { %912 = vrot.lane.b32.xlu0 %v910_v1, %s2423_s14 }
0x1230   :  { %v913_v2 = vpop.permute.xlu0 %912 }
0x1231   :  { %2172 = vmatmul.mubr.msk.bf16.vlgmr.msra.gmra.mrb[20].mxu0 %vm188_vm4, %v913_v2 }
0x1232   :  { %2184 = vmatpush3.bf16.msra.mxu0 %v2596_v57  ;;  %2187 = vmatprep.mubr.msk.bf16.mxu0 %vm2420_vm0, %v2419_v3 }
0x1233   :  { %2185 = vmatprep.subr.bf16.mxu0 %v2419_v3 }
0x1236   :  { %2186 = vmatpush3.bf16.msra.mxu0 %v2602_v59 }
0x1237   :  { %2199 = vmatprep.subr.bf16.mxu0 %v2419_v3 }
0x1304   :  { %v951_v4 = vpop.f32.mrb[20].mxu0 }
0x1305   :  { %v963_v5 = vadd.f32 %v951_v4, %v2642_v33  ;;  %v2173_v6 = vpop.f32.mrb[21].mxu0  ;;  %v957_v11 = vadd.f32 %v951_v4, %v909_v10  ;;  %v1071_v4 = vld [vmem:[#allocation2 + $0xe] sm:$0x3] }
0x1306   :  { %v954_v8 = vpop.f32.mrb[22].mxu0 }
0x1307   :  { %965 = vrot.lane.b32.xlu1 %v963_v5, %s2424_s16  ;;  %v2174_v9 = vpop.f32.mrb[23].mxu0  ;;  %v958_v57 = vsub.f32 0.0, %v957_v11 }
0x1309   :  { %v959_v12 = vmul.f32 1.442695, %v958_v57 }
0x130b   :  { %2325 = vpow2.f32 %v959_v12 }
0x1315   :  { %v2326_v13 = vpop.eup %2325 }
0x1316   :  { %v961_v14 = vadd.f32 1.0, %v2326_v13 }
0x1318   :  { %2327 = vrcp.f32 %v961_v14 }
0x1322   :  { %v2328_v18 = vpop.eup %2327 }
0x1323   :  { %v975_v24 = vsub.f32 1.0, %v2328_v18  ;;  %v981_v26 = vmul.f32 %v2328_v18, %v2736_v0 }
0x1379   :  { %v966_v59 = vpop.permute.xlu1 %965 }
0x137a   :  { %v968_v19 = vmul.f32 %v2328_v18, %v966_v59 }
0x137c   :  { %970 = vrot.lane.b32.xlu0 %v968_v19, %s2424_s16  ;;  %v66_v19 = vld [vmem:[%s2982_s4 + $0x70] sm:$0xff] }
0x13ee   :  { %v971_v20 = vpop.permute.xlu0 %970 }
0x13ef   :  { %v973_v22 = vadd.f32 %v971_v20, %v909_v10 }
0x13f1   :  { %2329 = vtanh.f32 %v973_v22  ;;  %v67_v22 = vld [vmem:[%s2982_s4 + $0x78] sm:$0xff] }
0x13fb   :  { %v2330_v23 = vpop.eup %2329 }
0x13fc   :  { %977 = vrot.lane.b32.xlu1 %v2330_v23, %s2423_s14 }
0x146e   :  { %v978_v25 = vpop.permute.xlu1 %977 }
0x146f   :  { %v980_v27 = vmul.f32 %v978_v25, %v975_v24  ;;  %v2804_v24 = vpack.c.bf16 %v67_v22, %v66_v19 }
0x1471   :  { %v2753_v28 = vadd.f32 %v981_v26, %v980_v27  ;;  %v63_v26 = vld [vmem:[%s2982_s4 + $0x58] sm:$0xff] }
0x1473   :  { %v991_v29 = vpack.c.bf16 %v2753_v28, %v2753_v28 }
0x1475   :  { %993 = vrot.lane.b32.xlu0 %v991_v29, %s2423_s14 }
0x14e7   :  { %v994_v30 = vpop.permute.xlu0 %993 }
0x14e8   :  { %2180 = vmatmul.mubr.msk.bf16.vlgmr.msra.gmra.mrb[20].mxu1 %vm188_vm4, %v994_v30 }
0x14e9   :  { %2195 = vmatprep.mubr.msk.bf16.mxu1 %vm2420_vm0, %v2419_v3 }
0x15bb   :  { %v1032_v31 = vpop.f32.mrb[20].mxu1 }
0x15bc   :  { %v1044_v32 = vadd.f32 %v1032_v31, %v2642_v33  ;;  %v2181_v34 = vpop.f32.mrb[21].mxu1  ;;  %v1038_v41 = vadd.f32 %v1032_v31, %v990_v40 }
0x15bd   :  { %v1035_v37 = vpop.f32.mrb[22].mxu1 }
0x15be   :  { %1046 = vrot.lane.b32.xlu1 %v1044_v32, %s2424_s16  ;;  %v2182_v39 = vpop.f32.mrb[23].mxu1  ;;  %v1039_v42 = vsub.f32 0.0, %v1038_v41 }
0x15bf   :  { %v1209_v39 = vrot.slane %v2633_v16, %v2557_v61 }
0x15c0   :  { %v1040_v43 = vmul.f32 1.442695, %v1039_v42 }
0x15c2   :  { %2331 = vpow2.f32 %v1040_v43 }
0x15cc   :  { %v2332_v44 = vpop.eup %2331 }
0x15cd   :  { %v1042_v45 = vadd.f32 1.0, %v2332_v44 }
0x15cf   :  { %2333 = vrcp.f32 %v1042_v45 }
0x15d9   :  { %v2334_v46 = vpop.eup %2333 }
0x15da   :  { %v1056_v52 = vsub.f32 1.0, %v2334_v46  ;;  %v1062_v54 = vmul.f32 %v2334_v46, %v2753_v28 }
0x1630   :  { %v1047_v47 = vpop.permute.xlu1 %1046 }
0x1631   :  { %v1049_v48 = vmul.f32 %v2334_v46, %v1047_v47 }
0x1633   :  { %1051 = vrot.lane.b32.xlu0 %v1049_v48, %s2424_s16 }
0x16a5   :  { %v1052_v49 = vpop.permute.xlu0 %1051 }
0x16a6   :  { %v1054_v50 = vadd.f32 %v1052_v49, %v990_v40 }
0x16a8   :  { %2335 = vtanh.f32 %v1054_v50 }
0x16b2   :  { %v2336_v51 = vpop.eup %2335 }
0x16b3   :  { %1058 = vrot.lane.b32.xlu1 %v2336_v51, %s2423_s14 }
0x1725   :  { %v1059_v53 = vpop.permute.xlu1 %1058 }
0x1726   :  { %v1061_v55 = vmul.f32 %v1059_v53, %v1056_v52 }
0x1728   :  { %v2766_v56 = vadd.f32 %v1062_v54, %v1061_v55 }
0x172a   :  { %v1072_v15 = vpack.c.bf16 %v2766_v56, %v2766_v56 }
0x172c   :  { %1074 = vrot.lane.b32.xlu0 %v1072_v15, %s2423_s14 }
0x179e   :  { %v1075_v36 = vpop.permute.xlu0 %1074 }
0x179f   :  { %2188 = vmatmul.mubr.msk.bf16.vlgmr.msra.gmra.mrb[24].mxu0 %vm188_vm4, %v1075_v36 }
0x17a0   :  { %2203 = vmatprep.mubr.msk.bf16.mxu0 %vm2420_vm0, %v2419_v3 }
0x1872   :  { %v1113_v58 = vpop.f32.mrb[24].mxu0 }
0x1873   :  { %v1125_v62 = vadd.f32 %v1113_v58, %v2642_v33  ;;  %v2189_v63 = vpop.f32.mrb[25].mxu0  ;;  %v1119_v5 = vadd.f32 %v1113_v58, %v1071_v4 }
0x1874   :  { %v1116_v1 = vpop.f32.mrb[26].mxu0 }
0x1875   :  { %1127 = vrot.lane.b32.xlu1 %v1125_v62, %s2424_s16  ;;  %v2190_v2 = vpop.f32.mrb[27].mxu0  ;;  %v1120_v6 = vsub.f32 0.0, %v1119_v5 }
0x1877   :  { %v1121_v8 = vmul.f32 1.442695, %v1120_v6 }
0x1879   :  { %2337 = vpow2.f32 %v1121_v8 }
0x1883   :  { %v2338_v9 = vpop.eup %2337 }
0x1884   :  { %v1123_v10 = vadd.f32 1.0, %v2338_v9 }
0x1886   :  { %2339 = vrcp.f32 %v1123_v10 }
0x1890   :  { %v2340_v11 = vpop.eup %2339 }
0x1891   :  { %v1143_v30 = vmul.f32 %v2340_v11, %v2766_v56 }
0x18e7   :  { %v1128_v57 = vpop.permute.xlu1 %1127 }
0x18e8   :  { %v1130_v12 = vmul.f32 %v2340_v11, %v1128_v57 }
0x18ea   :  { %1132 = vrot.lane.b32.xlu0 %v1130_v12, %s2424_s16 }
0x18ee   :  { %579 = vrot.lane.b32.xlu0 %v2668_v17, %s2423_s14 }
0x18f2   :  { %741 = vrot.lane.b32.xlu0 %v2702_v7, %s2423_s14  ;;  %v64_v7 = vld [vmem:[%s2982_s4 + $0x60] sm:$0xff] }
0x18f6   :  { %903 = vrot.lane.b32.xlu0 %v2736_v0, %s2423_s14  ;;  %v65_v0 = vld [vmem:[%s2982_s4 + $0x68] sm:$0xff] }
0x18f7   :  { %v2798_v20 = vpack.c.bf16 %v65_v0, %v64_v7 }
0x18f9   :  { %2200 = vmatpush3.bf16.msra.mxu0 %v2798_v20 }
0x18fa   :  { %1065 = vrot.lane.b32.xlu0 %v2766_v56, %s2423_s14  ;;  %2201 = vmatprep.subr.bf16.mxu0 %v2419_v3 }
0x18fd   :  { %2202 = vmatpush3.bf16.msra.mxu0 %v2804_v24 }
0x18fe   :  { %2215 = vmatprep.subr.bf16.mxu0 %v2419_v3  ;;  %1356 = vrot.lane.b32.xlu0 %v1209_v39, %s2423_s14 }
0x1900   :  { %2204 = vmatmul.mubr.bf16.vlgmr.msra.gmra.mrb[28].mxu0 %v2422_v60  ;;  %v61_v60 = vld [vmem:[%s2982_s4 + $0x48] sm:$0xff] }
0x1901   :  { %2216 = vmatpush3.bf16.msra.mxu0 %v2798_v20  ;;  %2219 = vmatprep.mubr.msk.bf16.mxu0 %vm2420_vm0, %v2419_v3 }
0x1902   :  { %2217 = vmatprep.subr.bf16.mxu0 %v2419_v3 }
0x1905   :  { %2218 = vmatpush3.bf16.msra.mxu0 %v2804_v24 }
0x1906   :  { %2231 = vmatprep.subr.bf16.mxu0 %v2419_v3 }
0x195c   :  { %v1133_v33 = vpop.permute.xlu0 %1132 }
0x195d   :  { %v1135_v13 = vadd.f32 %v1133_v33, %v1071_v4 }
0x195f   :  { %2341 = vtanh.f32 %v1135_v13 }
0x1960   :  { %v580_v14 = vpop.permute.xlu0 %579 }
0x1961   :  { %583 = vst.msk [vmem:[#allocation3] sm:$0x3] %vm582_vm10, %v580_v14 }
0x1964   :  { %v742_v18 = vpop.permute.xlu0 %741 }
0x1965   :  { %745 = vst.msk [vmem:[#allocation3 + $0x4] sm:$0x3] %vm582_vm10, %v742_v18 }
0x1968   :  { %v904_v17 = vpop.permute.xlu0 %903  ;;  %v1151_v16 = vld [vmem:[#allocation3] sm:$0x3] }
0x1969   :  { %v2342_v59 = vpop.eup %2341  ;;  %907 = vst.msk [vmem:[#allocation3 + $0x8] sm:$0x3] %vm582_vm10, %v904_v17 }
0x196a   :  { %1139 = vrot.lane.b32.xlu1 %v2342_v59, %s2423_s14 }
0x196c   :  { %v1066_v23 = vpop.permute.xlu0 %1065  ;;  %v1153_v48 = vld [vmem:[#allocation3 + $0x4] sm:$0x3] }
0x196d   :  { %1069 = vst.msk [vmem:[#allocation3 + $0xc] sm:$0x3] %vm582_vm10, %v1066_v23 }
0x196e   :  { %660 = vrot.lane.b32.xlu1 %v2685_v35, %s2423_s14  ;;  %v60_v35 = vld [vmem:[%s2982_s4 + $0x40] sm:$0xff] }
0x196f   :  { %v1204_v25 = vpack.c.bf16 %v61_v60, %v60_v35 }
0x1970   :  { %v2846_v61 = vpop.permute.xlu0 %1356  ;;  %v1155_v51 = vld [vmem:[#allocation3 + $0x8] sm:$0x3] }
0x1971   :  { %2192 = vmatpush3.bf16.msra.mxu1 %v1204_v25 }
0x1972   :  { %822 = vrot.lane.b32.xlu1 %v2719_v38, %s2423_s14  ;;  %v62_v38 = vld [vmem:[%s2982_s4 + $0x50] sm:$0xff]  ;;  %2193 = vmatprep.subr.bf16.mxu1 %v2419_v3 }
0x1973   :  { %v1205_v27 = vpack.c.bf16 %v63_v26, %v62_v38 }
0x1974   :  { %v1157_v55 = vld [vmem:[#allocation3 + $0xc] sm:$0x3] }
0x1975   :  { %2194 = vmatpush3.bf16.msra.mxu1 %v1205_v27 }
0x1976   :  { %984 = vrot.lane.b32.xlu1 %v2753_v28, %s2423_s14  ;;  %v1137_v28 = vsub.f32 1.0, %v2340_v11  ;;  %2207 = vmatprep.subr.bf16.mxu1 %v2419_v3 }
0x19d3   :  { %v1343_v41 = vpop.f32.mrb[28].mxu0 }
0x19d4   :  { %v2205_v42 = vpop.f32.mrb[29].mxu0  ;;  %v1359_v52 = vadd.f32 %v2846_v61, %v1343_v41 }
0x19d5   :  { %v1346_v43 = vpop.f32.mrb[30].mxu0 }
0x19d6   :  { %v2206_v44 = vpop.f32.mrb[31].mxu0 }
0x19dc   :  { %v1140_v29 = vpop.permute.xlu1 %1139 }
0x19dd   :  { %v1142_v31 = vmul.f32 %v1140_v29, %v1137_v28 }
0x19df   :  { %v1144_v32 = vadd.f32 %v1143_v30, %v1142_v31 }
0x19e0   :  { %v661_v34 = vpop.permute.xlu1 %660 }
0x19e1   :  { %664 = vst.msk [vmem:[#allocation3 + $0x2] sm:$0x3] %vm582_vm10, %v661_v34  ;;  %1146 = vrot.lane.b32.xlu1 %v1144_v32, %s2423_s14 }
0x19e4   :  { %v823_v37 = vpop.permute.xlu1 %822 }
0x19e5   :  { %826 = vst.msk [vmem:[#allocation3 + $0x6] sm:$0x3] %vm582_vm10, %v823_v37  ;;  %1361 = vrot.lane.b32.xlu1 %v1359_v52, %s2424_s16 }
0x19e8   :  { %v985_v40 = vpop.permute.xlu1 %984  ;;  %v1152_v47 = vld [vmem:[#allocation3 + $0x2] sm:$0x3] }
0x19e9   :  { %988 = vst.msk [vmem:[#allocation3 + $0xa] sm:$0x3] %vm582_vm10, %v985_v40  ;;  %v1167_v53 = vcombine.low %v1151_v16, %v1152_v47 }
0x19eb   :  { %v1175_v58 = vrot.slane %v1167_v53, %v2507_v21 }
0x19ec   :  { %v1154_v46 = vld [vmem:[#allocation3 + $0x6] sm:$0x3] }
0x19ed   :  { %v1168_v50 = vcombine.low %v1153_v48, %v1154_v46 }
0x19ef   :  { %v1182_v15 = vrot.slane %v1168_v50, %v2507_v21 }
0x19f0   :  { %v1156_v49 = vld [vmem:[#allocation3 + $0xa] sm:$0x3] }
0x19f1   :  { %v1184_v54 = vcombine.low %v1155_v51, %v1156_v49  ;;  %v1183_v1 = vcombine.low %v1175_v58, %v1182_v15 }
0x19f3   :  { %v1192_v62 = vrot.slane %v1184_v54, %v2507_v21 }
0x1a53   :  { %v1147_v45 = vpop.permute.xlu1 %1146 }
0x1a54   :  { %1150 = vst.msk [vmem:[#allocation3 + $0xe] sm:$0x3] %vm582_vm10, %v1147_v45 }
0x1a5b   :  { %v1158_v56 = vld [vmem:[#allocation3 + $0xe] sm:$0x3] }
0x1a5c   :  { %v1185_v36 = vcombine.low %v1157_v55, %v1158_v56 }
0x1a5e   :  { %v1199_v63 = vrot.slane %v1185_v36, %v2507_v21 }
0x1a60   :  { %v1200_v2 = vcombine.low %v1192_v62, %v1199_v63 }
0x1a62   :  { %v1203_v4 = vpack.c.bf16 %v1200_v2, %v1183_v1 }
0x1a64   :  { %2196 = vmatmul.mubr.msk.bf16.vlgmr.msra.gmra.mrb[24].mxu1 %vm188_vm4, %v1203_v4 }
0x1a65   :  { %2208 = vmatpush3.bf16.msra.mxu1 %v2798_v20  ;;  %2211 = vmatprep.mubr.msk.bf16.mxu1 %vm2420_vm0, %v2419_v3 }
0x1a66   :  { %2209 = vmatprep.subr.bf16.mxu1 %v2419_v3 }
0x1a69   :  { %2210 = vmatpush3.bf16.msra.mxu1 %v2804_v24 }
0x1a6a   :  { %2223 = vmatprep.subr.bf16.mxu1 %v2419_v3 }
0x1b37   :  { %v1247_v5 = vpop.f32.mrb[24].mxu1 }
0x1b38   :  { %v1248_v6 = vadd.f32 %v1247_v5, %v1209_v39  ;;  %v2197_v8 = vpop.f32.mrb[25].mxu1 }
0x1b39   :  { %v1250_v9 = vpop.f32.mrb[26].mxu1 }
0x1b3a   :  { %v1256_v10 = vcombine.high %v1248_v6, %v1248_v6  ;;  %v1263_v11 = vrot.slane %v1248_v6, %v2507_v21  ;;  %v1251_v57 = vadd.f32 %v1250_v9, %v1209_v39  ;;  %v2198_v12 = vpop.f32.mrb[27].mxu1 }
0x1b3c   :  { %v1270_v33 = vrot.slane %v1256_v10, %v2507_v21  ;;  %v1271_v13 = vcombine.high %v1263_v11, %v1263_v11  ;;  %1298 = vst.msk [vmem:[#allocation2] sm:$0x3] %vm493_vm9, %v1263_v11  ;;  %v1273_v14 = vcombine.high %v1251_v57, %v1251_v57  ;;  %v1280_v18 = vrot.slane %v1251_v57, %v2507_v21 }
0x1b3e   :  { %v1272_v17 = vcombine.high %v1270_v33, %v1270_v33  ;;  %1299 = vst.msk [vmem:[#allocation2 + $0x2] sm:$0x3] %vm493_vm9, %v1271_v13  ;;  %1300 = vst.msk [vmem:[#allocation2 + $0x4] sm:$0x3] %vm493_vm9, %v1270_v33  ;;  %v1287_v59 = vrot.slane %v1273_v14, %v2507_v21  ;;  %v1288_v7 = vcombine.high %v1280_v18, %v1280_v18  ;;  %v1362_v21 = vpop.permute.xlu1 %1361 }
0x1b3f   :  { %1302 = vst.msk [vmem:[#allocation2 + $0x8] sm:$0x3] %vm493_vm9, %v1280_v18 }
0x1b40   :  { %1301 = vst.msk [vmem:[#allocation2 + $0x6] sm:$0x3] %vm493_vm9, %v1272_v17  ;;  %v1289_v0 = vcombine.high %v1287_v59, %v1287_v59  ;;  %1303 = vst.msk [vmem:[#allocation2 + $0xa] sm:$0x3] %vm493_vm9, %v1288_v7 }
0x1b41   :  { %1304 = vst.msk [vmem:[#allocation2 + $0xc] sm:$0x3] %vm493_vm9, %v1287_v59 }
0x1b42   :  { %1305 = vst.msk [vmem:[#allocation2 + $0xe] sm:$0x3] %vm493_vm9, %v1289_v0 }
0x1b43   :  { %v1306_v19 = vld [vmem:[#allocation2] sm:$0x3] }
0x1b44   :  { %v1349_v22 = vadd.f32 %v1343_v41, %v1306_v19 }
0x1b45   :  { %v1379_v46 = vld [vmem:[#allocation2 + $0x2] sm:$0x3]  ;;  %v1453_v10 = vld [vmem:[#allocation2 + $0x4] sm:$0x3] }
0x1b46   :  { %v1350_v23 = vsub.f32 0.0, %v1349_v22 }
0x1b48   :  { %v1351_v35 = vmul.f32 1.442695, %v1350_v23 }
0x1b4a   :  { %2343 = vpow2.f32 %v1351_v35 }
0x1b54   :  { %v2344_v60 = vpop.eup %2343 }
0x1b55   :  { %v1353_v38 = vadd.f32 1.0, %v2344_v60 }
0x1b57   :  { %2345 = vrcp.f32 %v1353_v38 }
0x1b61   :  { %v2346_v25 = vpop.eup %2345 }
0x1b62   :  { %v1364_v26 = vmul.f32 %v2346_v25, %v1362_v21  ;;  %v1371_v30 = vsub.f32 1.0, %v2346_v25  ;;  %v1377_v32 = vmul.f32 0.0, %v2346_v25 }
0x1b64   :  { %1366 = vrot.lane.b32.xlu0 %v1364_v26, %s2424_s16 }
0x1bd6   :  { %v1367_v27 = vpop.permute.xlu0 %1366 }
0x1bd7   :  { %v1369_v28 = vadd.f32 %v1367_v27, %v1306_v19 }
0x1bd9   :  { %2347 = vtanh.f32 %v1369_v28 }
0x1be3   :  { %v2348_v29 = vpop.eup %2347 }
0x1be4   :  { %1373 = vrot.lane.b32.xlu1 %v2348_v29, %s2423_s14 }
0x1c56   :  { %v1374_v31 = vpop.permute.xlu1 %1373 }
0x1c57   :  { %v1376_v34 = vmul.f32 %v1374_v31, %v1371_v30  ;;  %v1527_v30 = vld [vmem:[#allocation2 + $0x6] sm:$0x3] }
0x1c59   :  { %v1378_v37 = vadd.f32 %v1377_v32, %v1376_v34 }
0x1c5b   :  { %v1380_v39 = vpack.c.bf16 %v1378_v37, %v1378_v37 }
0x1c5d   :  { %1382 = vrot.lane.b32.xlu0 %v1380_v39, %s2423_s14 }
0x1ccf   :  { %v1383_v40 = vpop.permute.xlu0 %1382 }
0x1cd0   :  { %2212 = vmatmul.mubr.msk.bf16.vlgmr.msra.gmra.mrb[28].mxu1 %vm188_vm4, %v1383_v40 }
0x1cd1   :  { %2224 = vmatpush3.bf16.msra.mxu1 %v2798_v20  ;;  %2227 = vmatprep.mubr.msk.bf16.mxu1 %vm2420_vm0, %v2419_v3 }
0x1cd2   :  { %2225 = vmatprep.subr.bf16.mxu1 %v2419_v3 }
0x1cd5   :  { %2226 = vmatpush3.bf16.msra.mxu1 %v2804_v24 }
0x1cd6   :  { %2239 = vmatprep.subr.bf16.mxu1 %v2419_v3 }
0x1da3   :  { %v1421_v41 = vpop.f32.mrb[28].mxu1 }
0x1da4   :  { %v1433_v42 = vadd.f32 %v1421_v41, %v2846_v61  ;;  %v2213_v43 = vpop.f32.mrb[29].mxu1  ;;  %v1427_v47 = vadd.f32 %v1421_v41, %v1379_v46 }
0x1da5   :  { %v1424_v44 = vpop.f32.mrb[30].mxu1 }
0x1da6   :  { %1435 = vrot.lane.b32.xlu1 %v1433_v42, %s2424_s16  ;;  %v2214_v45 = vpop.f32.mrb[31].mxu1  ;;  %v1428_v48 = vsub.f32 0.0, %v1427_v47 }
0x1da8   :  { %v1429_v49 = vmul.f32 1.442695, %v1428_v48 }
0x1daa   :  { %2349 = vpow2.f32 %v1429_v49 }
0x1db4   :  { %v2350_v50 = vpop.eup %2349 }
0x1db5   :  { %v1431_v16 = vadd.f32 1.0, %v2350_v50 }
0x1db7   :  { %2351 = vrcp.f32 %v1431_v16 }
0x1dc1   :  { %v2352_v51 = vpop.eup %2351 }
0x1dc2   :  { %v1445_v15 = vsub.f32 1.0, %v2352_v51  ;;  %v1451_v58 = vmul.f32 %v2352_v51, %v1378_v37 }
0x1e18   :  { %v1436_v52 = vpop.permute.xlu1 %1435 }
0x1e19   :  { %v1438_v53 = vmul.f32 %v2352_v51, %v1436_v52 }
0x1e1b   :  { %1440 = vrot.lane.b32.xlu0 %v1438_v53, %s2424_s16 }
0x1e8d   :  { %v1441_v54 = vpop.permute.xlu0 %1440 }
0x1e8e   :  { %v1443_v55 = vadd.f32 %v1441_v54, %v1379_v46 }
0x1e90   :  { %2353 = vtanh.f32 %v1443_v55 }
0x1e9a   :  { %v2354_v56 = vpop.eup %2353 }
0x1e9b   :  { %1447 = vrot.lane.b32.xlu1 %v2354_v56, %s2423_s14 }
0x1f0d   :  { %v1448_v36 = vpop.permute.xlu1 %1447 }
0x1f0e   :  { %v1450_v62 = vmul.f32 %v1448_v36, %v1445_v15  ;;  %v1601_v15 = vld [vmem:[#allocation2 + $0x8] sm:$0x3] }
0x1f10   :  { %v1452_v63 = vadd.f32 %v1451_v58, %v1450_v62 }
0x1f12   :  { %v1454_v1 = vpack.c.bf16 %v1452_v63, %v1452_v63 }
0x1f14   :  { %1456 = vrot.lane.b32.xlu0 %v1454_v1, %s2423_s14 }
0x1f86   :  { %v1457_v2 = vpop.permute.xlu0 %1456 }
0x1f87   :  { %2220 = vmatmul.mubr.msk.bf16.vlgmr.msra.gmra.mrb[32].mxu0 %vm188_vm4, %v1457_v2 }
0x1f88   :  { %2232 = vmatpush3.bf16.msra.mxu0 %v2798_v20  ;;  %2235 = vmatprep.mubr.msk.bf16.mxu0 %vm2420_vm0, %v2419_v3 }
0x1f89   :  { %2233 = vmatprep.subr.bf16.mxu0 %v2419_v3 }
0x1f8c   :  { %2234 = vmatpush3.bf16.msra.mxu0 %v2804_v24 }
0x1f8d   :  { %2247 = vmatprep.subr.bf16.mxu0 %v2419_v3 }
0x205a   :  { %v1495_v4 = vpop.f32.mrb[32].mxu0 }
0x205b   :  { %v1507_v5 = vadd.f32 %v1495_v4, %v2846_v61  ;;  %v2221_v6 = vpop.f32.mrb[33].mxu0  ;;  %v1501_v11 = vadd.f32 %v1495_v4, %v1453_v10 }
0x205c   :  { %v1498_v8 = vpop.f32.mrb[34].mxu0 }
0x205d   :  { %1509 = vrot.lane.b32.xlu1 %v1507_v5, %s2424_s16  ;;  %v2222_v9 = vpop.f32.mrb[35].mxu0  ;;  %v1502_v57 = vsub.f32 0.0, %v1501_v11 }
0x205f   :  { %v1503_v12 = vmul.f32 1.442695, %v1502_v57 }
0x2061   :  { %2355 = vpow2.f32 %v1503_v12 }
0x206b   :  { %v2356_v33 = vpop.eup %2355 }
0x206c   :  { %v1505_v13 = vadd.f32 1.0, %v2356_v33 }
0x206e   :  { %2357 = vrcp.f32 %v1505_v13 }
0x2078   :  { %v2358_v14 = vpop.eup %2357 }
0x2079   :  { %v1519_v19 = vsub.f32 1.0, %v2358_v14  ;;  %v1525_v23 = vmul.f32 %v2358_v14, %v1452_v63 }
0x20cf   :  { %v1510_v18 = vpop.permute.xlu1 %1509 }
0x20d0   :  { %v1512_v17 = vmul.f32 %v2358_v14, %v1510_v18 }
0x20d2   :  { %1514 = vrot.lane.b32.xlu0 %v1512_v17, %s2424_s16 }
0x2144   :  { %v1515_v59 = vpop.permute.xlu0 %1514 }
0x2145   :  { %v1517_v7 = vadd.f32 %v1515_v59, %v1453_v10 }
0x2147   :  { %2359 = vtanh.f32 %v1517_v7 }
0x2151   :  { %v2360_v0 = vpop.eup %2359 }
0x2152   :  { %1521 = vrot.lane.b32.xlu1 %v2360_v0, %s2423_s14 }
0x21c4   :  { %v1522_v22 = vpop.permute.xlu1 %1521 }
0x21c5   :  { %v1524_v35 = vmul.f32 %v1522_v22, %v1519_v19  ;;  %v1675_v19 = vld [vmem:[#allocation2 + $0xa] sm:$0x3] }
0x21c7   :  { %v1526_v60 = vadd.f32 %v1525_v23, %v1524_v35 }
0x21c9   :  { %v1528_v38 = vpack.c.bf16 %v1526_v60, %v1526_v60 }
0x21cb   :  { %1530 = vrot.lane.b32.xlu0 %v1528_v38, %s2423_s14 }
0x223d   :  { %v1531_v21 = vpop.permute.xlu0 %1530 }
0x223e   :  { %2228 = vmatmul.mubr.msk.bf16.vlgmr.msra.gmra.mrb[32].mxu1 %vm188_vm4, %v1531_v21 }
0x223f   :  { %2240 = vmatpush3.bf16.msra.mxu1 %v2798_v20  ;;  %2243 = vmatprep.mubr.msk.bf16.mxu1 %vm2420_vm0, %v2419_v3 }
0x2240   :  { %2241 = vmatprep.subr.bf16.mxu1 %v2419_v3 }
0x2243   :  { %2242 = vmatpush3.bf16.msra.mxu1 %v2804_v24 }
0x2244   :  { %2255 = vmatprep.subr.bf16.mxu1 %v2419_v3 }
0x2311   :  { %v1569_v25 = vpop.f32.mrb[32].mxu1 }
0x2312   :  { %v1581_v26 = vadd.f32 %v1569_v25, %v2846_v61  ;;  %v2229_v27 = vpop.f32.mrb[33].mxu1  ;;  %v1575_v31 = vadd.f32 %v1569_v25, %v1527_v30 }
0x2313   :  { %v1572_v28 = vpop.f32.mrb[34].mxu1 }
0x2314   :  { %1583 = vrot.lane.b32.xlu1 %v1581_v26, %s2424_s16  ;;  %v2230_v29 = vpop.f32.mrb[35].mxu1  ;;  %v1576_v32 = vsub.f32 0.0, %v1575_v31 }
0x2316   :  { %v1577_v34 = vmul.f32 1.442695, %v1576_v32 }
0x2318   :  { %2361 = vpow2.f32 %v1577_v34 }
0x2322   :  { %v2362_v37 = vpop.eup %2361 }
0x2323   :  { %v1579_v39 = vadd.f32 1.0, %v2362_v37 }
0x2325   :  { %2363 = vrcp.f32 %v1579_v39 }
0x232f   :  { %v2364_v40 = vpop.eup %2363 }
0x2330   :  { %v1593_v46 = vsub.f32 1.0, %v2364_v40  ;;  %v1599_v48 = vmul.f32 %v2364_v40, %v1526_v60 }
0x2386   :  { %v1584_v41 = vpop.permute.xlu1 %1583 }
0x2387   :  { %v1586_v42 = vmul.f32 %v2364_v40, %v1584_v41 }
0x2389   :  { %1588 = vrot.lane.b32.xlu0 %v1586_v42, %s2424_s16 }
0x23fb   :  { %v1589_v43 = vpop.permute.xlu0 %1588 }
0x23fc   :  { %v1591_v44 = vadd.f32 %v1589_v43, %v1527_v30 }
0x23fe   :  { %2365 = vtanh.f32 %v1591_v44  ;;  %v1749_v44 = vld [vmem:[#allocation2 + $0xc] sm:$0x3] }
0x2408   :  { %v2366_v45 = vpop.eup %2365 }
0x2409   :  { %1595 = vrot.lane.b32.xlu1 %v2366_v45, %s2423_s14 }
0x247b   :  { %v1596_v47 = vpop.permute.xlu1 %1595 }
0x247c   :  { %v1598_v49 = vmul.f32 %v1596_v47, %v1593_v46 }
0x247e   :  { %v1600_v50 = vadd.f32 %v1599_v48, %v1598_v49 }
0x2480   :  { %v1602_v16 = vpack.c.bf16 %v1600_v50, %v1600_v50 }
0x2482   :  { %1604 = vrot.lane.b32.xlu0 %v1602_v16, %s2423_s14 }
0x24f4   :  { %v1605_v51 = vpop.permute.xlu0 %1604 }
0x24f5   :  { %2236 = vmatmul.mubr.msk.bf16.vlgmr.msra.gmra.mrb[36].mxu0 %vm188_vm4, %v1605_v51 }
0x24f6   :  { %2248 = vmatpush3.bf16.msra.mxu0 %v2798_v20  ;;  %2251 = vmatprep.mubr.msk.bf16.mxu0 %vm2420_vm0, %v2419_v3 }
0x24f7   :  { %2249 = vmatprep.subr.bf16.mxu0 %v2419_v3 }
0x24fa   :  { %2250 = vmatpush3.bf16.msra.mxu0 %v2804_v24 }
0x24fb   :  { %2263 = vmatprep.subr.bf16.mxu0 %v2419_v3 }
0x25c8   :  { %v1643_v52 = vpop.f32.mrb[36].mxu0 }
0x25c9   :  { %v1655_v53 = vadd.f32 %v1643_v52, %v2846_v61  ;;  %v2237_v54 = vpop.f32.mrb[37].mxu0  ;;  %v1649_v36 = vadd.f32 %v1643_v52, %v1601_v15 }
0x25ca   :  { %v1646_v55 = vpop.f32.mrb[38].mxu0 }
0x25cb   :  { %1657 = vrot.lane.b32.xlu1 %v1655_v53, %s2424_s16  ;;  %v2238_v56 = vpop.f32.mrb[39].mxu0  ;;  %v1650_v58 = vsub.f32 0.0, %v1649_v36 }
0x25cd   :  { %v1651_v62 = vmul.f32 1.442695, %v1650_v58 }
0x25cf   :  { %2367 = vpow2.f32 %v1651_v62 }
0x25d9   :  { %v2368_v63 = vpop.eup %2367 }
0x25da   :  { %v1653_v1 = vadd.f32 1.0, %v2368_v63 }
0x25dc   :  { %2369 = vrcp.f32 %v1653_v1 }
0x25e6   :  { %v2370_v2 = vpop.eup %2369 }
0x25e7   :  { %v1667_v10 = vsub.f32 1.0, %v2370_v2  ;;  %v1673_v57 = vmul.f32 %v2370_v2, %v1600_v50 }
0x263d   :  { %v1658_v4 = vpop.permute.xlu1 %1657 }
0x263e   :  { %v1660_v5 = vmul.f32 %v2370_v2, %v1658_v4 }
0x2640   :  { %1662 = vrot.lane.b32.xlu0 %v1660_v5, %s2424_s16 }
0x26b2   :  { %v1663_v6 = vpop.permute.xlu0 %1662 }
0x26b3   :  { %v1665_v8 = vadd.f32 %v1663_v6, %v1601_v15 }
0x26b5   :  { %2371 = vtanh.f32 %v1665_v8  ;;  %v1823_v8 = vld [vmem:[#allocation2 + $0xe] sm:$0x3] }
0x26bf   :  { %v2372_v9 = vpop.eup %2371 }
0x26c0   :  { %1669 = vrot.lane.b32.xlu1 %v2372_v9, %s2423_s14 }
0x2732   :  { %v1670_v11 = vpop.permute.xlu1 %1669 }
0x2733   :  { %v1672_v12 = vmul.f32 %v1670_v11, %v1667_v10 }
0x2735   :  { %v1674_v33 = vadd.f32 %v1673_v57, %v1672_v12 }
0x2737   :  { %v1676_v13 = vpack.c.bf16 %v1674_v33, %v1674_v33 }
0x2739   :  { %1678 = vrot.lane.b32.xlu0 %v1676_v13, %s2423_s14 }
0x27ab   :  { %v1679_v14 = vpop.permute.xlu0 %1678 }
0x27ac   :  { %2244 = vmatmul.mubr.msk.bf16.vlgmr.msra.gmra.mrb[36].mxu1 %vm188_vm4, %v1679_v14 }
0x27ad   :  { %2256 = vmatpush3.bf16.msra.mxu1 %v2798_v20  ;;  %2259 = vmatprep.mubr.msk.bf16.mxu1 %vm2420_vm0, %v2419_v3 }
0x27ae   :  { %2257 = vmatprep.subr.bf16.mxu1 %v2419_v3 }
0x27b1   :  { %2258 = vmatpush3.bf16.msra.mxu1 %v2804_v24 }
0x287f   :  { %v1717_v18 = vpop.f32.mrb[36].mxu1 }
0x2880   :  { %v1729_v17 = vadd.f32 %v1717_v18, %v2846_v61  ;;  %v2245_v59 = vpop.f32.mrb[37].mxu1  ;;  %v1723_v22 = vadd.f32 %v1717_v18, %v1675_v19 }
0x2881   :  { %v1720_v7 = vpop.f32.mrb[38].mxu1  ;;  %v69_v59 = vld [vmem:[%s2984_s6] sm:$0xff] }
0x2882   :  { %1731 = vrot.lane.b32.xlu1 %v1729_v17, %s2424_s16  ;;  %v2246_v0 = vpop.f32.mrb[39].mxu1  ;;  %v1724_v23 = vsub.f32 0.0, %v1723_v22  ;;  %v70_v7 = vld [vmem:[%s2984_s6 + $0x8] sm:$0xff]  ;;  %v72_v22 = vld [vmem:[%s2984_s6 + $0x18] sm:$0xff] }
0x2883   :  { %v71_v0 = vld [vmem:[%s2984_s6 + $0x10] sm:$0xff] }
0x2884   :  { %v1725_v35 = vmul.f32 1.442695, %v1724_v23  ;;  %v1926_v23 = vpack.c.bf16 %v72_v22, %v71_v0 }
0x2886   :  { %2373 = vpow2.f32 %v1725_v35 }
0x2890   :  { %v2374_v20 = vpop.eup %2373 }
0x2891   :  { %v1727_v60 = vadd.f32 1.0, %v2374_v20 }
0x2893   :  { %2375 = vrcp.f32 %v1727_v60 }
0x289d   :  { %v2376_v38 = vpop.eup %2375 }
0x289e   :  { %v1741_v28 = vsub.f32 1.0, %v2376_v38  ;;  %v1747_v30 = vmul.f32 %v2376_v38, %v1674_v33 }
0x28f4   :  { %v1732_v21 = vpop.permute.xlu1 %1731 }
0x28f5   :  { %v1734_v25 = vmul.f32 %v2376_v38, %v1732_v21 }
0x28f7   :  { %1736 = vrot.lane.b32.xlu0 %v1734_v25, %s2424_s16 }
0x2969   :  { %v1737_v24 = vpop.permute.xlu0 %1736 }
0x296a   :  { %v1739_v26 = vadd.f32 %v1737_v24, %v1675_v19  ;;  %v1925_v19 = vpack.c.bf16 %v70_v7, %v69_v59 }
0x296c   :  { %2377 = vtanh.f32 %v1739_v26 }
0x2976   :  { %v2378_v27 = vpop.eup %2377 }
0x2977   :  { %1743 = vrot.lane.b32.xlu1 %v2378_v27, %s2423_s14 }
0x29e9   :  { %v1744_v29 = vpop.permute.xlu1 %1743 }
0x29ea   :  { %v1746_v31 = vmul.f32 %v1744_v29, %v1741_v28 }
0x29ec   :  { %v1748_v32 = vadd.f32 %v1747_v30, %v1746_v31 }
0x29ee   :  { %v1750_v34 = vpack.c.bf16 %v1748_v32, %v1748_v32 }
0x29f0   :  { %1752 = vrot.lane.b32.xlu0 %v1750_v34, %s2423_s14 }
0x2a62   :  { %v1753_v37 = vpop.permute.xlu0 %1752 }
0x2a63   :  { %2252 = vmatmul.mubr.msk.bf16.vlgmr.msra.gmra.mrb[40].mxu0 %vm188_vm4, %v1753_v37 }
0x2a64   :  { %2267 = vmatprep.mubr.msk.bf16.mxu0 %vm2420_vm0, %v2419_v3  ;;  %2264 = vmatpush3.bf16.msra.mxu0 %v1925_v19 }
0x2a65   :  { %2265 = vmatprep.subr.bf16.mxu0 %v2419_v3 }
0x2a68   :  { %2266 = vmatpush3.bf16.msra.mxu0 %v1926_v23 }
0x2b36   :  { %v1791_v39 = vpop.f32.mrb[40].mxu0 }
0x2b37   :  { %v1803_v40 = vadd.f32 %v1791_v39, %v2846_v61  ;;  %v2253_v41 = vpop.f32.mrb[41].mxu0  ;;  %v1797_v45 = vadd.f32 %v1791_v39, %v1749_v44 }
0x2b38   :  { %v1794_v42 = vpop.f32.mrb[42].mxu0 }
0x2b39   :  { %1805 = vrot.lane.b32.xlu1 %v1803_v40, %s2424_s16  ;;  %v2254_v43 = vpop.f32.mrb[43].mxu0  ;;  %v1798_v46 = vsub.f32 0.0, %v1797_v45 }
0x2b3b   :  { %v1799_v47 = vmul.f32 1.442695, %v1798_v46 }
0x2b3d   :  { %2379 = vpow2.f32 %v1799_v47  ;;  %v2425_v47 = vmov -1.0  }
0x2b47   :  { %v2380_v48 = vpop.eup %2379 }
0x2b48   :  { %v1801_v49 = vadd.f32 1.0, %v2380_v48 }
0x2b4a   :  { %2381 = vrcp.f32 %v1801_v49 }
0x2b54   :  { %v2382_v50 = vpop.eup %2381 }
0x2b55   :  { %v1815_v55 = vsub.f32 1.0, %v2382_v50  ;;  %v1821_v15 = vmul.f32 %v2382_v50, %v1748_v32 }
0x2bab   :  { %v1806_v16 = vpop.permute.xlu1 %1805 }
0x2bac   :  { %v1808_v51 = vmul.f32 %v2382_v50, %v1806_v16 }
0x2bae   :  { %1810 = vrot.lane.b32.xlu0 %v1808_v51, %s2424_s16 }
0x2c20   :  { %v1811_v52 = vpop.permute.xlu0 %1810 }
0x2c21   :  { %v1813_v53 = vadd.f32 %v1811_v52, %v1749_v44 }
0x2c23   :  { %2383 = vtanh.f32 %v1813_v53 }
0x2c2d   :  { %v2384_v54 = vpop.eup %2383 }
0x2c2e   :  { %1817 = vrot.lane.b32.xlu1 %v2384_v54, %s2423_s14  ;;  %v2019_v54 = vld [vmem:[%s2984_s6 + $0x20] ss:$0 sm:$0xff] }
0x2ca0   :  { %v1818_v56 = vpop.permute.xlu1 %1817 }
0x2ca1   :  { %v1820_v36 = vmul.f32 %v1818_v56, %v1815_v55 }
0x2ca3   :  { %v1822_v58 = vadd.f32 %v1821_v15, %v1820_v36 }
0x2ca5   :  { %v1824_v62 = vpack.c.bf16 %v1822_v58, %v1822_v58 }
0x2ca7   :  { %1826 = vrot.lane.b32.xlu0 %v1824_v62, %s2423_s14 }
0x2d19   :  { %v1827_v63 = vpop.permute.xlu0 %1826 }
0x2d1a   :  { %2260 = vmatmul.mubr.msk.bf16.vlgmr.msra.gmra.mrb[40].mxu1 %vm188_vm4, %v1827_v63 }
0x2ded   :  { %v1865_v1 = vpop.f32.mrb[40].mxu1 }
0x2dee   :  { %v1877_v2 = vadd.f32 %v1865_v1, %v2846_v61  ;;  %v2261_v4 = vpop.f32.mrb[41].mxu1  ;;  %v1871_v9 = vadd.f32 %v1865_v1, %v1823_v8 }
0x2def   :  { %v1868_v5 = vpop.f32.mrb[42].mxu1 }
0x2df0   :  { %1879 = vrot.lane.b32.xlu1 %v1877_v2, %s2424_s16  ;;  %v2262_v6 = vpop.f32.mrb[43].mxu1  ;;  %v1872_v10 = vsub.f32 0.0, %v1871_v9 }
0x2df2   :  { %v1873_v11 = vmul.f32 1.442695, %v1872_v10 }
0x2df4   :  { %2385 = vpow2.f32 %v1873_v11 }
0x2dfe   :  { %v2386_v57 = vpop.eup %2385 }
0x2dff   :  { %v1875_v12 = vadd.f32 1.0, %v2386_v57 }
0x2e01   :  { %2387 = vrcp.f32 %v1875_v12 }
0x2e0b   :  { %v2388_v33 = vpop.eup %2387 }
0x2e0c   :  { %v1889_v35 = vsub.f32 1.0, %v2388_v33  ;;  %v1895_v60 = vmul.f32 %v2388_v33, %v1822_v58 }
0x2e62   :  { %v1880_v13 = vpop.permute.xlu1 %1879 }
0x2e63   :  { %v1882_v14 = vmul.f32 %v2388_v33, %v1880_v13 }
0x2e65   :  { %1884 = vrot.lane.b32.xlu0 %v1882_v14, %s2424_s16  ;;  %s1985_s16 = sshll.u32 %s2426_s15, 4  ;;  %s1986_s16 = int_to_ptr.vmem [resolvable:$true] %s1985_s16 }
0x2e66   :  { %s2395_s3 = scalar_lea.vmem %s1986_s16, 32  ;;  %p2400_p1 = scmp.lt.s32.totalorder %s1986_s16, %s1986_s16 }
0x2e67   :  { %p2396_p0 = scmp.ne.s32.totalorder %s1986_s16, %s2395_s3  ;;  %p2401_p2 = scmp.lt.s32.totalorder %s2395_s3, %s2395_s3 }
0x2e69   :  { %p2402_p3 = por %p2401_p2, %p2400_p1 }
0x2e6b   :  { %p2403_p4 = pnand %p2402_p3, %p2396_p0 }
0x2ed7   :  { %v1885_v18 = vpop.permute.xlu0 %1884 }
0x2ed8   :  { %v1887_v61 = vadd.f32 %v1885_v18, %v1823_v8 }
0x2eda   :  { %2389 = vtanh.f32 %v1887_v61 }
0x2ee4   :  { %v2390_v17 = vpop.eup %2389 }
0x2ee5   :  { %1891 = vrot.lane.b32.xlu1 %v2390_v17, %s2423_s14 }
0x2f57   :  { %v1892_v20 = vpop.permute.xlu1 %1891 }
0x2f58   :  { %v1894_v38 = vmul.f32 %v1892_v20, %v1889_v35 }
0x2f5a   :  { %v1896_v21 = vadd.f32 %v1895_v60, %v1894_v38 }
0x2f5c   :  { %v1898_v25 = vmul.f32 0.70710677, %v1896_v21  ;;  %v1897_v50 = vmul.f32 0.5, %v1896_v21 }
0x2f5e   :  { %v1901_v24 = vand.u32 2147483647, %v1898_v25  ;;  %vm1899_vm11 = vcmp.ge.f32.partialorder %v1898_v25, 0.0 }
0x2f5f   :  { %v1900_v48 = vsel %vm1899_vm11, 1.0, %v2425_v47 }
0x2f60   :  { %v1902_v26 = vmul.f32 0.3275911, %v1901_v24  ;;  %v1915_v28 = vsub.f32 0.0, %v1901_v24 }
0x2f62   :  { %v1903_v27 = vadd.f32 1.0, %v1902_v26  ;;  %v1916_v30 = vmul.f32 %v1915_v28, %v1901_v24 }
0x2f64   :  { %2391 = vrcp.f32 %v1903_v27  ;;  %v1917_v34 = vmul.f32 1.442695, %v1916_v30 }
0x2f66   :  { %2393 = vpow2.f32 %v1917_v34 }
0x2f6e   :  { %v2392_v29 = vpop.eup %2391 }
0x2f6f   :  { %v1906_v31 = vmul.f32 1.0614054, %v2392_v29 }
0x2f70   :  { %v2394_v44 = vpop.eup %2393 }
0x2f71   :  { %v1907_v32 = vadd.f32 -1.4531521, %v1906_v31 }
0x2f73   :  { %v1908_v37 = vmul.f32 %v2392_v29, %v1907_v32 }
0x2f75   :  { %v1909_v39 = vadd.f32 1.4214138, %v1908_v37 }
0x2f77   :  { %v1910_v3 = vmul.f32 %v2392_v29, %v1909_v39 }
0x2f79   :  { %v1911_v40 = vadd.f32 -0.28449672, %v1910_v3 }
0x2f7b   :  { %v1912_v41 = vmul.f32 %v2392_v29, %v1911_v40 }
0x2f7d   :  { %v1913_v42 = vadd.f32 0.2548296, %v1912_v41 }
0x2f7f   :  { %v1914_v43 = vmul.f32 %v2392_v29, %v1913_v42 }
0x2f81   :  { %v1919_v45 = vmul.f32 %v2394_v44, %v1914_v43 }
0x2f83   :  { %v1920_v46 = vsub.f32 1.0, %v1919_v45 }
0x2f85   :  { %v1921_v49 = vmul.f32 %v1920_v46, %v1900_v48 }
0x2f87   :  { %v1922_v16 = vadd.f32 1.0, %v1921_v49 }
0x2f89   :  { %v1923_v51 = vmul.f32 %v1922_v16, %v1897_v50 }
0x2f8b   :  { %v1924_v52 = vpack.c.bf16 %v1923_v51, %v1923_v51 }
0x2f8d   :  { %1932 = vrot.lane.b32.xlu0 %v1924_v52, %s2423_s14 }
0x2fff   :  { %v1933_v53 = vpop.permute.xlu0 %1932 }
0x3000   :  { %2268 = vmatmul.mubr.msk.bf16.vlgmr.msra.gmra.mrb[44].mxu0 %vm188_vm4, %v1933_v53 }
0x30d3   :  { %v1971_v55 = vpop.f32.mrb[44].mxu0 }
0x30d4   :  { %v1972_v56 = vadd.f32 %v2019_v54, %v1971_v55  ;;  %v2269_v15 = vpop.f32.mrb[45].mxu0 }
0x30d5   :  { %v1974_v36 = vpop.f32.mrb[46].mxu0 }
0x30d6   :  { %v2270_v58 = vpop.f32.mrb[47].mxu0  ;;  %1978 = vst.msk [vmem:[#allocation4] sm:$0x3] %vm1977_vm12, %v1972_v56 }
0x30d7   :  { %2406 = shalt.err (!%p2403_p4)
}
0x30d8   :  { %s2407_s6 = scalar_lea.hbm %s2985_s7, 32 }
0x30d9   :  { %p2408_p5 = scmp.ne.s32.totalorder %s2985_s7, %s2407_s6  ;;  %p2411_p6 = scmp.lt.u32.totalorder %s2407_s6, %s2985_s7 }
0x30db   :  { %p2413_p7 = pnand %p2411_p6, %p2408_p5 }
0x30dd   :  { %2416 = shalt.err (!%p2413_p7)
}
0x30de   :  { %1988 = dma.vmem_to_hbm [thread:$0]  %s1986_s16, 32, %s2985_s7, [#allocation5]  }
0x30df   :  { %2417 = dma.done.wait [#allocation5], 32  }
0x30e0   :  { %2418 = vsyncadd [#allocation5], 4294967264 }
0x30e1   :  { %1992 = vsyncpa [#allocation5], 1 }

</bundles_post_ra>
